<compile_context>
chip_gen: v7x
topology: tpu7x:2x2x1
jax: 0.10.0
libtpu: 0.0.40
codegen_flags: <defaults>
</compile_context>

<pallas_src>
import jax
import jax.numpy as jnp
from jax import lax
from jax.experimental import pallas as pl
from jax.experimental.pallas import tpu as pltpu


def _conv_layers_kernel(x_ref, w1_ref, b1_ref, w2_ref, b2_ref, o_ref):
    # x_ref : (1, Cin, TH, W+4)  NCHW tile; W zero-padded by 2 on each side
    # w1_ref: (Cmid*Cin*3,)  SMEM, torch-layout flat: idx = (cm*Cin + ci)*3 + k
    # b1_ref: (Cmid,)        SMEM
    # w2_ref: (Cout*Cmid*3,) SMEM, torch-layout flat: idx = (co*Cmid + cm)*3 + k
    # b2_ref: (Cout,)        SMEM
    # o_ref : (1, Cout, TH, W)
    _, Cin, TH, Wpp = x_ref.shape
    W = Wpp - 4
    Wc = W + 2                      # width of the conv2-padded intermediate
    Cmid = b1_ref.shape[0]
    Cout = b2_ref.shape[0]

    # ---- conv1: produce h_pad (already padded for conv2), width W+2 ----
    # padded coords p in [0, W+2): h_pad[p] = 0 for p in {0, W+1},
    # else b1[cm] + sum_{ci,k} x_pp[p + k] * W1[cm, ci, k]
    col = lax.broadcasted_iota(jnp.int32, (TH, Wc), 1)
    interior = (col >= 1) & (col <= W)

    h_acc = [None] * Cmid
    for ci in range(Cin):
        for k in range(3):
            t = x_ref[0, ci, :, k:k + Wc].astype(jnp.float32)   # (TH, Wc) lane-dense
            for cm in range(Cmid):
                w = w1_ref[(cm * Cin + ci) * 3 + k]             # SMEM scalar
                term = t * w
                h_acc[cm] = term if h_acc[cm] is None else h_acc[cm] + term

    h_pad = [jnp.where(interior, h_acc[cm] + b1_ref[cm], 0.0)
             for cm in range(Cmid)]

    # ---- conv2: out[w] = b2 + sum_{cm,k} h_pad[w + k] * W2[co, cm, k] ----
    out_acc = [None] * Cout
    for cm in range(Cmid):
        for k in range(3):
            t = h_pad[cm][:, k:k + W]                           # (TH, W)
            for co in range(Cout):
                w = w2_ref[(co * Cmid + cm) * 3 + k]            # SMEM scalar
                term = t * w
                out_acc[co] = term if out_acc[co] is None else out_acc[co] + term

    for co in range(Cout):
        o_ref[0, co, :, :] = (out_acc[co] + b2_ref[co]).astype(o_ref.dtype)


def _pick_th(H, max_th=256):
    """Largest H-tile that keeps blocks legal ((8,128) rule) and divides H."""
    if H <= max_th:
        return H
    best = None
    for th in range(8, max_th + 1, 8):
        if H % th == 0:
            best = th
    return best if best is not None else H


def conv_layers_forward(x_nchw, w1, b1, w2, b2, *, th_max=256):
    """x_nchw: (N, Cin, H, W); w1: (Cmid, Cin, 1, 3); w2: (Cout, Cmid, 1, 3)."""
    N, Cin, H, W = x_nchw.shape
    Cmid = w1.shape[0]
    Cout = w2.shape[0]
    TH = _pick_th(H, th_max)

    # Zero-pad W by 2 on each side (double pad: covers conv1's own padding and
    # lets conv1 be evaluated directly at conv2's padded width).
    x_pad = jnp.pad(x_nchw, ((0, 0), (0, 0), (0, 0), (2, 2)))
    Wpp = W + 4

    # Flatten weights/biases into 1-D f32 SMEM arrays (avoid 2-D SMEM padding).
    w1_flat = w1.astype(jnp.float32).reshape(-1)   # (Cmid*Cin*3,)
    w2_flat = w2.astype(jnp.float32).reshape(-1)   # (Cout*Cmid*3,)
    b1f = b1.astype(jnp.float32)
    b2f = b2.astype(jnp.float32)

    grid = (N, H // TH)

    flops = 2 * N * H * W * 3 * (Cin * Cmid + Cmid * Cout)
    bytes_accessed = 4 * (N * Cin * H * Wpp + N * Cout * H * W
                          + int(w1_flat.size) + int(w2_flat.size) + Cmid + Cout)

    out = pl.pallas_call(
        _conv_layers_kernel,
        out_shape=jax.ShapeDtypeStruct((N, Cout, H, W), x_nchw.dtype),
        grid=grid,
        in_specs=[
            pl.BlockSpec((1, Cin, TH, Wpp), lambda n, h: (n, 0, h, 0)),
            pl.BlockSpec(memory_space=pltpu.MemorySpace.SMEM),
            pl.BlockSpec(memory_space=pltpu.MemorySpace.SMEM),
            pl.BlockSpec(memory_space=pltpu.MemorySpace.SMEM),
            pl.BlockSpec(memory_space=pltpu.MemorySpace.SMEM),
        ],
        out_specs=pl.BlockSpec((1, Cout, TH, W), lambda n, h: (n, 0, h, 0)),
        compiler_params=pltpu.CompilerParams(
            dimension_semantics=("parallel", "parallel"),
            vmem_limit_bytes=48 * 1024 * 1024,     # safe on v7x's 64 MiB VMEM too
        ),
        cost_estimate=pl.CostEstimate(
            flops=int(flops), transcendentals=0,
            bytes_accessed=int(bytes_accessed)),
    )(x_pad, w1_flat, b1f, w2_flat, b2f)
    return out


def _reference(x_nchw, w1, b1, w2, b2):
    """Pure-JAX reference using lax conv (matches torch F.conv2d semantics)."""
    dn = ("NCHW", "OIHW", "NCHW")
    h = lax.conv_general_dilated(x_nchw, w1, window_strides=(1, 1),
                                 padding=((0, 0), (1, 1)),
                                 dimension_numbers=dn)
    h = h + b1.reshape(1, -1, 1, 1)
    o = lax.conv_general_dilated(h, w2, window_strides=(1, 1),
                                 padding=((0, 0), (1, 1)),
                                 dimension_numbers=dn)
    return o + b2.reshape(1, -1, 1, 1)


if __name__ == "__main__":
    key = jax.random.PRNGKey(0)
    k_x, k_w1, k_b1, k_w2, k_b2 = jax.random.split(key, 5)

    # Module config: in_channels=3 -> conv1: 3->12, conv2: 12->3
    N, Cin, H, W = 2, 3, 4, 16
    Cmid = Cin * 4

    x = jax.random.normal(k_x, (N, Cin, H, W), dtype=jnp.float32)
    w1 = jax.random.normal(k_w1, (Cmid, Cin, 1, 3), dtype=jnp.float32) * 0.1
    b1 = jax.random.normal(k_b1, (Cmid,), dtype=jnp.float32) * 0.1
    w2 = jax.random.normal(k_w2, (Cin, Cmid, 1, 3), dtype=jnp.float32) * 0.1
    b2 = jax.random.normal(k_b2, (Cin,), dtype=jnp.float32) * 0.1

    out = jax.block_until_ready(conv_layers_forward(x, w1, b1, w2, b2))
    ref = jax.block_until_ready(_reference(x, w1, b1, w2, b2))

    assert out.shape == (N, Cin, H, W), out.shape
    assert jnp.allclose(out, ref, atol=1e-4, rtol=1e-4), "mismatch vs reference"

    print("KERNEL_OK")
</pallas_src>

<mosaic_0001>
module attributes {stable_mosaic.version = 11 : i64} {
  func.func @_conv_layers_kernel(%arg0: i32, %arg1: i32, %arg2: memref<1x3x4x20xf32, #tpu.memory_space<vmem>>, %arg3: memref<108xf32, #tpu.memory_space<smem>>, %arg4: memref<12xf32, #tpu.memory_space<smem>>, %arg5: memref<108xf32, #tpu.memory_space<smem>>, %arg6: memref<3xf32, #tpu.memory_space<smem>>, %arg7: memref<1x3x4x16xf32, #tpu.memory_space<vmem>>) attributes {dimension_semantics = [#tpu.dimension_semantics<parallel>, #tpu.dimension_semantics<parallel>], iteration_bounds = array<i64: 2, 1>, scalar_prefetch = 0 : i64, scratch_operands = 0 : i64, tpu.core_type = #tpu.core_type<tc>, window_params = [{transform_indices = @transform_0, window_bounds = array<i64: 1, 3, 4, 20>}, {transform_indices = @transform_1, window_bounds = array<i64: 108>}, {transform_indices = @transform_2, window_bounds = array<i64: 12>}, {transform_indices = @transform_3, window_bounds = array<i64: 108>}, {transform_indices = @transform_4, window_bounds = array<i64: 3>}, {transform_indices = @transform_5, window_bounds = array<i64: 1, 3, 4, 16>}]} {
    %0 = tpu.iota {dimensions = array<i32: 1>} : vector<4x18xi32>
    %c1_i32 = arith.constant 1 : i32
    %1 = vector.broadcast %c1_i32 : i32 to vector<4x18xi32>
    %2 = arith.cmpi sge, %0, %1 : vector<4x18xi32>
    %c16_i32 = arith.constant 16 : i32
    %3 = vector.broadcast %c16_i32 : i32 to vector<4x18xi32>
    %4 = arith.cmpi sle, %0, %3 : vector<4x18xi32>
    %5 = arith.andi %2, %4 : vector<4x18xi1>
    %c0 = arith.constant 0 : index
    %c0_0 = arith.constant 0 : index
    %c0_1 = arith.constant 0 : index
    %c0_2 = arith.constant 0 : index
    %6 = vector.load %arg2[%c0, %c0_0, %c0_1, %c0_2] : memref<1x3x4x20xf32, #tpu.memory_space<vmem>>, vector<1x1x4x18xf32>
    %7 = vector.shape_cast %6 : vector<1x1x4x18xf32> to vector<4x18xf32>
    %c0_3 = arith.constant 0 : index
    %8 = memref.load %arg3[%c0_3] : memref<108xf32, #tpu.memory_space<smem>>
    %9 = vector.broadcast %8 : f32 to vector<4x18xf32>
    %10 = arith.mulf %7, %9 : vector<4x18xf32>
    %c9 = arith.constant 9 : index
    %11 = memref.load %arg3[%c9] : memref<108xf32, #tpu.memory_space<smem>>
    %12 = vector.broadcast %11 : f32 to vector<4x18xf32>
    %13 = arith.mulf %7, %12 : vector<4x18xf32>
    %c18 = arith.constant 18 : index
    %14 = memref.load %arg3[%c18] : memref<108xf32, #tpu.memory_space<smem>>
    %15 = vector.broadcast %14 : f32 to vector<4x18xf32>
    %16 = arith.mulf %7, %15 : vector<4x18xf32>
    %c27 = arith.constant 27 : index
    %17 = memref.load %arg3[%c27] : memref<108xf32, #tpu.memory_space<smem>>
    %18 = vector.broadcast %17 : f32 to vector<4x18xf32>
    %19 = arith.mulf %7, %18 : vector<4x18xf32>
    %c36 = arith.constant 36 : index
    %20 = memref.load %arg3[%c36] : memref<108xf32, #tpu.memory_space<smem>>
    %21 = vector.broadcast %20 : f32 to vector<4x18xf32>
    %22 = arith.mulf %7, %21 : vector<4x18xf32>
    %c45 = arith.constant 45 : index
    %23 = memref.load %arg3[%c45] : memref<108xf32, #tpu.memory_space<smem>>
    %24 = vector.broadcast %23 : f32 to vector<4x18xf32>
    %25 = arith.mulf %7, %24 : vector<4x18xf32>
    %c54 = arith.constant 54 : index
    %26 = memref.load %arg3[%c54] : memref<108xf32, #tpu.memory_space<smem>>
    %27 = vector.broadcast %26 : f32 to vector<4x18xf32>
    %28 = arith.mulf %7, %27 : vector<4x18xf32>
    %c63 = arith.constant 63 : index
    %29 = memref.load %arg3[%c63] : memref<108xf32, #tpu.memory_space<smem>>
    %30 = vector.broadcast %29 : f32 to vector<4x18xf32>
    %31 = arith.mulf %7, %30 : vector<4x18xf32>
    %c72 = arith.constant 72 : index
    %32 = memref.load %arg3[%c72] : memref<108xf32, #tpu.memory_space<smem>>
    %33 = vector.broadcast %32 : f32 to vector<4x18xf32>
    %34 = arith.mulf %7, %33 : vector<4x18xf32>
    %c81 = arith.constant 81 : index
    %35 = memref.load %arg3[%c81] : memref<108xf32, #tpu.memory_space<smem>>
    %36 = vector.broadcast %35 : f32 to vector<4x18xf32>
    %37 = arith.mulf %7, %36 : vector<4x18xf32>
    %c90 = arith.constant 90 : index
    %38 = memref.load %arg3[%c90] : memref<108xf32, #tpu.memory_space<smem>>
    %39 = vector.broadcast %38 : f32 to vector<4x18xf32>
    %40 = arith.mulf %7, %39 : vector<4x18xf32>
    %c99 = arith.constant 99 : index
    %41 = memref.load %arg3[%c99] : memref<108xf32, #tpu.memory_space<smem>>
    %42 = vector.broadcast %41 : f32 to vector<4x18xf32>
    %43 = arith.mulf %7, %42 : vector<4x18xf32>
    %c0_4 = arith.constant 0 : index
    %c0_5 = arith.constant 0 : index
    %c0_6 = arith.constant 0 : index
    %c1 = arith.constant 1 : index
    %44 = vector.load %arg2[%c0_4, %c0_5, %c0_6, %c1] : memref<1x3x4x20xf32, #tpu.memory_space<vmem>>, vector<1x1x4x18xf32>
    %45 = vector.shape_cast %44 : vector<1x1x4x18xf32> to vector<4x18xf32>
    %c1_7 = arith.constant 1 : index
    %46 = memref.load %arg3[%c1_7] : memref<108xf32, #tpu.memory_space<smem>>
    %47 = vector.broadcast %46 : f32 to vector<4x18xf32>
    %48 = arith.mulf %45, %47 : vector<4x18xf32>
    %49 = arith.addf %10, %48 : vector<4x18xf32>
    %c10 = arith.constant 10 : index
    %50 = memref.load %arg3[%c10] : memref<108xf32, #tpu.memory_space<smem>>
    %51 = vector.broadcast %50 : f32 to vector<4x18xf32>
    %52 = arith.mulf %45, %51 : vector<4x18xf32>
    %53 = arith.addf %13, %52 : vector<4x18xf32>
    %c19 = arith.constant 19 : index
    %54 = memref.load %arg3[%c19] : memref<108xf32, #tpu.memory_space<smem>>
    %55 = vector.broadcast %54 : f32 to vector<4x18xf32>
    %56 = arith.mulf %45, %55 : vector<4x18xf32>
    %57 = arith.addf %16, %56 : vector<4x18xf32>
    %c28 = arith.constant 28 : index
    %58 = memref.load %arg3[%c28] : memref<108xf32, #tpu.memory_space<smem>>
    %59 = vector.broadcast %58 : f32 to vector<4x18xf32>
    %60 = arith.mulf %45, %59 : vector<4x18xf32>
    %61 = arith.addf %19, %60 : vector<4x18xf32>
    %c37 = arith.constant 37 : index
    %62 = memref.load %arg3[%c37] : memref<108xf32, #tpu.memory_space<smem>>
    %63 = vector.broadcast %62 : f32 to vector<4x18xf32>
    %64 = arith.mulf %45, %63 : vector<4x18xf32>
    %65 = arith.addf %22, %64 : vector<4x18xf32>
    %c46 = arith.constant 46 : index
    %66 = memref.load %arg3[%c46] : memref<108xf32, #tpu.memory_space<smem>>
    %67 = vector.broadcast %66 : f32 to vector<4x18xf32>
    %68 = arith.mulf %45, %67 : vector<4x18xf32>
    %69 = arith.addf %25, %68 : vector<4x18xf32>
    %c55 = arith.constant 55 : index
    %70 = memref.load %arg3[%c55] : memref<108xf32, #tpu.memory_space<smem>>
    %71 = vector.broadcast %70 : f32 to vector<4x18xf32>
    %72 = arith.mulf %45, %71 : vector<4x18xf32>
    %73 = arith.addf %28, %72 : vector<4x18xf32>
    %c64 = arith.constant 64 : index
    %74 = memref.load %arg3[%c64] : memref<108xf32, #tpu.memory_space<smem>>
    %75 = vector.broadcast %74 : f32 to vector<4x18xf32>
    %76 = arith.mulf %45, %75 : vector<4x18xf32>
    %77 = arith.addf %31, %76 : vector<4x18xf32>
    %c73 = arith.constant 73 : index
    %78 = memref.load %arg3[%c73] : memref<108xf32, #tpu.memory_space<smem>>
    %79 = vector.broadcast %78 : f32 to vector<4x18xf32>
    %80 = arith.mulf %45, %79 : vector<4x18xf32>
    %81 = arith.addf %34, %80 : vector<4x18xf32>
    %c82 = arith.constant 82 : index
    %82 = memref.load %arg3[%c82] : memref<108xf32, #tpu.memory_space<smem>>
    %83 = vector.broadcast %82 : f32 to vector<4x18xf32>
    %84 = arith.mulf %45, %83 : vector<4x18xf32>
    %85 = arith.addf %37, %84 : vector<4x18xf32>
    %c91 = arith.constant 91 : index
    %86 = memref.load %arg3[%c91] : memref<108xf32, #tpu.memory_space<smem>>
    %87 = vector.broadcast %86 : f32 to vector<4x18xf32>
    %88 = arith.mulf %45, %87 : vector<4x18xf32>
    %89 = arith.addf %40, %88 : vector<4x18xf32>
    %c100 = arith.constant 100 : index
    %90 = memref.load %arg3[%c100] : memref<108xf32, #tpu.memory_space<smem>>
    %91 = vector.broadcast %90 : f32 to vector<4x18xf32>
    %92 = arith.mulf %45, %91 : vector<4x18xf32>
    %93 = arith.addf %43, %92 : vector<4x18xf32>
    %c0_8 = arith.constant 0 : index
    %c0_9 = arith.constant 0 : index
    %c0_10 = arith.constant 0 : index
    %c2 = arith.constant 2 : index
    %94 = vector.load %arg2[%c0_8, %c0_9, %c0_10, %c2] : memref<1x3x4x20xf32, #tpu.memory_space<vmem>>, vector<1x1x4x18xf32>
    %95 = vector.shape_cast %94 : vector<1x1x4x18xf32> to vector<4x18xf32>
    %c2_11 = arith.constant 2 : index
    %96 = memref.load %arg3[%c2_11] : memref<108xf32, #tpu.memory_space<smem>>
    %97 = vector.broadcast %96 : f32 to vector<4x18xf32>
    %98 = arith.mulf %95, %97 : vector<4x18xf32>
    %99 = arith.addf %49, %98 : vector<4x18xf32>
    %c11 = arith.constant 11 : index
    %100 = memref.load %arg3[%c11] : memref<108xf32, #tpu.memory_space<smem>>
    %101 = vector.broadcast %100 : f32 to vector<4x18xf32>
    %102 = arith.mulf %95, %101 : vector<4x18xf32>
    %103 = arith.addf %53, %102 : vector<4x18xf32>
    %c20 = arith.constant 20 : index
    %104 = memref.load %arg3[%c20] : memref<108xf32, #tpu.memory_space<smem>>
    %105 = vector.broadcast %104 : f32 to vector<4x18xf32>
    %106 = arith.mulf %95, %105 : vector<4x18xf32>
    %107 = arith.addf %57, %106 : vector<4x18xf32>
    %c29 = arith.constant 29 : index
    %108 = memref.load %arg3[%c29] : memref<108xf32, #tpu.memory_space<smem>>
    %109 = vector.broadcast %108 : f32 to vector<4x18xf32>
    %110 = arith.mulf %95, %109 : vector<4x18xf32>
    %111 = arith.addf %61, %110 : vector<4x18xf32>
    %c38 = arith.constant 38 : index
    %112 = memref.load %arg3[%c38] : memref<108xf32, #tpu.memory_space<smem>>
    %113 = vector.broadcast %112 : f32 to vector<4x18xf32>
    %114 = arith.mulf %95, %113 : vector<4x18xf32>
    %115 = arith.addf %65, %114 : vector<4x18xf32>
    %c47 = arith.constant 47 : index
    %116 = memref.load %arg3[%c47] : memref<108xf32, #tpu.memory_space<smem>>
    %117 = vector.broadcast %116 : f32 to vector<4x18xf32>
    %118 = arith.mulf %95, %117 : vector<4x18xf32>
    %119 = arith.addf %69, %118 : vector<4x18xf32>
    %c56 = arith.constant 56 : index
    %120 = memref.load %arg3[%c56] : memref<108xf32, #tpu.memory_space<smem>>
    %121 = vector.broadcast %120 : f32 to vector<4x18xf32>
    %122 = arith.mulf %95, %121 : vector<4x18xf32>
    %123 = arith.addf %73, %122 : vector<4x18xf32>
    %c65 = arith.constant 65 : index
    %124 = memref.load %arg3[%c65] : memref<108xf32, #tpu.memory_space<smem>>
    %125 = vector.broadcast %124 : f32 to vector<4x18xf32>
    %126 = arith.mulf %95, %125 : vector<4x18xf32>
    %127 = arith.addf %77, %126 : vector<4x18xf32>
    %c74 = arith.constant 74 : index
    %128 = memref.load %arg3[%c74] : memref<108xf32, #tpu.memory_space<smem>>
    %129 = vector.broadcast %128 : f32 to vector<4x18xf32>
    %130 = arith.mulf %95, %129 : vector<4x18xf32>
    %131 = arith.addf %81, %130 : vector<4x18xf32>
    %c83 = arith.constant 83 : index
    %132 = memref.load %arg3[%c83] : memref<108xf32, #tpu.memory_space<smem>>
    %133 = vector.broadcast %132 : f32 to vector<4x18xf32>
    %134 = arith.mulf %95, %133 : vector<4x18xf32>
    %135 = arith.addf %85, %134 : vector<4x18xf32>
    %c92 = arith.constant 92 : index
    %136 = memref.load %arg3[%c92] : memref<108xf32, #tpu.memory_space<smem>>
    %137 = vector.broadcast %136 : f32 to vector<4x18xf32>
    %138 = arith.mulf %95, %137 : vector<4x18xf32>
    %139 = arith.addf %89, %138 : vector<4x18xf32>
    %c101 = arith.constant 101 : index
    %140 = memref.load %arg3[%c101] : memref<108xf32, #tpu.memory_space<smem>>
    %141 = vector.broadcast %140 : f32 to vector<4x18xf32>
    %142 = arith.mulf %95, %141 : vector<4x18xf32>
    %143 = arith.addf %93, %142 : vector<4x18xf32>
    %c0_12 = arith.constant 0 : index
    %c1_13 = arith.constant 1 : index
    %c0_14 = arith.constant 0 : index
    %c0_15 = arith.constant 0 : index
    %144 = vector.load %arg2[%c0_12, %c1_13, %c0_14, %c0_15] : memref<1x3x4x20xf32, #tpu.memory_space<vmem>>, vector<1x1x4x18xf32>
    %145 = vector.shape_cast %144 : vector<1x1x4x18xf32> to vector<4x18xf32>
    %c3 = arith.constant 3 : index
    %146 = memref.load %arg3[%c3] : memref<108xf32, #tpu.memory_space<smem>>
    %147 = vector.broadcast %146 : f32 to vector<4x18xf32>
    %148 = arith.mulf %145, %147 : vector<4x18xf32>
    %149 = arith.addf %99, %148 : vector<4x18xf32>
    %c12 = arith.constant 12 : index
    %150 = memref.load %arg3[%c12] : memref<108xf32, #tpu.memory_space<smem>>
    %151 = vector.broadcast %150 : f32 to vector<4x18xf32>
    %152 = arith.mulf %145, %151 : vector<4x18xf32>
    %153 = arith.addf %103, %152 : vector<4x18xf32>
    %c21 = arith.constant 21 : index
    %154 = memref.load %arg3[%c21] : memref<108xf32, #tpu.memory_space<smem>>
    %155 = vector.broadcast %154 : f32 to vector<4x18xf32>
    %156 = arith.mulf %145, %155 : vector<4x18xf32>
    %157 = arith.addf %107, %156 : vector<4x18xf32>
    %c30 = arith.constant 30 : index
    %158 = memref.load %arg3[%c30] : memref<108xf32, #tpu.memory_space<smem>>
    %159 = vector.broadcast %158 : f32 to vector<4x18xf32>
    %160 = arith.mulf %145, %159 : vector<4x18xf32>
    %161 = arith.addf %111, %160 : vector<4x18xf32>
    %c39 = arith.constant 39 : index
    %162 = memref.load %arg3[%c39] : memref<108xf32, #tpu.memory_space<smem>>
    %163 = vector.broadcast %162 : f32 to vector<4x18xf32>
    %164 = arith.mulf %145, %163 : vector<4x18xf32>
    %165 = arith.addf %115, %164 : vector<4x18xf32>
    %c48 = arith.constant 48 : index
    %166 = memref.load %arg3[%c48] : memref<108xf32, #tpu.memory_space<smem>>
    %167 = vector.broadcast %166 : f32 to vector<4x18xf32>
    %168 = arith.mulf %145, %167 : vector<4x18xf32>
    %169 = arith.addf %119, %168 : vector<4x18xf32>
    %c57 = arith.constant 57 : index
    %170 = memref.load %arg3[%c57] : memref<108xf32, #tpu.memory_space<smem>>
    %171 = vector.broadcast %170 : f32 to vector<4x18xf32>
    %172 = arith.mulf %145, %171 : vector<4x18xf32>
    %173 = arith.addf %123, %172 : vector<4x18xf32>
    %c66 = arith.constant 66 : index
    %174 = memref.load %arg3[%c66] : memref<108xf32, #tpu.memory_space<smem>>
    %175 = vector.broadcast %174 : f32 to vector<4x18xf32>
    %176 = arith.mulf %145, %175 : vector<4x18xf32>
    %177 = arith.addf %127, %176 : vector<4x18xf32>
    %c75 = arith.constant 75 : index
    %178 = memref.load %arg3[%c75] : memref<108xf32, #tpu.memory_space<smem>>
    %179 = vector.broadcast %178 : f32 to vector<4x18xf32>
    %180 = arith.mulf %145, %179 : vector<4x18xf32>
    %181 = arith.addf %131, %180 : vector<4x18xf32>
    %c84 = arith.constant 84 : index
    %182 = memref.load %arg3[%c84] : memref<108xf32, #tpu.memory_space<smem>>
    %183 = vector.broadcast %182 : f32 to vector<4x18xf32>
    %184 = arith.mulf %145, %183 : vector<4x18xf32>
    %185 = arith.addf %135, %184 : vector<4x18xf32>
    %c93 = arith.constant 93 : index
    %186 = memref.load %arg3[%c93] : memref<108xf32, #tpu.memory_space<smem>>
    %187 = vector.broadcast %186 : f32 to vector<4x18xf32>
    %188 = arith.mulf %145, %187 : vector<4x18xf32>
    %189 = arith.addf %139, %188 : vector<4x18xf32>
    %c102 = arith.constant 102 : index
    %190 = memref.load %arg3[%c102] : memref<108xf32, #tpu.memory_space<smem>>
    %191 = vector.broadcast %190 : f32 to vector<4x18xf32>
    %192 = arith.mulf %145, %191 : vector<4x18xf32>
    %193 = arith.addf %143, %192 : vector<4x18xf32>
    %c0_16 = arith.constant 0 : index
    %c1_17 = arith.constant 1 : index
    %c0_18 = arith.constant 0 : index
    %c1_19 = arith.constant 1 : index
    %194 = vector.load %arg2[%c0_16, %c1_17, %c0_18, %c1_19] : memref<1x3x4x20xf32, #tpu.memory_space<vmem>>, vector<1x1x4x18xf32>
    %195 = vector.shape_cast %194 : vector<1x1x4x18xf32> to vector<4x18xf32>
    %c4 = arith.constant 4 : index
    %196 = memref.load %arg3[%c4] : memref<108xf32, #tpu.memory_space<smem>>
    %197 = vector.broadcast %196 : f32 to vector<4x18xf32>
    %198 = arith.mulf %195, %197 : vector<4x18xf32>
    %199 = arith.addf %149, %198 : vector<4x18xf32>
    %c13 = arith.constant 13 : index
    %200 = memref.load %arg3[%c13] : memref<108xf32, #tpu.memory_space<smem>>
    %201 = vector.broadcast %200 : f32 to vector<4x18xf32>
    %202 = arith.mulf %195, %201 : vector<4x18xf32>
    %203 = arith.addf %153, %202 : vector<4x18xf32>
    %c22 = arith.constant 22 : index
    %204 = memref.load %arg3[%c22] : memref<108xf32, #tpu.memory_space<smem>>
    %205 = vector.broadcast %204 : f32 to vector<4x18xf32>
    %206 = arith.mulf %195, %205 : vector<4x18xf32>
    %207 = arith.addf %157, %206 : vector<4x18xf32>
    %c31 = arith.constant 31 : index
    %208 = memref.load %arg3[%c31] : memref<108xf32, #tpu.memory_space<smem>>
    %209 = vector.broadcast %208 : f32 to vector<4x18xf32>
    %210 = arith.mulf %195, %209 : vector<4x18xf32>
    %211 = arith.addf %161, %210 : vector<4x18xf32>
    %c40 = arith.constant 40 : index
    %212 = memref.load %arg3[%c40] : memref<108xf32, #tpu.memory_space<smem>>
    %213 = vector.broadcast %212 : f32 to vector<4x18xf32>
    %214 = arith.mulf %195, %213 : vector<4x18xf32>
    %215 = arith.addf %165, %214 : vector<4x18xf32>
    %c49 = arith.constant 49 : index
    %216 = memref.load %arg3[%c49] : memref<108xf32, #tpu.memory_space<smem>>
    %217 = vector.broadcast %216 : f32 to vector<4x18xf32>
    %218 = arith.mulf %195, %217 : vector<4x18xf32>
    %219 = arith.addf %169, %218 : vector<4x18xf32>
    %c58 = arith.constant 58 : index
    %220 = memref.load %arg3[%c58] : memref<108xf32, #tpu.memory_space<smem>>
    %221 = vector.broadcast %220 : f32 to vector<4x18xf32>
    %222 = arith.mulf %195, %221 : vector<4x18xf32>
    %223 = arith.addf %173, %222 : vector<4x18xf32>
    %c67 = arith.constant 67 : index
    %224 = memref.load %arg3[%c67] : memref<108xf32, #tpu.memory_space<smem>>
    %225 = vector.broadcast %224 : f32 to vector<4x18xf32>
    %226 = arith.mulf %195, %225 : vector<4x18xf32>
    %227 = arith.addf %177, %226 : vector<4x18xf32>
    %c76 = arith.constant 76 : index
    %228 = memref.load %arg3[%c76] : memref<108xf32, #tpu.memory_space<smem>>
    %229 = vector.broadcast %228 : f32 to vector<4x18xf32>
    %230 = arith.mulf %195, %229 : vector<4x18xf32>
    %231 = arith.addf %181, %230 : vector<4x18xf32>
    %c85 = arith.constant 85 : index
    %232 = memref.load %arg3[%c85] : memref<108xf32, #tpu.memory_space<smem>>
    %233 = vector.broadcast %232 : f32 to vector<4x18xf32>
    %234 = arith.mulf %195, %233 : vector<4x18xf32>
    %235 = arith.addf %185, %234 : vector<4x18xf32>
    %c94 = arith.constant 94 : index
    %236 = memref.load %arg3[%c94] : memref<108xf32, #tpu.memory_space<smem>>
    %237 = vector.broadcast %236 : f32 to vector<4x18xf32>
    %238 = arith.mulf %195, %237 : vector<4x18xf32>
    %239 = arith.addf %189, %238 : vector<4x18xf32>
    %c103 = arith.constant 103 : index
    %240 = memref.load %arg3[%c103] : memref<108xf32, #tpu.memory_space<smem>>
    %241 = vector.broadcast %240 : f32 to vector<4x18xf32>
    %242 = arith.mulf %195, %241 : vector<4x18xf32>
    %243 = arith.addf %193, %242 : vector<4x18xf32>
    %c0_20 = arith.constant 0 : index
    %c1_21 = arith.constant 1 : index
    %c0_22 = arith.constant 0 : index
    %c2_23 = arith.constant 2 : index
    %244 = vector.load %arg2[%c0_20, %c1_21, %c0_22, %c2_23] : memref<1x3x4x20xf32, #tpu.memory_space<vmem>>, vector<1x1x4x18xf32>
    %245 = vector.shape_cast %244 : vector<1x1x4x18xf32> to vector<4x18xf32>
    %c5 = arith.constant 5 : index
    %246 = memref.load %arg3[%c5] : memref<108xf32, #tpu.memory_space<smem>>
    %247 = vector.broadcast %246 : f32 to vector<4x18xf32>
    %248 = arith.mulf %245, %247 : vector<4x18xf32>
    %249 = arith.addf %199, %248 : vector<4x18xf32>
    %c14 = arith.constant 14 : index
    %250 = memref.load %arg3[%c14] : memref<108xf32, #tpu.memory_space<smem>>
    %251 = vector.broadcast %250 : f32 to vector<4x18xf32>
    %252 = arith.mulf %245, %251 : vector<4x18xf32>
    %253 = arith.addf %203, %252 : vector<4x18xf32>
    %c23 = arith.constant 23 : index
    %254 = memref.load %arg3[%c23] : memref<108xf32, #tpu.memory_space<smem>>
    %255 = vector.broadcast %254 : f32 to vector<4x18xf32>
    %256 = arith.mulf %245, %255 : vector<4x18xf32>
    %257 = arith.addf %207, %256 : vector<4x18xf32>
    %c32 = arith.constant 32 : index
    %258 = memref.load %arg3[%c32] : memref<108xf32, #tpu.memory_space<smem>>
    %259 = vector.broadcast %258 : f32 to vector<4x18xf32>
    %260 = arith.mulf %245, %259 : vector<4x18xf32>
    %261 = arith.addf %211, %260 : vector<4x18xf32>
    %c41 = arith.constant 41 : index
    %262 = memref.load %arg3[%c41] : memref<108xf32, #tpu.memory_space<smem>>
    %263 = vector.broadcast %262 : f32 to vector<4x18xf32>
    %264 = arith.mulf %245, %263 : vector<4x18xf32>
    %265 = arith.addf %215, %264 : vector<4x18xf32>
    %c50 = arith.constant 50 : index
    %266 = memref.load %arg3[%c50] : memref<108xf32, #tpu.memory_space<smem>>
    %267 = vector.broadcast %266 : f32 to vector<4x18xf32>
    %268 = arith.mulf %245, %267 : vector<4x18xf32>
    %269 = arith.addf %219, %268 : vector<4x18xf32>
    %c59 = arith.constant 59 : index
    %270 = memref.load %arg3[%c59] : memref<108xf32, #tpu.memory_space<smem>>
    %271 = vector.broadcast %270 : f32 to vector<4x18xf32>
    %272 = arith.mulf %245, %271 : vector<4x18xf32>
    %273 = arith.addf %223, %272 : vector<4x18xf32>
    %c68 = arith.constant 68 : index
    %274 = memref.load %arg3[%c68] : memref<108xf32, #tpu.memory_space<smem>>
    %275 = vector.broadcast %274 : f32 to vector<4x18xf32>
    %276 = arith.mulf %245, %275 : vector<4x18xf32>
    %277 = arith.addf %227, %276 : vector<4x18xf32>
    %c77 = arith.constant 77 : index
    %278 = memref.load %arg3[%c77] : memref<108xf32, #tpu.memory_space<smem>>
    %279 = vector.broadcast %278 : f32 to vector<4x18xf32>
    %280 = arith.mulf %245, %279 : vector<4x18xf32>
    %281 = arith.addf %231, %280 : vector<4x18xf32>
    %c86 = arith.constant 86 : index
    %282 = memref.load %arg3[%c86] : memref<108xf32, #tpu.memory_space<smem>>
    %283 = vector.broadcast %282 : f32 to vector<4x18xf32>
    %284 = arith.mulf %245, %283 : vector<4x18xf32>
    %285 = arith.addf %235, %284 : vector<4x18xf32>
    %c95 = arith.constant 95 : index
    %286 = memref.load %arg3[%c95] : memref<108xf32, #tpu.memory_space<smem>>
    %287 = vector.broadcast %286 : f32 to vector<4x18xf32>
    %288 = arith.mulf %245, %287 : vector<4x18xf32>
    %289 = arith.addf %239, %288 : vector<4x18xf32>
    %c104 = arith.constant 104 : index
    %290 = memref.load %arg3[%c104] : memref<108xf32, #tpu.memory_space<smem>>
    %291 = vector.broadcast %290 : f32 to vector<4x18xf32>
    %292 = arith.mulf %245, %291 : vector<4x18xf32>
    %293 = arith.addf %243, %292 : vector<4x18xf32>
    %c0_24 = arith.constant 0 : index
    %c2_25 = arith.constant 2 : index
    %c0_26 = arith.constant 0 : index
    %c0_27 = arith.constant 0 : index
    %294 = vector.load %arg2[%c0_24, %c2_25, %c0_26, %c0_27] : memref<1x3x4x20xf32, #tpu.memory_space<vmem>>, vector<1x1x4x18xf32>
    %295 = vector.shape_cast %294 : vector<1x1x4x18xf32> to vector<4x18xf32>
    %c6 = arith.constant 6 : index
    %296 = memref.load %arg3[%c6] : memref<108xf32, #tpu.memory_space<smem>>
    %297 = vector.broadcast %296 : f32 to vector<4x18xf32>
    %298 = arith.mulf %295, %297 : vector<4x18xf32>
    %299 = arith.addf %249, %298 : vector<4x18xf32>
    %c15 = arith.constant 15 : index
    %300 = memref.load %arg3[%c15] : memref<108xf32, #tpu.memory_space<smem>>
    %301 = vector.broadcast %300 : f32 to vector<4x18xf32>
    %302 = arith.mulf %295, %301 : vector<4x18xf32>
    %303 = arith.addf %253, %302 : vector<4x18xf32>
    %c24 = arith.constant 24 : index
    %304 = memref.load %arg3[%c24] : memref<108xf32, #tpu.memory_space<smem>>
    %305 = vector.broadcast %304 : f32 to vector<4x18xf32>
    %306 = arith.mulf %295, %305 : vector<4x18xf32>
    %307 = arith.addf %257, %306 : vector<4x18xf32>
    %c33 = arith.constant 33 : index
    %308 = memref.load %arg3[%c33] : memref<108xf32, #tpu.memory_space<smem>>
    %309 = vector.broadcast %308 : f32 to vector<4x18xf32>
    %310 = arith.mulf %295, %309 : vector<4x18xf32>
    %311 = arith.addf %261, %310 : vector<4x18xf32>
    %c42 = arith.constant 42 : index
    %312 = memref.load %arg3[%c42] : memref<108xf32, #tpu.memory_space<smem>>
    %313 = vector.broadcast %312 : f32 to vector<4x18xf32>
    %314 = arith.mulf %295, %313 : vector<4x18xf32>
    %315 = arith.addf %265, %314 : vector<4x18xf32>
    %c51 = arith.constant 51 : index
    %316 = memref.load %arg3[%c51] : memref<108xf32, #tpu.memory_space<smem>>
    %317 = vector.broadcast %316 : f32 to vector<4x18xf32>
    %318 = arith.mulf %295, %317 : vector<4x18xf32>
    %319 = arith.addf %269, %318 : vector<4x18xf32>
    %c60 = arith.constant 60 : index
    %320 = memref.load %arg3[%c60] : memref<108xf32, #tpu.memory_space<smem>>
    %321 = vector.broadcast %320 : f32 to vector<4x18xf32>
    %322 = arith.mulf %295, %321 : vector<4x18xf32>
    %323 = arith.addf %273, %322 : vector<4x18xf32>
    %c69 = arith.constant 69 : index
    %324 = memref.load %arg3[%c69] : memref<108xf32, #tpu.memory_space<smem>>
    %325 = vector.broadcast %324 : f32 to vector<4x18xf32>
    %326 = arith.mulf %295, %325 : vector<4x18xf32>
    %327 = arith.addf %277, %326 : vector<4x18xf32>
    %c78 = arith.constant 78 : index
    %328 = memref.load %arg3[%c78] : memref<108xf32, #tpu.memory_space<smem>>
    %329 = vector.broadcast %328 : f32 to vector<4x18xf32>
    %330 = arith.mulf %295, %329 : vector<4x18xf32>
    %331 = arith.addf %281, %330 : vector<4x18xf32>
    %c87 = arith.constant 87 : index
    %332 = memref.load %arg3[%c87] : memref<108xf32, #tpu.memory_space<smem>>
    %333 = vector.broadcast %332 : f32 to vector<4x18xf32>
    %334 = arith.mulf %295, %333 : vector<4x18xf32>
    %335 = arith.addf %285, %334 : vector<4x18xf32>
    %c96 = arith.constant 96 : index
    %336 = memref.load %arg3[%c96] : memref<108xf32, #tpu.memory_space<smem>>
    %337 = vector.broadcast %336 : f32 to vector<4x18xf32>
    %338 = arith.mulf %295, %337 : vector<4x18xf32>
    %339 = arith.addf %289, %338 : vector<4x18xf32>
    %c105 = arith.constant 105 : index
    %340 = memref.load %arg3[%c105] : memref<108xf32, #tpu.memory_space<smem>>
    %341 = vector.broadcast %340 : f32 to vector<4x18xf32>
    %342 = arith.mulf %295, %341 : vector<4x18xf32>
    %343 = arith.addf %293, %342 : vector<4x18xf32>
    %c0_28 = arith.constant 0 : index
    %c2_29 = arith.constant 2 : index
    %c0_30 = arith.constant 0 : index
    %c1_31 = arith.constant 1 : index
    %344 = vector.load %arg2[%c0_28, %c2_29, %c0_30, %c1_31] : memref<1x3x4x20xf32, #tpu.memory_space<vmem>>, vector<1x1x4x18xf32>
    %345 = vector.shape_cast %344 : vector<1x1x4x18xf32> to vector<4x18xf32>
    %c7 = arith.constant 7 : index
    %346 = memref.load %arg3[%c7] : memref<108xf32, #tpu.memory_space<smem>>
    %347 = vector.broadcast %346 : f32 to vector<4x18xf32>
    %348 = arith.mulf %345, %347 : vector<4x18xf32>
    %349 = arith.addf %299, %348 : vector<4x18xf32>
    %c16 = arith.constant 16 : index
    %350 = memref.load %arg3[%c16] : memref<108xf32, #tpu.memory_space<smem>>
    %351 = vector.broadcast %350 : f32 to vector<4x18xf32>
    %352 = arith.mulf %345, %351 : vector<4x18xf32>
    %353 = arith.addf %303, %352 : vector<4x18xf32>
    %c25 = arith.constant 25 : index
    %354 = memref.load %arg3[%c25] : memref<108xf32, #tpu.memory_space<smem>>
    %355 = vector.broadcast %354 : f32 to vector<4x18xf32>
    %356 = arith.mulf %345, %355 : vector<4x18xf32>
    %357 = arith.addf %307, %356 : vector<4x18xf32>
    %c34 = arith.constant 34 : index
    %358 = memref.load %arg3[%c34] : memref<108xf32, #tpu.memory_space<smem>>
    %359 = vector.broadcast %358 : f32 to vector<4x18xf32>
    %360 = arith.mulf %345, %359 : vector<4x18xf32>
    %361 = arith.addf %311, %360 : vector<4x18xf32>
    %c43 = arith.constant 43 : index
    %362 = memref.load %arg3[%c43] : memref<108xf32, #tpu.memory_space<smem>>
    %363 = vector.broadcast %362 : f32 to vector<4x18xf32>
    %364 = arith.mulf %345, %363 : vector<4x18xf32>
    %365 = arith.addf %315, %364 : vector<4x18xf32>
    %c52 = arith.constant 52 : index
    %366 = memref.load %arg3[%c52] : memref<108xf32, #tpu.memory_space<smem>>
    %367 = vector.broadcast %366 : f32 to vector<4x18xf32>
    %368 = arith.mulf %345, %367 : vector<4x18xf32>
    %369 = arith.addf %319, %368 : vector<4x18xf32>
    %c61 = arith.constant 61 : index
    %370 = memref.load %arg3[%c61] : memref<108xf32, #tpu.memory_space<smem>>
    %371 = vector.broadcast %370 : f32 to vector<4x18xf32>
    %372 = arith.mulf %345, %371 : vector<4x18xf32>
    %373 = arith.addf %323, %372 : vector<4x18xf32>
    %c70 = arith.constant 70 : index
    %374 = memref.load %arg3[%c70] : memref<108xf32, #tpu.memory_space<smem>>
    %375 = vector.broadcast %374 : f32 to vector<4x18xf32>
    %376 = arith.mulf %345, %375 : vector<4x18xf32>
    %377 = arith.addf %327, %376 : vector<4x18xf32>
    %c79 = arith.constant 79 : index
    %378 = memref.load %arg3[%c79] : memref<108xf32, #tpu.memory_space<smem>>
    %379 = vector.broadcast %378 : f32 to vector<4x18xf32>
    %380 = arith.mulf %345, %379 : vector<4x18xf32>
    %381 = arith.addf %331, %380 : vector<4x18xf32>
    %c88 = arith.constant 88 : index
    %382 = memref.load %arg3[%c88] : memref<108xf32, #tpu.memory_space<smem>>
    %383 = vector.broadcast %382 : f32 to vector<4x18xf32>
    %384 = arith.mulf %345, %383 : vector<4x18xf32>
    %385 = arith.addf %335, %384 : vector<4x18xf32>
    %c97 = arith.constant 97 : index
    %386 = memref.load %arg3[%c97] : memref<108xf32, #tpu.memory_space<smem>>
    %387 = vector.broadcast %386 : f32 to vector<4x18xf32>
    %388 = arith.mulf %345, %387 : vector<4x18xf32>
    %389 = arith.addf %339, %388 : vector<4x18xf32>
    %c106 = arith.constant 106 : index
    %390 = memref.load %arg3[%c106] : memref<108xf32, #tpu.memory_space<smem>>
    %391 = vector.broadcast %390 : f32 to vector<4x18xf32>
    %392 = arith.mulf %345, %391 : vector<4x18xf32>
    %393 = arith.addf %343, %392 : vector<4x18xf32>
    %c0_32 = arith.constant 0 : index
    %c2_33 = arith.constant 2 : index
    %c0_34 = arith.constant 0 : index
    %c2_35 = arith.constant 2 : index
    %394 = vector.load %arg2[%c0_32, %c2_33, %c0_34, %c2_35] : memref<1x3x4x20xf32, #tpu.memory_space<vmem>>, vector<1x1x4x18xf32>
    %395 = vector.shape_cast %394 : vector<1x1x4x18xf32> to vector<4x18xf32>
    %c8 = arith.constant 8 : index
    %396 = memref.load %arg3[%c8] : memref<108xf32, #tpu.memory_space<smem>>
    %397 = vector.broadcast %396 : f32 to vector<4x18xf32>
    %398 = arith.mulf %395, %397 : vector<4x18xf32>
    %399 = arith.addf %349, %398 : vector<4x18xf32>
    %c17 = arith.constant 17 : index
    %400 = memref.load %arg3[%c17] : memref<108xf32, #tpu.memory_space<smem>>
    %401 = vector.broadcast %400 : f32 to vector<4x18xf32>
    %402 = arith.mulf %395, %401 : vector<4x18xf32>
    %403 = arith.addf %353, %402 : vector<4x18xf32>
    %c26 = arith.constant 26 : index
    %404 = memref.load %arg3[%c26] : memref<108xf32, #tpu.memory_space<smem>>
    %405 = vector.broadcast %404 : f32 to vector<4x18xf32>
    %406 = arith.mulf %395, %405 : vector<4x18xf32>
    %407 = arith.addf %357, %406 : vector<4x18xf32>
    %c35 = arith.constant 35 : index
    %408 = memref.load %arg3[%c35] : memref<108xf32, #tpu.memory_space<smem>>
    %409 = vector.broadcast %408 : f32 to vector<4x18xf32>
    %410 = arith.mulf %395, %409 : vector<4x18xf32>
    %411 = arith.addf %361, %410 : vector<4x18xf32>
    %c44 = arith.constant 44 : index
    %412 = memref.load %arg3[%c44] : memref<108xf32, #tpu.memory_space<smem>>
    %413 = vector.broadcast %412 : f32 to vector<4x18xf32>
    %414 = arith.mulf %395, %413 : vector<4x18xf32>
    %415 = arith.addf %365, %414 : vector<4x18xf32>
    %c53 = arith.constant 53 : index
    %416 = memref.load %arg3[%c53] : memref<108xf32, #tpu.memory_space<smem>>
    %417 = vector.broadcast %416 : f32 to vector<4x18xf32>
    %418 = arith.mulf %395, %417 : vector<4x18xf32>
    %419 = arith.addf %369, %418 : vector<4x18xf32>
    %c62 = arith.constant 62 : index
    %420 = memref.load %arg3[%c62] : memref<108xf32, #tpu.memory_space<smem>>
    %421 = vector.broadcast %420 : f32 to vector<4x18xf32>
    %422 = arith.mulf %395, %421 : vector<4x18xf32>
    %423 = arith.addf %373, %422 : vector<4x18xf32>
    %c71 = arith.constant 71 : index
    %424 = memref.load %arg3[%c71] : memref<108xf32, #tpu.memory_space<smem>>
    %425 = vector.broadcast %424 : f32 to vector<4x18xf32>
    %426 = arith.mulf %395, %425 : vector<4x18xf32>
    %427 = arith.addf %377, %426 : vector<4x18xf32>
    %c80 = arith.constant 80 : index
    %428 = memref.load %arg3[%c80] : memref<108xf32, #tpu.memory_space<smem>>
    %429 = vector.broadcast %428 : f32 to vector<4x18xf32>
    %430 = arith.mulf %395, %429 : vector<4x18xf32>
    %431 = arith.addf %381, %430 : vector<4x18xf32>
    %c89 = arith.constant 89 : index
    %432 = memref.load %arg3[%c89] : memref<108xf32, #tpu.memory_space<smem>>
    %433 = vector.broadcast %432 : f32 to vector<4x18xf32>
    %434 = arith.mulf %395, %433 : vector<4x18xf32>
    %435 = arith.addf %385, %434 : vector<4x18xf32>
    %c98 = arith.constant 98 : index
    %436 = memref.load %arg3[%c98] : memref<108xf32, #tpu.memory_space<smem>>
    %437 = vector.broadcast %436 : f32 to vector<4x18xf32>
    %438 = arith.mulf %395, %437 : vector<4x18xf32>
    %439 = arith.addf %389, %438 : vector<4x18xf32>
    %c107 = arith.constant 107 : index
    %440 = memref.load %arg3[%c107] : memref<108xf32, #tpu.memory_space<smem>>
    %441 = vector.broadcast %440 : f32 to vector<4x18xf32>
    %442 = arith.mulf %395, %441 : vector<4x18xf32>
    %443 = arith.addf %393, %442 : vector<4x18xf32>
    %c0_36 = arith.constant 0 : index
    %444 = memref.load %arg4[%c0_36] : memref<12xf32, #tpu.memory_space<smem>>
    %445 = vector.broadcast %444 : f32 to vector<4x18xf32>
    %446 = arith.addf %399, %445 : vector<4x18xf32>
    %cst = arith.constant 0.000000e+00 : f32
    %447 = vector.broadcast %cst : f32 to vector<4x18xf32>
    %448 = arith.select %5, %446, %447 : vector<4x18xi1>, vector<4x18xf32>
    %c1_37 = arith.constant 1 : index
    %449 = memref.load %arg4[%c1_37] : memref<12xf32, #tpu.memory_space<smem>>
    %450 = vector.broadcast %449 : f32 to vector<4x18xf32>
    %451 = arith.addf %403, %450 : vector<4x18xf32>
    %cst_38 = arith.constant 0.000000e+00 : f32
    %452 = vector.broadcast %cst_38 : f32 to vector<4x18xf32>
    %453 = arith.select %5, %451, %452 : vector<4x18xi1>, vector<4x18xf32>
    %c2_39 = arith.constant 2 : index
    %454 = memref.load %arg4[%c2_39] : memref<12xf32, #tpu.memory_space<smem>>
    %455 = vector.broadcast %454 : f32 to vector<4x18xf32>
    %456 = arith.addf %407, %455 : vector<4x18xf32>
    %cst_40 = arith.constant 0.000000e+00 : f32
    %457 = vector.broadcast %cst_40 : f32 to vector<4x18xf32>
    %458 = arith.select %5, %456, %457 : vector<4x18xi1>, vector<4x18xf32>
    %c3_41 = arith.constant 3 : index
    %459 = memref.load %arg4[%c3_41] : memref<12xf32, #tpu.memory_space<smem>>
    %460 = vector.broadcast %459 : f32 to vector<4x18xf32>
    %461 = arith.addf %411, %460 : vector<4x18xf32>
    %cst_42 = arith.constant 0.000000e+00 : f32
    %462 = vector.broadcast %cst_42 : f32 to vector<4x18xf32>
    %463 = arith.select %5, %461, %462 : vector<4x18xi1>, vector<4x18xf32>
    %c4_43 = arith.constant 4 : index
    %464 = memref.load %arg4[%c4_43] : memref<12xf32, #tpu.memory_space<smem>>
    %465 = vector.broadcast %464 : f32 to vector<4x18xf32>
    %466 = arith.addf %415, %465 : vector<4x18xf32>
    %cst_44 = arith.constant 0.000000e+00 : f32
    %467 = vector.broadcast %cst_44 : f32 to vector<4x18xf32>
    %468 = arith.select %5, %466, %467 : vector<4x18xi1>, vector<4x18xf32>
    %c5_45 = arith.constant 5 : index
    %469 = memref.load %arg4[%c5_45] : memref<12xf32, #tpu.memory_space<smem>>
    %470 = vector.broadcast %469 : f32 to vector<4x18xf32>
    %471 = arith.addf %419, %470 : vector<4x18xf32>
    %cst_46 = arith.constant 0.000000e+00 : f32
    %472 = vector.broadcast %cst_46 : f32 to vector<4x18xf32>
    %473 = arith.select %5, %471, %472 : vector<4x18xi1>, vector<4x18xf32>
    %c6_47 = arith.constant 6 : index
    %474 = memref.load %arg4[%c6_47] : memref<12xf32, #tpu.memory_space<smem>>
    %475 = vector.broadcast %474 : f32 to vector<4x18xf32>
    %476 = arith.addf %423, %475 : vector<4x18xf32>
    %cst_48 = arith.constant 0.000000e+00 : f32
    %477 = vector.broadcast %cst_48 : f32 to vector<4x18xf32>
    %478 = arith.select %5, %476, %477 : vector<4x18xi1>, vector<4x18xf32>
    %c7_49 = arith.constant 7 : index
    %479 = memref.load %arg4[%c7_49] : memref<12xf32, #tpu.memory_space<smem>>
    %480 = vector.broadcast %479 : f32 to vector<4x18xf32>
    %481 = arith.addf %427, %480 : vector<4x18xf32>
    %cst_50 = arith.constant 0.000000e+00 : f32
    %482 = vector.broadcast %cst_50 : f32 to vector<4x18xf32>
    %483 = arith.select %5, %481, %482 : vector<4x18xi1>, vector<4x18xf32>
    %c8_51 = arith.constant 8 : index
    %484 = memref.load %arg4[%c8_51] : memref<12xf32, #tpu.memory_space<smem>>
    %485 = vector.broadcast %484 : f32 to vector<4x18xf32>
    %486 = arith.addf %431, %485 : vector<4x18xf32>
    %cst_52 = arith.constant 0.000000e+00 : f32
    %487 = vector.broadcast %cst_52 : f32 to vector<4x18xf32>
    %488 = arith.select %5, %486, %487 : vector<4x18xi1>, vector<4x18xf32>
    %c9_53 = arith.constant 9 : index
    %489 = memref.load %arg4[%c9_53] : memref<12xf32, #tpu.memory_space<smem>>
    %490 = vector.broadcast %489 : f32 to vector<4x18xf32>
    %491 = arith.addf %435, %490 : vector<4x18xf32>
    %cst_54 = arith.constant 0.000000e+00 : f32
    %492 = vector.broadcast %cst_54 : f32 to vector<4x18xf32>
    %493 = arith.select %5, %491, %492 : vector<4x18xi1>, vector<4x18xf32>
    %c10_55 = arith.constant 10 : index
    %494 = memref.load %arg4[%c10_55] : memref<12xf32, #tpu.memory_space<smem>>
    %495 = vector.broadcast %494 : f32 to vector<4x18xf32>
    %496 = arith.addf %439, %495 : vector<4x18xf32>
    %cst_56 = arith.constant 0.000000e+00 : f32
    %497 = vector.broadcast %cst_56 : f32 to vector<4x18xf32>
    %498 = arith.select %5, %496, %497 : vector<4x18xi1>, vector<4x18xf32>
    %c11_57 = arith.constant 11 : index
    %499 = memref.load %arg4[%c11_57] : memref<12xf32, #tpu.memory_space<smem>>
    %500 = vector.broadcast %499 : f32 to vector<4x18xf32>
    %501 = arith.addf %443, %500 : vector<4x18xf32>
    %cst_58 = arith.constant 0.000000e+00 : f32
    %502 = vector.broadcast %cst_58 : f32 to vector<4x18xf32>
    %503 = arith.select %5, %501, %502 : vector<4x18xi1>, vector<4x18xf32>
    %504 = vector.extract_strided_slice %448 {offsets = [0, 0], sizes = [4, 16], strides = [1, 1]} : vector<4x18xf32> to vector<4x16xf32>
    %c0_59 = arith.constant 0 : index
    %505 = memref.load %arg5[%c0_59] : memref<108xf32, #tpu.memory_space<smem>>
    %506 = vector.broadcast %505 : f32 to vector<4x16xf32>
    %507 = arith.mulf %504, %506 : vector<4x16xf32>
    %c36_60 = arith.constant 36 : index
    %508 = memref.load %arg5[%c36_60] : memref<108xf32, #tpu.memory_space<smem>>
    %509 = vector.broadcast %508 : f32 to vector<4x16xf32>
    %510 = arith.mulf %504, %509 : vector<4x16xf32>
    %c72_61 = arith.constant 72 : index
    %511 = memref.load %arg5[%c72_61] : memref<108xf32, #tpu.memory_space<smem>>
    %512 = vector.broadcast %511 : f32 to vector<4x16xf32>
    %513 = arith.mulf %504, %512 : vector<4x16xf32>
    %514 = vector.extract_strided_slice %448 {offsets = [0, 1], sizes = [4, 16], strides = [1, 1]} : vector<4x18xf32> to vector<4x16xf32>
    %c1_62 = arith.constant 1 : index
    %515 = memref.load %arg5[%c1_62] : memref<108xf32, #tpu.memory_space<smem>>
    %516 = vector.broadcast %515 : f32 to vector<4x16xf32>
    %517 = arith.mulf %514, %516 : vector<4x16xf32>
    %518 = arith.addf %507, %517 : vector<4x16xf32>
    %c37_63 = arith.constant 37 : index
    %519 = memref.load %arg5[%c37_63] : memref<108xf32, #tpu.memory_space<smem>>
    %520 = vector.broadcast %519 : f32 to vector<4x16xf32>
    %521 = arith.mulf %514, %520 : vector<4x16xf32>
    %522 = arith.addf %510, %521 : vector<4x16xf32>
    %c73_64 = arith.constant 73 : index
    %523 = memref.load %arg5[%c73_64] : memref<108xf32, #tpu.memory_space<smem>>
    %524 = vector.broadcast %523 : f32 to vector<4x16xf32>
    %525 = arith.mulf %514, %524 : vector<4x16xf32>
    %526 = arith.addf %513, %525 : vector<4x16xf32>
    %527 = vector.extract_strided_slice %448 {offsets = [0, 2], sizes = [4, 16], strides = [1, 1]} : vector<4x18xf32> to vector<4x16xf32>
    %c2_65 = arith.constant 2 : index
    %528 = memref.load %arg5[%c2_65] : memref<108xf32, #tpu.memory_space<smem>>
    %529 = vector.broadcast %528 : f32 to vector<4x16xf32>
    %530 = arith.mulf %527, %529 : vector<4x16xf32>
    %531 = arith.addf %518, %530 : vector<4x16xf32>
    %c38_66 = arith.constant 38 : index
    %532 = memref.load %arg5[%c38_66] : memref<108xf32, #tpu.memory_space<smem>>
    %533 = vector.broadcast %532 : f32 to vector<4x16xf32>
    %534 = arith.mulf %527, %533 : vector<4x16xf32>
    %535 = arith.addf %522, %534 : vector<4x16xf32>
    %c74_67 = arith.constant 74 : index
    %536 = memref.load %arg5[%c74_67] : memref<108xf32, #tpu.memory_space<smem>>
    %537 = vector.broadcast %536 : f32 to vector<4x16xf32>
    %538 = arith.mulf %527, %537 : vector<4x16xf32>
    %539 = arith.addf %526, %538 : vector<4x16xf32>
    %540 = vector.extract_strided_slice %453 {offsets = [0, 0], sizes = [4, 16], strides = [1, 1]} : vector<4x18xf32> to vector<4x16xf32>
    %c3_68 = arith.constant 3 : index
    %541 = memref.load %arg5[%c3_68] : memref<108xf32, #tpu.memory_space<smem>>
    %542 = vector.broadcast %541 : f32 to vector<4x16xf32>
    %543 = arith.mulf %540, %542 : vector<4x16xf32>
    %544 = arith.addf %531, %543 : vector<4x16xf32>
    %c39_69 = arith.constant 39 : index
    %545 = memref.load %arg5[%c39_69] : memref<108xf32, #tpu.memory_space<smem>>
    %546 = vector.broadcast %545 : f32 to vector<4x16xf32>
    %547 = arith.mulf %540, %546 : vector<4x16xf32>
    %548 = arith.addf %535, %547 : vector<4x16xf32>
    %c75_70 = arith.constant 75 : index
    %549 = memref.load %arg5[%c75_70] : memref<108xf32, #tpu.memory_space<smem>>
    %550 = vector.broadcast %549 : f32 to vector<4x16xf32>
    %551 = arith.mulf %540, %550 : vector<4x16xf32>
    %552 = arith.addf %539, %551 : vector<4x16xf32>
    %553 = vector.extract_strided_slice %453 {offsets = [0, 1], sizes = [4, 16], strides = [1, 1]} : vector<4x18xf32> to vector<4x16xf32>
    %c4_71 = arith.constant 4 : index
    %554 = memref.load %arg5[%c4_71] : memref<108xf32, #tpu.memory_space<smem>>
    %555 = vector.broadcast %554 : f32 to vector<4x16xf32>
    %556 = arith.mulf %553, %555 : vector<4x16xf32>
    %557 = arith.addf %544, %556 : vector<4x16xf32>
    %c40_72 = arith.constant 40 : index
    %558 = memref.load %arg5[%c40_72] : memref<108xf32, #tpu.memory_space<smem>>
    %559 = vector.broadcast %558 : f32 to vector<4x16xf32>
    %560 = arith.mulf %553, %559 : vector<4x16xf32>
    %561 = arith.addf %548, %560 : vector<4x16xf32>
    %c76_73 = arith.constant 76 : index
    %562 = memref.load %arg5[%c76_73] : memref<108xf32, #tpu.memory_space<smem>>
    %563 = vector.broadcast %562 : f32 to vector<4x16xf32>
    %564 = arith.mulf %553, %563 : vector<4x16xf32>
    %565 = arith.addf %552, %564 : vector<4x16xf32>
    %566 = vector.extract_strided_slice %453 {offsets = [0, 2], sizes = [4, 16], strides = [1, 1]} : vector<4x18xf32> to vector<4x16xf32>
    %c5_74 = arith.constant 5 : index
    %567 = memref.load %arg5[%c5_74] : memref<108xf32, #tpu.memory_space<smem>>
    %568 = vector.broadcast %567 : f32 to vector<4x16xf32>
    %569 = arith.mulf %566, %568 : vector<4x16xf32>
    %570 = arith.addf %557, %569 : vector<4x16xf32>
    %c41_75 = arith.constant 41 : index
    %571 = memref.load %arg5[%c41_75] : memref<108xf32, #tpu.memory_space<smem>>
    %572 = vector.broadcast %571 : f32 to vector<4x16xf32>
    %573 = arith.mulf %566, %572 : vector<4x16xf32>
    %574 = arith.addf %561, %573 : vector<4x16xf32>
    %c77_76 = arith.constant 77 : index
    %575 = memref.load %arg5[%c77_76] : memref<108xf32, #tpu.memory_space<smem>>
    %576 = vector.broadcast %575 : f32 to vector<4x16xf32>
    %577 = arith.mulf %566, %576 : vector<4x16xf32>
    %578 = arith.addf %565, %577 : vector<4x16xf32>
    %579 = vector.extract_strided_slice %458 {offsets = [0, 0], sizes = [4, 16], strides = [1, 1]} : vector<4x18xf32> to vector<4x16xf32>
    %c6_77 = arith.constant 6 : index
    %580 = memref.load %arg5[%c6_77] : memref<108xf32, #tpu.memory_space<smem>>
    %581 = vector.broadcast %580 : f32 to vector<4x16xf32>
    %582 = arith.mulf %579, %581 : vector<4x16xf32>
    %583 = arith.addf %570, %582 : vector<4x16xf32>
    %c42_78 = arith.constant 42 : index
    %584 = memref.load %arg5[%c42_78] : memref<108xf32, #tpu.memory_space<smem>>
    %585 = vector.broadcast %584 : f32 to vector<4x16xf32>
    %586 = arith.mulf %579, %585 : vector<4x16xf32>
    %587 = arith.addf %574, %586 : vector<4x16xf32>
    %c78_79 = arith.constant 78 : index
    %588 = memref.load %arg5[%c78_79] : memref<108xf32, #tpu.memory_space<smem>>
    %589 = vector.broadcast %588 : f32 to vector<4x16xf32>
    %590 = arith.mulf %579, %589 : vector<4x16xf32>
    %591 = arith.addf %578, %590 : vector<4x16xf32>
    %592 = vector.extract_strided_slice %458 {offsets = [0, 1], sizes = [4, 16], strides = [1, 1]} : vector<4x18xf32> to vector<4x16xf32>
    %c7_80 = arith.constant 7 : index
    %593 = memref.load %arg5[%c7_80] : memref<108xf32, #tpu.memory_space<smem>>
    %594 = vector.broadcast %593 : f32 to vector<4x16xf32>
    %595 = arith.mulf %592, %594 : vector<4x16xf32>
    %596 = arith.addf %583, %595 : vector<4x16xf32>
    %c43_81 = arith.constant 43 : index
    %597 = memref.load %arg5[%c43_81] : memref<108xf32, #tpu.memory_space<smem>>
    %598 = vector.broadcast %597 : f32 to vector<4x16xf32>
    %599 = arith.mulf %592, %598 : vector<4x16xf32>
    %600 = arith.addf %587, %599 : vector<4x16xf32>
    %c79_82 = arith.constant 79 : index
    %601 = memref.load %arg5[%c79_82] : memref<108xf32, #tpu.memory_space<smem>>
    %602 = vector.broadcast %601 : f32 to vector<4x16xf32>
    %603 = arith.mulf %592, %602 : vector<4x16xf32>
    %604 = arith.addf %591, %603 : vector<4x16xf32>
    %605 = vector.extract_strided_slice %458 {offsets = [0, 2], sizes = [4, 16], strides = [1, 1]} : vector<4x18xf32> to vector<4x16xf32>
    %c8_83 = arith.constant 8 : index
    %606 = memref.load %arg5[%c8_83] : memref<108xf32, #tpu.memory_space<smem>>
    %607 = vector.broadcast %606 : f32 to vector<4x16xf32>
    %608 = arith.mulf %605, %607 : vector<4x16xf32>
    %609 = arith.addf %596, %608 : vector<4x16xf32>
    %c44_84 = arith.constant 44 : index
    %610 = memref.load %arg5[%c44_84] : memref<108xf32, #tpu.memory_space<smem>>
    %611 = vector.broadcast %610 : f32 to vector<4x16xf32>
    %612 = arith.mulf %605, %611 : vector<4x16xf32>
    %613 = arith.addf %600, %612 : vector<4x16xf32>
    %c80_85 = arith.constant 80 : index
    %614 = memref.load %arg5[%c80_85] : memref<108xf32, #tpu.memory_space<smem>>
    %615 = vector.broadcast %614 : f32 to vector<4x16xf32>
    %616 = arith.mulf %605, %615 : vector<4x16xf32>
    %617 = arith.addf %604, %616 : vector<4x16xf32>
    %618 = vector.extract_strided_slice %463 {offsets = [0, 0], sizes = [4, 16], strides = [1, 1]} : vector<4x18xf32> to vector<4x16xf32>
    %c9_86 = arith.constant 9 : index
    %619 = memref.load %arg5[%c9_86] : memref<108xf32, #tpu.memory_space<smem>>
    %620 = vector.broadcast %619 : f32 to vector<4x16xf32>
    %621 = arith.mulf %618, %620 : vector<4x16xf32>
    %622 = arith.addf %609, %621 : vector<4x16xf32>
    %c45_87 = arith.constant 45 : index
    %623 = memref.load %arg5[%c45_87] : memref<108xf32, #tpu.memory_space<smem>>
    %624 = vector.broadcast %623 : f32 to vector<4x16xf32>
    %625 = arith.mulf %618, %624 : vector<4x16xf32>
    %626 = arith.addf %613, %625 : vector<4x16xf32>
    %c81_88 = arith.constant 81 : index
    %627 = memref.load %arg5[%c81_88] : memref<108xf32, #tpu.memory_space<smem>>
    %628 = vector.broadcast %627 : f32 to vector<4x16xf32>
    %629 = arith.mulf %618, %628 : vector<4x16xf32>
    %630 = arith.addf %617, %629 : vector<4x16xf32>
    %631 = vector.extract_strided_slice %463 {offsets = [0, 1], sizes = [4, 16], strides = [1, 1]} : vector<4x18xf32> to vector<4x16xf32>
    %c10_89 = arith.constant 10 : index
    %632 = memref.load %arg5[%c10_89] : memref<108xf32, #tpu.memory_space<smem>>
    %633 = vector.broadcast %632 : f32 to vector<4x16xf32>
    %634 = arith.mulf %631, %633 : vector<4x16xf32>
    %635 = arith.addf %622, %634 : vector<4x16xf32>
    %c46_90 = arith.constant 46 : index
    %636 = memref.load %arg5[%c46_90] : memref<108xf32, #tpu.memory_space<smem>>
    %637 = vector.broadcast %636 : f32 to vector<4x16xf32>
    %638 = arith.mulf %631, %637 : vector<4x16xf32>
    %639 = arith.addf %626, %638 : vector<4x16xf32>
    %c82_91 = arith.constant 82 : index
    %640 = memref.load %arg5[%c82_91] : memref<108xf32, #tpu.memory_space<smem>>
    %641 = vector.broadcast %640 : f32 to vector<4x16xf32>
    %642 = arith.mulf %631, %641 : vector<4x16xf32>
    %643 = arith.addf %630, %642 : vector<4x16xf32>
    %644 = vector.extract_strided_slice %463 {offsets = [0, 2], sizes = [4, 16], strides = [1, 1]} : vector<4x18xf32> to vector<4x16xf32>
    %c11_92 = arith.constant 11 : index
    %645 = memref.load %arg5[%c11_92] : memref<108xf32, #tpu.memory_space<smem>>
    %646 = vector.broadcast %645 : f32 to vector<4x16xf32>
    %647 = arith.mulf %644, %646 : vector<4x16xf32>
    %648 = arith.addf %635, %647 : vector<4x16xf32>
    %c47_93 = arith.constant 47 : index
    %649 = memref.load %arg5[%c47_93] : memref<108xf32, #tpu.memory_space<smem>>
    %650 = vector.broadcast %649 : f32 to vector<4x16xf32>
    %651 = arith.mulf %644, %650 : vector<4x16xf32>
    %652 = arith.addf %639, %651 : vector<4x16xf32>
    %c83_94 = arith.constant 83 : index
    %653 = memref.load %arg5[%c83_94] : memref<108xf32, #tpu.memory_space<smem>>
    %654 = vector.broadcast %653 : f32 to vector<4x16xf32>
    %655 = arith.mulf %644, %654 : vector<4x16xf32>
    %656 = arith.addf %643, %655 : vector<4x16xf32>
    %657 = vector.extract_strided_slice %468 {offsets = [0, 0], sizes = [4, 16], strides = [1, 1]} : vector<4x18xf32> to vector<4x16xf32>
    %c12_95 = arith.constant 12 : index
    %658 = memref.load %arg5[%c12_95] : memref<108xf32, #tpu.memory_space<smem>>
    %659 = vector.broadcast %658 : f32 to vector<4x16xf32>
    %660 = arith.mulf %657, %659 : vector<4x16xf32>
    %661 = arith.addf %648, %660 : vector<4x16xf32>
    %c48_96 = arith.constant 48 : index
    %662 = memref.load %arg5[%c48_96] : memref<108xf32, #tpu.memory_space<smem>>
    %663 = vector.broadcast %662 : f32 to vector<4x16xf32>
    %664 = arith.mulf %657, %663 : vector<4x16xf32>
    %665 = arith.addf %652, %664 : vector<4x16xf32>
    %c84_97 = arith.constant 84 : index
    %666 = memref.load %arg5[%c84_97] : memref<108xf32, #tpu.memory_space<smem>>
    %667 = vector.broadcast %666 : f32 to vector<4x16xf32>
    %668 = arith.mulf %657, %667 : vector<4x16xf32>
    %669 = arith.addf %656, %668 : vector<4x16xf32>
    %670 = vector.extract_strided_slice %468 {offsets = [0, 1], sizes = [4, 16], strides = [1, 1]} : vector<4x18xf32> to vector<4x16xf32>
    %c13_98 = arith.constant 13 : index
    %671 = memref.load %arg5[%c13_98] : memref<108xf32, #tpu.memory_space<smem>>
    %672 = vector.broadcast %671 : f32 to vector<4x16xf32>
    %673 = arith.mulf %670, %672 : vector<4x16xf32>
    %674 = arith.addf %661, %673 : vector<4x16xf32>
    %c49_99 = arith.constant 49 : index
    %675 = memref.load %arg5[%c49_99] : memref<108xf32, #tpu.memory_space<smem>>
    %676 = vector.broadcast %675 : f32 to vector<4x16xf32>
    %677 = arith.mulf %670, %676 : vector<4x16xf32>
    %678 = arith.addf %665, %677 : vector<4x16xf32>
    %c85_100 = arith.constant 85 : index
    %679 = memref.load %arg5[%c85_100] : memref<108xf32, #tpu.memory_space<smem>>
    %680 = vector.broadcast %679 : f32 to vector<4x16xf32>
    %681 = arith.mulf %670, %680 : vector<4x16xf32>
    %682 = arith.addf %669, %681 : vector<4x16xf32>
    %683 = vector.extract_strided_slice %468 {offsets = [0, 2], sizes = [4, 16], strides = [1, 1]} : vector<4x18xf32> to vector<4x16xf32>
    %c14_101 = arith.constant 14 : index
    %684 = memref.load %arg5[%c14_101] : memref<108xf32, #tpu.memory_space<smem>>
    %685 = vector.broadcast %684 : f32 to vector<4x16xf32>
    %686 = arith.mulf %683, %685 : vector<4x16xf32>
    %687 = arith.addf %674, %686 : vector<4x16xf32>
    %c50_102 = arith.constant 50 : index
    %688 = memref.load %arg5[%c50_102] : memref<108xf32, #tpu.memory_space<smem>>
    %689 = vector.broadcast %688 : f32 to vector<4x16xf32>
    %690 = arith.mulf %683, %689 : vector<4x16xf32>
    %691 = arith.addf %678, %690 : vector<4x16xf32>
    %c86_103 = arith.constant 86 : index
    %692 = memref.load %arg5[%c86_103] : memref<108xf32, #tpu.memory_space<smem>>
    %693 = vector.broadcast %692 : f32 to vector<4x16xf32>
    %694 = arith.mulf %683, %693 : vector<4x16xf32>
    %695 = arith.addf %682, %694 : vector<4x16xf32>
    %696 = vector.extract_strided_slice %473 {offsets = [0, 0], sizes = [4, 16], strides = [1, 1]} : vector<4x18xf32> to vector<4x16xf32>
    %c15_104 = arith.constant 15 : index
    %697 = memref.load %arg5[%c15_104] : memref<108xf32, #tpu.memory_space<smem>>
    %698 = vector.broadcast %697 : f32 to vector<4x16xf32>
    %699 = arith.mulf %696, %698 : vector<4x16xf32>
    %700 = arith.addf %687, %699 : vector<4x16xf32>
    %c51_105 = arith.constant 51 : index
    %701 = memref.load %arg5[%c51_105] : memref<108xf32, #tpu.memory_space<smem>>
    %702 = vector.broadcast %701 : f32 to vector<4x16xf32>
    %703 = arith.mulf %696, %702 : vector<4x16xf32>
    %704 = arith.addf %691, %703 : vector<4x16xf32>
    %c87_106 = arith.constant 87 : index
    %705 = memref.load %arg5[%c87_106] : memref<108xf32, #tpu.memory_space<smem>>
    %706 = vector.broadcast %705 : f32 to vector<4x16xf32>
    %707 = arith.mulf %696, %706 : vector<4x16xf32>
    %708 = arith.addf %695, %707 : vector<4x16xf32>
    %709 = vector.extract_strided_slice %473 {offsets = [0, 1], sizes = [4, 16], strides = [1, 1]} : vector<4x18xf32> to vector<4x16xf32>
    %c16_107 = arith.constant 16 : index
    %710 = memref.load %arg5[%c16_107] : memref<108xf32, #tpu.memory_space<smem>>
    %711 = vector.broadcast %710 : f32 to vector<4x16xf32>
    %712 = arith.mulf %709, %711 : vector<4x16xf32>
    %713 = arith.addf %700, %712 : vector<4x16xf32>
    %c52_108 = arith.constant 52 : index
    %714 = memref.load %arg5[%c52_108] : memref<108xf32, #tpu.memory_space<smem>>
    %715 = vector.broadcast %714 : f32 to vector<4x16xf32>
    %716 = arith.mulf %709, %715 : vector<4x16xf32>
    %717 = arith.addf %704, %716 : vector<4x16xf32>
    %c88_109 = arith.constant 88 : index
    %718 = memref.load %arg5[%c88_109] : memref<108xf32, #tpu.memory_space<smem>>
    %719 = vector.broadcast %718 : f32 to vector<4x16xf32>
    %720 = arith.mulf %709, %719 : vector<4x16xf32>
    %721 = arith.addf %708, %720 : vector<4x16xf32>
    %722 = vector.extract_strided_slice %473 {offsets = [0, 2], sizes = [4, 16], strides = [1, 1]} : vector<4x18xf32> to vector<4x16xf32>
    %c17_110 = arith.constant 17 : index
    %723 = memref.load %arg5[%c17_110] : memref<108xf32, #tpu.memory_space<smem>>
    %724 = vector.broadcast %723 : f32 to vector<4x16xf32>
    %725 = arith.mulf %722, %724 : vector<4x16xf32>
    %726 = arith.addf %713, %725 : vector<4x16xf32>
    %c53_111 = arith.constant 53 : index
    %727 = memref.load %arg5[%c53_111] : memref<108xf32, #tpu.memory_space<smem>>
    %728 = vector.broadcast %727 : f32 to vector<4x16xf32>
    %729 = arith.mulf %722, %728 : vector<4x16xf32>
    %730 = arith.addf %717, %729 : vector<4x16xf32>
    %c89_112 = arith.constant 89 : index
    %731 = memref.load %arg5[%c89_112] : memref<108xf32, #tpu.memory_space<smem>>
    %732 = vector.broadcast %731 : f32 to vector<4x16xf32>
    %733 = arith.mulf %722, %732 : vector<4x16xf32>
    %734 = arith.addf %721, %733 : vector<4x16xf32>
    %735 = vector.extract_strided_slice %478 {offsets = [0, 0], sizes = [4, 16], strides = [1, 1]} : vector<4x18xf32> to vector<4x16xf32>
    %c18_113 = arith.constant 18 : index
    %736 = memref.load %arg5[%c18_113] : memref<108xf32, #tpu.memory_space<smem>>
    %737 = vector.broadcast %736 : f32 to vector<4x16xf32>
    %738 = arith.mulf %735, %737 : vector<4x16xf32>
    %739 = arith.addf %726, %738 : vector<4x16xf32>
    %c54_114 = arith.constant 54 : index
    %740 = memref.load %arg5[%c54_114] : memref<108xf32, #tpu.memory_space<smem>>
    %741 = vector.broadcast %740 : f32 to vector<4x16xf32>
    %742 = arith.mulf %735, %741 : vector<4x16xf32>
    %743 = arith.addf %730, %742 : vector<4x16xf32>
    %c90_115 = arith.constant 90 : index
    %744 = memref.load %arg5[%c90_115] : memref<108xf32, #tpu.memory_space<smem>>
    %745 = vector.broadcast %744 : f32 to vector<4x16xf32>
    %746 = arith.mulf %735, %745 : vector<4x16xf32>
    %747 = arith.addf %734, %746 : vector<4x16xf32>
    %748 = vector.extract_strided_slice %478 {offsets = [0, 1], sizes = [4, 16], strides = [1, 1]} : vector<4x18xf32> to vector<4x16xf32>
    %c19_116 = arith.constant 19 : index
    %749 = memref.load %arg5[%c19_116] : memref<108xf32, #tpu.memory_space<smem>>
    %750 = vector.broadcast %749 : f32 to vector<4x16xf32>
    %751 = arith.mulf %748, %750 : vector<4x16xf32>
    %752 = arith.addf %739, %751 : vector<4x16xf32>
    %c55_117 = arith.constant 55 : index
    %753 = memref.load %arg5[%c55_117] : memref<108xf32, #tpu.memory_space<smem>>
    %754 = vector.broadcast %753 : f32 to vector<4x16xf32>
    %755 = arith.mulf %748, %754 : vector<4x16xf32>
    %756 = arith.addf %743, %755 : vector<4x16xf32>
    %c91_118 = arith.constant 91 : index
    %757 = memref.load %arg5[%c91_118] : memref<108xf32, #tpu.memory_space<smem>>
    %758 = vector.broadcast %757 : f32 to vector<4x16xf32>
    %759 = arith.mulf %748, %758 : vector<4x16xf32>
    %760 = arith.addf %747, %759 : vector<4x16xf32>
    %761 = vector.extract_strided_slice %478 {offsets = [0, 2], sizes = [4, 16], strides = [1, 1]} : vector<4x18xf32> to vector<4x16xf32>
    %c20_119 = arith.constant 20 : index
    %762 = memref.load %arg5[%c20_119] : memref<108xf32, #tpu.memory_space<smem>>
    %763 = vector.broadcast %762 : f32 to vector<4x16xf32>
    %764 = arith.mulf %761, %763 : vector<4x16xf32>
    %765 = arith.addf %752, %764 : vector<4x16xf32>
    %c56_120 = arith.constant 56 : index
    %766 = memref.load %arg5[%c56_120] : memref<108xf32, #tpu.memory_space<smem>>
    %767 = vector.broadcast %766 : f32 to vector<4x16xf32>
    %768 = arith.mulf %761, %767 : vector<4x16xf32>
    %769 = arith.addf %756, %768 : vector<4x16xf32>
    %c92_121 = arith.constant 92 : index
    %770 = memref.load %arg5[%c92_121] : memref<108xf32, #tpu.memory_space<smem>>
    %771 = vector.broadcast %770 : f32 to vector<4x16xf32>
    %772 = arith.mulf %761, %771 : vector<4x16xf32>
    %773 = arith.addf %760, %772 : vector<4x16xf32>
    %774 = vector.extract_strided_slice %483 {offsets = [0, 0], sizes = [4, 16], strides = [1, 1]} : vector<4x18xf32> to vector<4x16xf32>
    %c21_122 = arith.constant 21 : index
    %775 = memref.load %arg5[%c21_122] : memref<108xf32, #tpu.memory_space<smem>>
    %776 = vector.broadcast %775 : f32 to vector<4x16xf32>
    %777 = arith.mulf %774, %776 : vector<4x16xf32>
    %778 = arith.addf %765, %777 : vector<4x16xf32>
    %c57_123 = arith.constant 57 : index
    %779 = memref.load %arg5[%c57_123] : memref<108xf32, #tpu.memory_space<smem>>
    %780 = vector.broadcast %779 : f32 to vector<4x16xf32>
    %781 = arith.mulf %774, %780 : vector<4x16xf32>
    %782 = arith.addf %769, %781 : vector<4x16xf32>
    %c93_124 = arith.constant 93 : index
    %783 = memref.load %arg5[%c93_124] : memref<108xf32, #tpu.memory_space<smem>>
    %784 = vector.broadcast %783 : f32 to vector<4x16xf32>
    %785 = arith.mulf %774, %784 : vector<4x16xf32>
    %786 = arith.addf %773, %785 : vector<4x16xf32>
    %787 = vector.extract_strided_slice %483 {offsets = [0, 1], sizes = [4, 16], strides = [1, 1]} : vector<4x18xf32> to vector<4x16xf32>
    %c22_125 = arith.constant 22 : index
    %788 = memref.load %arg5[%c22_125] : memref<108xf32, #tpu.memory_space<smem>>
    %789 = vector.broadcast %788 : f32 to vector<4x16xf32>
    %790 = arith.mulf %787, %789 : vector<4x16xf32>
    %791 = arith.addf %778, %790 : vector<4x16xf32>
    %c58_126 = arith.constant 58 : index
    %792 = memref.load %arg5[%c58_126] : memref<108xf32, #tpu.memory_space<smem>>
    %793 = vector.broadcast %792 : f32 to vector<4x16xf32>
    %794 = arith.mulf %787, %793 : vector<4x16xf32>
    %795 = arith.addf %782, %794 : vector<4x16xf32>
    %c94_127 = arith.constant 94 : index
    %796 = memref.load %arg5[%c94_127] : memref<108xf32, #tpu.memory_space<smem>>
    %797 = vector.broadcast %796 : f32 to vector<4x16xf32>
    %798 = arith.mulf %787, %797 : vector<4x16xf32>
    %799 = arith.addf %786, %798 : vector<4x16xf32>
    %800 = vector.extract_strided_slice %483 {offsets = [0, 2], sizes = [4, 16], strides = [1, 1]} : vector<4x18xf32> to vector<4x16xf32>
    %c23_128 = arith.constant 23 : index
    %801 = memref.load %arg5[%c23_128] : memref<108xf32, #tpu.memory_space<smem>>
    %802 = vector.broadcast %801 : f32 to vector<4x16xf32>
    %803 = arith.mulf %800, %802 : vector<4x16xf32>
    %804 = arith.addf %791, %803 : vector<4x16xf32>
    %c59_129 = arith.constant 59 : index
    %805 = memref.load %arg5[%c59_129] : memref<108xf32, #tpu.memory_space<smem>>
    %806 = vector.broadcast %805 : f32 to vector<4x16xf32>
    %807 = arith.mulf %800, %806 : vector<4x16xf32>
    %808 = arith.addf %795, %807 : vector<4x16xf32>
    %c95_130 = arith.constant 95 : index
    %809 = memref.load %arg5[%c95_130] : memref<108xf32, #tpu.memory_space<smem>>
    %810 = vector.broadcast %809 : f32 to vector<4x16xf32>
    %811 = arith.mulf %800, %810 : vector<4x16xf32>
    %812 = arith.addf %799, %811 : vector<4x16xf32>
    %813 = vector.extract_strided_slice %488 {offsets = [0, 0], sizes = [4, 16], strides = [1, 1]} : vector<4x18xf32> to vector<4x16xf32>
    %c24_131 = arith.constant 24 : index
    %814 = memref.load %arg5[%c24_131] : memref<108xf32, #tpu.memory_space<smem>>
    %815 = vector.broadcast %814 : f32 to vector<4x16xf32>
    %816 = arith.mulf %813, %815 : vector<4x16xf32>
    %817 = arith.addf %804, %816 : vector<4x16xf32>
    %c60_132 = arith.constant 60 : index
    %818 = memref.load %arg5[%c60_132] : memref<108xf32, #tpu.memory_space<smem>>
    %819 = vector.broadcast %818 : f32 to vector<4x16xf32>
    %820 = arith.mulf %813, %819 : vector<4x16xf32>
    %821 = arith.addf %808, %820 : vector<4x16xf32>
    %c96_133 = arith.constant 96 : index
    %822 = memref.load %arg5[%c96_133] : memref<108xf32, #tpu.memory_space<smem>>
    %823 = vector.broadcast %822 : f32 to vector<4x16xf32>
    %824 = arith.mulf %813, %823 : vector<4x16xf32>
    %825 = arith.addf %812, %824 : vector<4x16xf32>
    %826 = vector.extract_strided_slice %488 {offsets = [0, 1], sizes = [4, 16], strides = [1, 1]} : vector<4x18xf32> to vector<4x16xf32>
    %c25_134 = arith.constant 25 : index
    %827 = memref.load %arg5[%c25_134] : memref<108xf32, #tpu.memory_space<smem>>
    %828 = vector.broadcast %827 : f32 to vector<4x16xf32>
    %829 = arith.mulf %826, %828 : vector<4x16xf32>
    %830 = arith.addf %817, %829 : vector<4x16xf32>
    %c61_135 = arith.constant 61 : index
    %831 = memref.load %arg5[%c61_135] : memref<108xf32, #tpu.memory_space<smem>>
    %832 = vector.broadcast %831 : f32 to vector<4x16xf32>
    %833 = arith.mulf %826, %832 : vector<4x16xf32>
    %834 = arith.addf %821, %833 : vector<4x16xf32>
    %c97_136 = arith.constant 97 : index
    %835 = memref.load %arg5[%c97_136] : memref<108xf32, #tpu.memory_space<smem>>
    %836 = vector.broadcast %835 : f32 to vector<4x16xf32>
    %837 = arith.mulf %826, %836 : vector<4x16xf32>
    %838 = arith.addf %825, %837 : vector<4x16xf32>
    %839 = vector.extract_strided_slice %488 {offsets = [0, 2], sizes = [4, 16], strides = [1, 1]} : vector<4x18xf32> to vector<4x16xf32>
    %c26_137 = arith.constant 26 : index
    %840 = memref.load %arg5[%c26_137] : memref<108xf32, #tpu.memory_space<smem>>
    %841 = vector.broadcast %840 : f32 to vector<4x16xf32>
    %842 = arith.mulf %839, %841 : vector<4x16xf32>
    %843 = arith.addf %830, %842 : vector<4x16xf32>
    %c62_138 = arith.constant 62 : index
    %844 = memref.load %arg5[%c62_138] : memref<108xf32, #tpu.memory_space<smem>>
    %845 = vector.broadcast %844 : f32 to vector<4x16xf32>
    %846 = arith.mulf %839, %845 : vector<4x16xf32>
    %847 = arith.addf %834, %846 : vector<4x16xf32>
    %c98_139 = arith.constant 98 : index
    %848 = memref.load %arg5[%c98_139] : memref<108xf32, #tpu.memory_space<smem>>
    %849 = vector.broadcast %848 : f32 to vector<4x16xf32>
    %850 = arith.mulf %839, %849 : vector<4x16xf32>
    %851 = arith.addf %838, %850 : vector<4x16xf32>
    %852 = vector.extract_strided_slice %493 {offsets = [0, 0], sizes = [4, 16], strides = [1, 1]} : vector<4x18xf32> to vector<4x16xf32>
    %c27_140 = arith.constant 27 : index
    %853 = memref.load %arg5[%c27_140] : memref<108xf32, #tpu.memory_space<smem>>
    %854 = vector.broadcast %853 : f32 to vector<4x16xf32>
    %855 = arith.mulf %852, %854 : vector<4x16xf32>
    %856 = arith.addf %843, %855 : vector<4x16xf32>
    %c63_141 = arith.constant 63 : index
    %857 = memref.load %arg5[%c63_141] : memref<108xf32, #tpu.memory_space<smem>>
    %858 = vector.broadcast %857 : f32 to vector<4x16xf32>
    %859 = arith.mulf %852, %858 : vector<4x16xf32>
    %860 = arith.addf %847, %859 : vector<4x16xf32>
    %c99_142 = arith.constant 99 : index
    %861 = memref.load %arg5[%c99_142] : memref<108xf32, #tpu.memory_space<smem>>
    %862 = vector.broadcast %861 : f32 to vector<4x16xf32>
    %863 = arith.mulf %852, %862 : vector<4x16xf32>
    %864 = arith.addf %851, %863 : vector<4x16xf32>
    %865 = vector.extract_strided_slice %493 {offsets = [0, 1], sizes = [4, 16], strides = [1, 1]} : vector<4x18xf32> to vector<4x16xf32>
    %c28_143 = arith.constant 28 : index
    %866 = memref.load %arg5[%c28_143] : memref<108xf32, #tpu.memory_space<smem>>
    %867 = vector.broadcast %866 : f32 to vector<4x16xf32>
    %868 = arith.mulf %865, %867 : vector<4x16xf32>
    %869 = arith.addf %856, %868 : vector<4x16xf32>
    %c64_144 = arith.constant 64 : index
    %870 = memref.load %arg5[%c64_144] : memref<108xf32, #tpu.memory_space<smem>>
    %871 = vector.broadcast %870 : f32 to vector<4x16xf32>
    %872 = arith.mulf %865, %871 : vector<4x16xf32>
    %873 = arith.addf %860, %872 : vector<4x16xf32>
    %c100_145 = arith.constant 100 : index
    %874 = memref.load %arg5[%c100_145] : memref<108xf32, #tpu.memory_space<smem>>
    %875 = vector.broadcast %874 : f32 to vector<4x16xf32>
    %876 = arith.mulf %865, %875 : vector<4x16xf32>
    %877 = arith.addf %864, %876 : vector<4x16xf32>
    %878 = vector.extract_strided_slice %493 {offsets = [0, 2], sizes = [4, 16], strides = [1, 1]} : vector<4x18xf32> to vector<4x16xf32>
    %c29_146 = arith.constant 29 : index
    %879 = memref.load %arg5[%c29_146] : memref<108xf32, #tpu.memory_space<smem>>
    %880 = vector.broadcast %879 : f32 to vector<4x16xf32>
    %881 = arith.mulf %878, %880 : vector<4x16xf32>
    %882 = arith.addf %869, %881 : vector<4x16xf32>
    %c65_147 = arith.constant 65 : index
    %883 = memref.load %arg5[%c65_147] : memref<108xf32, #tpu.memory_space<smem>>
    %884 = vector.broadcast %883 : f32 to vector<4x16xf32>
    %885 = arith.mulf %878, %884 : vector<4x16xf32>
    %886 = arith.addf %873, %885 : vector<4x16xf32>
    %c101_148 = arith.constant 101 : index
    %887 = memref.load %arg5[%c101_148] : memref<108xf32, #tpu.memory_space<smem>>
    %888 = vector.broadcast %887 : f32 to vector<4x16xf32>
    %889 = arith.mulf %878, %888 : vector<4x16xf32>
    %890 = arith.addf %877, %889 : vector<4x16xf32>
    %891 = vector.extract_strided_slice %498 {offsets = [0, 0], sizes = [4, 16], strides = [1, 1]} : vector<4x18xf32> to vector<4x16xf32>
    %c30_149 = arith.constant 30 : index
    %892 = memref.load %arg5[%c30_149] : memref<108xf32, #tpu.memory_space<smem>>
    %893 = vector.broadcast %892 : f32 to vector<4x16xf32>
    %894 = arith.mulf %891, %893 : vector<4x16xf32>
    %895 = arith.addf %882, %894 : vector<4x16xf32>
    %c66_150 = arith.constant 66 : index
    %896 = memref.load %arg5[%c66_150] : memref<108xf32, #tpu.memory_space<smem>>
    %897 = vector.broadcast %896 : f32 to vector<4x16xf32>
    %898 = arith.mulf %891, %897 : vector<4x16xf32>
    %899 = arith.addf %886, %898 : vector<4x16xf32>
    %c102_151 = arith.constant 102 : index
    %900 = memref.load %arg5[%c102_151] : memref<108xf32, #tpu.memory_space<smem>>
    %901 = vector.broadcast %900 : f32 to vector<4x16xf32>
    %902 = arith.mulf %891, %901 : vector<4x16xf32>
    %903 = arith.addf %890, %902 : vector<4x16xf32>
    %904 = vector.extract_strided_slice %498 {offsets = [0, 1], sizes = [4, 16], strides = [1, 1]} : vector<4x18xf32> to vector<4x16xf32>
    %c31_152 = arith.constant 31 : index
    %905 = memref.load %arg5[%c31_152] : memref<108xf32, #tpu.memory_space<smem>>
    %906 = vector.broadcast %905 : f32 to vector<4x16xf32>
    %907 = arith.mulf %904, %906 : vector<4x16xf32>
    %908 = arith.addf %895, %907 : vector<4x16xf32>
    %c67_153 = arith.constant 67 : index
    %909 = memref.load %arg5[%c67_153] : memref<108xf32, #tpu.memory_space<smem>>
    %910 = vector.broadcast %909 : f32 to vector<4x16xf32>
    %911 = arith.mulf %904, %910 : vector<4x16xf32>
    %912 = arith.addf %899, %911 : vector<4x16xf32>
    %c103_154 = arith.constant 103 : index
    %913 = memref.load %arg5[%c103_154] : memref<108xf32, #tpu.memory_space<smem>>
    %914 = vector.broadcast %913 : f32 to vector<4x16xf32>
    %915 = arith.mulf %904, %914 : vector<4x16xf32>
    %916 = arith.addf %903, %915 : vector<4x16xf32>
    %917 = vector.extract_strided_slice %498 {offsets = [0, 2], sizes = [4, 16], strides = [1, 1]} : vector<4x18xf32> to vector<4x16xf32>
    %c32_155 = arith.constant 32 : index
    %918 = memref.load %arg5[%c32_155] : memref<108xf32, #tpu.memory_space<smem>>
    %919 = vector.broadcast %918 : f32 to vector<4x16xf32>
    %920 = arith.mulf %917, %919 : vector<4x16xf32>
    %921 = arith.addf %908, %920 : vector<4x16xf32>
    %c68_156 = arith.constant 68 : index
    %922 = memref.load %arg5[%c68_156] : memref<108xf32, #tpu.memory_space<smem>>
    %923 = vector.broadcast %922 : f32 to vector<4x16xf32>
    %924 = arith.mulf %917, %923 : vector<4x16xf32>
    %925 = arith.addf %912, %924 : vector<4x16xf32>
    %c104_157 = arith.constant 104 : index
    %926 = memref.load %arg5[%c104_157] : memref<108xf32, #tpu.memory_space<smem>>
    %927 = vector.broadcast %926 : f32 to vector<4x16xf32>
    %928 = arith.mulf %917, %927 : vector<4x16xf32>
    %929 = arith.addf %916, %928 : vector<4x16xf32>
    %930 = vector.extract_strided_slice %503 {offsets = [0, 0], sizes = [4, 16], strides = [1, 1]} : vector<4x18xf32> to vector<4x16xf32>
    %c33_158 = arith.constant 33 : index
    %931 = memref.load %arg5[%c33_158] : memref<108xf32, #tpu.memory_space<smem>>
    %932 = vector.broadcast %931 : f32 to vector<4x16xf32>
    %933 = arith.mulf %930, %932 : vector<4x16xf32>
    %934 = arith.addf %921, %933 : vector<4x16xf32>
    %c69_159 = arith.constant 69 : index
    %935 = memref.load %arg5[%c69_159] : memref<108xf32, #tpu.memory_space<smem>>
    %936 = vector.broadcast %935 : f32 to vector<4x16xf32>
    %937 = arith.mulf %930, %936 : vector<4x16xf32>
    %938 = arith.addf %925, %937 : vector<4x16xf32>
    %c105_160 = arith.constant 105 : index
    %939 = memref.load %arg5[%c105_160] : memref<108xf32, #tpu.memory_space<smem>>
    %940 = vector.broadcast %939 : f32 to vector<4x16xf32>
    %941 = arith.mulf %930, %940 : vector<4x16xf32>
    %942 = arith.addf %929, %941 : vector<4x16xf32>
    %943 = vector.extract_strided_slice %503 {offsets = [0, 1], sizes = [4, 16], strides = [1, 1]} : vector<4x18xf32> to vector<4x16xf32>
    %c34_161 = arith.constant 34 : index
    %944 = memref.load %arg5[%c34_161] : memref<108xf32, #tpu.memory_space<smem>>
    %945 = vector.broadcast %944 : f32 to vector<4x16xf32>
    %946 = arith.mulf %943, %945 : vector<4x16xf32>
    %947 = arith.addf %934, %946 : vector<4x16xf32>
    %c70_162 = arith.constant 70 : index
    %948 = memref.load %arg5[%c70_162] : memref<108xf32, #tpu.memory_space<smem>>
    %949 = vector.broadcast %948 : f32 to vector<4x16xf32>
    %950 = arith.mulf %943, %949 : vector<4x16xf32>
    %951 = arith.addf %938, %950 : vector<4x16xf32>
    %c106_163 = arith.constant 106 : index
    %952 = memref.load %arg5[%c106_163] : memref<108xf32, #tpu.memory_space<smem>>
    %953 = vector.broadcast %952 : f32 to vector<4x16xf32>
    %954 = arith.mulf %943, %953 : vector<4x16xf32>
    %955 = arith.addf %942, %954 : vector<4x16xf32>
    %956 = vector.extract_strided_slice %503 {offsets = [0, 2], sizes = [4, 16], strides = [1, 1]} : vector<4x18xf32> to vector<4x16xf32>
    %c35_164 = arith.constant 35 : index
    %957 = memref.load %arg5[%c35_164] : memref<108xf32, #tpu.memory_space<smem>>
    %958 = vector.broadcast %957 : f32 to vector<4x16xf32>
    %959 = arith.mulf %956, %958 : vector<4x16xf32>
    %960 = arith.addf %947, %959 : vector<4x16xf32>
    %c71_165 = arith.constant 71 : index
    %961 = memref.load %arg5[%c71_165] : memref<108xf32, #tpu.memory_space<smem>>
    %962 = vector.broadcast %961 : f32 to vector<4x16xf32>
    %963 = arith.mulf %956, %962 : vector<4x16xf32>
    %964 = arith.addf %951, %963 : vector<4x16xf32>
    %c107_166 = arith.constant 107 : index
    %965 = memref.load %arg5[%c107_166] : memref<108xf32, #tpu.memory_space<smem>>
    %966 = vector.broadcast %965 : f32 to vector<4x16xf32>
    %967 = arith.mulf %956, %966 : vector<4x16xf32>
    %968 = arith.addf %955, %967 : vector<4x16xf32>
    %c0_167 = arith.constant 0 : index
    %969 = memref.load %arg6[%c0_167] : memref<3xf32, #tpu.memory_space<smem>>
    %970 = vector.broadcast %969 : f32 to vector<4x16xf32>
    %971 = arith.addf %960, %970 : vector<4x16xf32>
    %c0_168 = arith.constant 0 : index
    %c0_169 = arith.constant 0 : index
    %c0_170 = arith.constant 0 : index
    %c0_171 = arith.constant 0 : index
    %972 = vector.load %arg7[%c0_168, %c0_169, %c0_170, %c0_171] : memref<1x3x4x16xf32, #tpu.memory_space<vmem>>, vector<1x1x4x16xf32>
    %973 = vector.shape_cast %972 : vector<1x1x4x16xf32> to vector<4x16xf32>
    %974 = vector.shape_cast %971 : vector<4x16xf32> to vector<1x1x4x16xf32>
    tpu.vector_store %arg7[%c0_168, %c0_169, %c0_170, %c0_171], %974 {strides = array<i32>} : memref<1x3x4x16xf32, #tpu.memory_space<vmem>>, vector<1x1x4x16xf32>,
    %c1_172 = arith.constant 1 : index
    %975 = memref.load %arg6[%c1_172] : memref<3xf32, #tpu.memory_space<smem>>
    %976 = vector.broadcast %975 : f32 to vector<4x16xf32>
    %977 = arith.addf %964, %976 : vector<4x16xf32>
    %c0_173 = arith.constant 0 : index
    %c1_174 = arith.constant 1 : index
    %c0_175 = arith.constant 0 : index
    %c0_176 = arith.constant 0 : index
    %978 = vector.load %arg7[%c0_173, %c1_174, %c0_175, %c0_176] : memref<1x3x4x16xf32, #tpu.memory_space<vmem>>, vector<1x1x4x16xf32>
    %979 = vector.shape_cast %978 : vector<1x1x4x16xf32> to vector<4x16xf32>
    %980 = vector.shape_cast %977 : vector<4x16xf32> to vector<1x1x4x16xf32>
    tpu.vector_store %arg7[%c0_173, %c1_174, %c0_175, %c0_176], %980 {strides = array<i32>} : memref<1x3x4x16xf32, #tpu.memory_space<vmem>>, vector<1x1x4x16xf32>,
    %c2_177 = arith.constant 2 : index
    %981 = memref.load %arg6[%c2_177] : memref<3xf32, #tpu.memory_space<smem>>
    %982 = vector.broadcast %981 : f32 to vector<4x16xf32>
    %983 = arith.addf %968, %982 : vector<4x16xf32>
    %c0_178 = arith.constant 0 : index
    %c2_179 = arith.constant 2 : index
    %c0_180 = arith.constant 0 : index
    %c0_181 = arith.constant 0 : index
    %984 = vector.load %arg7[%c0_178, %c2_179, %c0_180, %c0_181] : memref<1x3x4x16xf32, #tpu.memory_space<vmem>>, vector<1x1x4x16xf32>
    %985 = vector.shape_cast %984 : vector<1x1x4x16xf32> to vector<4x16xf32>
    %986 = vector.shape_cast %983 : vector<4x16xf32> to vector<1x1x4x16xf32>
    tpu.vector_store %arg7[%c0_178, %c2_179, %c0_180, %c0_181], %986 {strides = array<i32>} : memref<1x3x4x16xf32, #tpu.memory_space<vmem>>, vector<1x1x4x16xf32>,
    return
  }
  func.func @transform_0(%arg0: i32, %arg1: i32) -> (i32, i32, i32, i32) {
    %c0_i32 = arith.constant 0 : i32
    %c0_i32_0 = arith.constant 0 : i32
    %c0_i32_1 = arith.constant 0 : i32
    return %arg0, %c0_i32, %arg1, %c0_i32_0 : i32, i32, i32, i32
  }
  func.func @transform_1(%arg0: i32, %arg1: i32) -> i32 {
    %c0_i32 = arith.constant 0 : i32
    %c0_i32_0 = arith.constant 0 : i32
    return %c0_i32 : i32
  }
  func.func @transform_2(%arg0: i32, %arg1: i32) -> i32 {
    %c0_i32 = arith.constant 0 : i32
    %c0_i32_0 = arith.constant 0 : i32
    return %c0_i32 : i32
  }
  func.func @transform_3(%arg0: i32, %arg1: i32) -> i32 {
    %c0_i32 = arith.constant 0 : i32
    %c0_i32_0 = arith.constant 0 : i32
    return %c0_i32 : i32
  }
  func.func @transform_4(%arg0: i32, %arg1: i32) -> i32 {
    %c0_i32 = arith.constant 0 : i32
    %c0_i32_0 = arith.constant 0 : i32
    return %c0_i32 : i32
  }
  func.func @transform_5(%arg0: i32, %arg1: i32) -> (i32, i32, i32, i32) {
    %c0_i32 = arith.constant 0 : i32
    %c0_i32_0 = arith.constant 0 : i32
    %c0_i32_1 = arith.constant 0 : i32
    return %arg0, %c0_i32, %arg1, %c0_i32_0 : i32, i32, i32, i32
  }
}

</mosaic_0001>

<bundles_post_ra>
// kernel: tpu_custom_call.1
= control target key start
LH: loop header
LB: loop body
LE: loop exit
PB: predicated region body
PF: predicated region fallthrough
CT: control target
= control target key end

     0   :  { %s3660_s0 = inlined_call_operand.hbm [shape: f32[2,3,4,20], index: 0, kind: input, shape index: {}]   ;;  %s3661_s1 = inlined_call_operand.vmem [shape: f32[108], index: 1, kind: input, shape index: {}]   ;;  %s3662_s2 = inlined_call_operand.vmem [shape: f32[12], index: 2, kind: input, shape index: {}]   ;;  %s3663_s3 = inlined_call_operand.vmem [shape: f32[108], index: 3, kind: input, shape index: {}]   ;;  %s3664_s4 = inlined_call_operand.vmem [shape: f32[3], index: 4, kind: input, shape index: {}]   ;;  %s3665_s5 = inlined_call_operand.hbm [shape: f32[2,3,4,16], index: 5, kind: output, shape index: {}]  }
   0x1   :  { %3675 = sst [smem:[#allocation18_spill]] %s3660_s0 }
   0x2   :  { %3676 = sst [smem:[#allocation19_spill]] %s3661_s1 }
   0x3   :  { %3677 = sst [smem:[#allocation20_spill]] %s3662_s2 }
   0x4   :  { %10 = vsyncpa [#allocation3], 0 }
   0x5   :  { %12 = vsyncpa [#allocation3 + $0x1], 0 }
   0x6   :  { %13 = vsyncpa [#allocation5], 0 }
   0x7   :  { %14 = vsyncpa [#allocation8], 0 }
   0x8   :  { %15 = vsyncpa [#allocation11], 0 }
   0x9   :  { %16 = vsyncpa [#allocation4], 0 }
   0xa   :  { %18 = vsyncpa [#allocation4 + $0x1], 0  ;;  %s2540_s18 = smov 0   ;;  %s2542_s19 = smov 0  }
   0xb   :  { %s2544_s20 = smov 0   ;;  %s2546_s21 = smov 0  }
   0xc   :  { %s2548_s22 = smov 0   ;;  %s2550_s23 = smov 0  }
   0xd LB: > { %s1951_s24 = sadd.s32 4294967295, %s2496_s23   ;;  %s1952_s25 = sadd.s32 4294967294, %s2496_s23   ;;  %s2496_s23 = sphi %s2550_s23, %s24_s23   ;;  %s2492_s22 = sphi %s2548_s22, %s3704_s22   ;;  %s2488_s21 = sphi %s2546_s21, %s3703_s21   ;;  %s2484_s20 = sphi %s2544_s20, %s3702_s20   ;;  %s2480_s19 = sphi %s2542_s19, %s3701_s19   ;;  %s2476_s18 = sphi %s2540_s18, %s3700_s18  }
   0xe   : > { %p58_p0 = scmp.ne.s32.totalorder %s2480_s19, %s2476_s18  ;;  %p2574_p1 = scmp.eq.s32.totalorder %s1951_s24, 0 }
   0xf   : > { %p2578_p2 = scmp.eq.s32.totalorder %s1951_s24, 1  ;;  %p174_p3 = scmp.eq.s32.totalorder %s1952_s25, 1 }
  0x10   : > { %s3678_s26 = scalar_select %p2574_p1, 1, 0 }
  0x11   : > { %s3679_s27 = scalar_select %p2578_p2, 1, 0 }
  0x12   : > { %p2584_p4 = por %p2574_p1, %p58_p0  ;;  %p1953_p5 = scmp.ge.s32.totalorder %s2496_s23, 1 }
  0x13   : > { %p2589_p6 = por %p174_p3, %p58_p0  ;;  %p181_p7 = scmp.lt.s32.totalorder %s2496_s23, 3 }
  0x14   : > { %s3680_s28 = scalar_select %p2584_p4, 1, 0 }
  0x15   : > { %s3681_s29 = scalar_select %p2589_p6, 1, 0 }
  0x16   : > { %s3682_s2 = sld [smem:[#allocation20_spill]]  ;;  %p2597_p8 = pnand %p1953_p5, %p181_p7 }
  0x17   : > { %s3684_s1 = sld [smem:[#allocation19_spill]]  ;;  %s216_s15 = sshll.u32 %s3663_s3, 4  ;;  %s2616_s15 = int_to_ptr.vmem [resolvable:$true] %s216_s15 }
  0x18   : > { %s3683_s8 = scalar_select %p2597_p8, 1, 0 }
  0x19   : > { %p2223_p10 = pneg %p2597_p8 }
  0x1b   : > { %p2609_p11 = pnand %p2223_p10, %p2574_p1 }
  0x1c   : > { %s205_s7 = sshll.u32 %s3682_s2, 4  ;;  %s206_s7 = int_to_ptr.vmem [resolvable:$true] %s205_s7 }
  0x1d   : > { %s194_s11 = sshll.u32 %s3684_s1, 4  ;;  %s2312_s16 = scalar_lea.vmem %s206_s7, 16  ;;  %s195_s11 = int_to_ptr.vmem [resolvable:$true] %s194_s11 }
  0x1e   : > { %p2313_p12 = scmp.ne.s32.totalorder %s206_s7, %s2312_s16  ;;  %p2314_p13 = pneg %p2609_p11 }
  0x1f   : > { %p2320_p5 = scmp.lt.s32.totalorder %s206_s7, %s206_s7  ;;  %p2321_p7 = scmp.lt.s32.totalorder %s2312_s16, %s2312_s16 }
  0x20   : > { %p2315_p0 = pnand %p2314_p13, %p2313_p12 }
  0x21   : > { %p2322_p10 = por %p2321_p7, %p2320_p5 }
  0x22   : > { %p2316_p3 = pneg %p2315_p0 }
  0x24   : > { %p2323_p9 = pnand %p2322_p10, %p2316_p3 }
  0x26   : > { %2326 = shalt.err (!%p2323_p9)
}
  0x27   : > { %s2498_s17 = smov [#allocation7]   ;;  %s2327_s24 = scalar_lea.vmem %s195_s11, 16 }
  0x28   : > { %2229 = dma.vmem_to_smem (!%p2609_p11), %s206_s7, 16, %s2498_s17, [#allocation8]  }
  0x29   : > { %p2328_p6 = scmp.ne.s32.totalorder %s195_s11, %s2327_s24  ;;  %p2335_p8 = scmp.lt.s32.totalorder %s195_s11, %s195_s11 }
  0x2a   : > { %p2336_p2 = scmp.lt.s32.totalorder %s2327_s24, %s2327_s24 }
  0x2b   : > { %p2330_p1 = pnand %p2328_p6, %p2314_p13 }
  0x2c   : > { %p2337_p12 = por %p2336_p2, %p2335_p8 }
  0x2d   : > { %p2331_p4 = pneg %p2330_p1 }
  0x2f   : > { %p2338_p0 = pnand %p2337_p12, %p2331_p4 }
  0x31   : > { %2341 = shalt.err (!%p2338_p0)
}
  0x32   : > { %s2499_s25 = smov [#allocation6]   ;;  %s227_s7 = sshll.u32 %s3664_s4, 4  ;;  %s228_s7 = int_to_ptr.vmem [resolvable:$true] %s227_s7 }
  0x33   : > { %2226 = dma.vmem_to_smem (!%p2609_p11), %s195_s11, 16, %s2499_s25, [#allocation5]  }
  0x34   : > { %s2342_s9 = scalar_lea.vmem %s2616_s15, 16  ;;  %p2350_p4 = scmp.lt.s32.totalorder %s2616_s15, %s2616_s15 }
  0x35   : > { %p2343_p6 = scmp.ne.s32.totalorder %s2616_s15, %s2342_s9  ;;  %p2351_p8 = scmp.lt.s32.totalorder %s2342_s9, %s2342_s9 }
  0x37   : > { %p2345_p1 = pnand %p2343_p6, %p2314_p13  ;;  %p2352_p9 = por %p2351_p8, %p2350_p4 }
  0x39   : > { %p2346_p2 = pneg %p2345_p1 }
  0x3b   : > { %p2353_p3 = pnand %p2352_p9, %p2346_p2 }
  0x3d   : > { %2356 = shalt.err (!%p2353_p3)
}
  0x3e   : > { %s2500_s10 = smov [#allocation9]   ;;  %s2357_s11 = scalar_lea.vmem %s228_s7, 16 }
  0x3f   : > { %2232 = dma.vmem_to_smem (!%p2609_p11), %s2616_s15, 16, %s2500_s10, [#allocation8]  }
  0x40   : > { %p2358_p5 = scmp.ne.s32.totalorder %s228_s7, %s2357_s11  ;;  %p2365_p12 = scmp.lt.s32.totalorder %s228_s7, %s228_s7 }
  0x41   : > { %p2366_p0 = scmp.lt.s32.totalorder %s2357_s11, %s2357_s11 }
  0x42   : > { %p2360_p7 = pnand %p2358_p5, %p2314_p13 }
  0x43   : > { %p2367_p6 = por %p2366_p0, %p2365_p12 }
  0x44   : > { %p2361_p10 = pneg %p2360_p7 }
  0x46   : > { %p2368_p1 = pnand %p2367_p6, %p2361_p10 }
  0x48   : > { %2371 = shalt.err (!%p2368_p1)
}
  0x49   : > { %s2501_s13 = smov [#allocation10]   ;;  %s36_s14 = sadd.s32 1, %s2492_s22 }
  0x4a   : > { %2235 = dma.vmem_to_smem (!%p2609_p11), %s228_s7, 16, %s2501_s13, [#allocation11]  }
  0x4b   : > { %s45_s15 = sadd.s32 1, %s2484_s20  ;;  %p38_p13 = scmp.ge.s32.totalorder %s36_s14, 2 }
  0x4c   : > { %p52_p2 = scmp.ne.s32.totalorder %s2484_s20, %s2480_s19  ;;  %p53_p4 = scmp.eq.s32.totalorder %s2496_s23, 0 }
  0x4d   : > { %p2248_p8 = scmp.lt.s32.totalorder %s2496_s23, 2  ;;  %s3706_s14 = smov (%p38_p13, %s36_s14), 0 }
  0x4e   : > { %p54_p9 = por %p53_p4, %p52_p2  ;;  %p3686_p3 = scmp.ne.s32.totalorder %s3679_s27, 0 }
  0x4f   : > { %s40_s16 = ssub.s32 %s2492_s22, %s3706_s14  ;;  %s238_s17 = sand.u32 1, %s2484_s20  }
  0x50   : > { %p2658_p5 = por %p3686_p3, %p52_p2  ;;  %p43_p7 = scmp.eq.s32.totalorder %s40_s16, 0 }
  0x51   : > { %s2199_s24 = smul.u32 12, %s238_s17  ;;  %p2665_p11 = pnand %p2248_p8, %p54_p9 }
  0x52   : > { %s2670_s30 = scalar_select %p43_p7, %s2484_s20, %s45_s15  }
  0x53   : > { %s2200_s6 = smul.u32 192, %s2492_s22  ;;  %s242_s7 = scalar_lea.vmem [#allocation2], %s2199_s24 }
  0x54   : > { %s250_s9 = sshll.u32 %s242_s7, 4  ;;  %s3689_s0 = sld [smem:[#allocation18_spill]]  ;;  %s2678_s9 = int_to_ptr.vmem [resolvable:$true] %s250_s9 }
  0x55   : > { %s2680_s13 = scalar_lea.sflag [#allocation3], %s238_s17  ;;  %p2374_p12 = pneg %p2665_p11 }
  0x5a   : > { %s2676_s11 = scalar_lea.hbm %s3689_s0, %s2200_s6  ;;  %s2377_s6 = scalar_lea.hbm %s3689_s0, 384 }
  0x5b   : > { %s2372_s16 = scalar_lea.hbm %s2676_s11, 192  ;;  %p2378_p1 = scmp.lt.u32.totalorder %s2676_s11, %s3689_s0 }
  0x5c   : > { %p2373_p10 = scmp.ne.s32.totalorder %s2676_s11, %s2372_s16  ;;  %p2379_p13 = scmp.lt.u32.totalorder %s2377_s6, %s2372_s16 }
  0x5d   : > { %p2381_p4 = scmp.lt.u32.totalorder %s2372_s16, %s2676_s11 }
  0x5e   : > { %p2375_p0 = pnand %p2374_p12, %p2373_p10  ;;  %p2380_p2 = por %p2379_p13, %p2378_p1 }
  0x60   : > { %p2376_p6 = pneg %p2375_p0  ;;  %p2382_p8 = por %p2381_p4, %p2380_p2 }
  0x62   : > { %p2383_p9 = pnand %p2382_p8, %p2376_p6 }
  0x64   : > { %2386 = shalt.err (!%p2383_p9)
}
  0x65   : > { %s2387_s17 = scalar_lea.vmem %s2678_s9, 192  ;;  %s2502_s10 = smov [#allocation2]  }
  0x66   : > { %p2388_p3 = scmp.ne.s32.totalorder %s2678_s9, %s2387_s17  ;;  %s2392_s15 = sshll.u32 %s2502_s10, 4  ;;  %s2393_s15 = int_to_ptr.vmem [resolvable:$false] %s2392_s15 }
  0x67   : > { %s2394_s24 = scalar_lea.vmem %s2393_s15, 384  ;;  %p2395_p0 = scmp.lt.s32.totalorder %s2678_s9, %s2393_s15 }
  0x68   : > { %p2390_p7 = pnand %p2388_p3, %p2374_p12  ;;  %p2396_p1 = scmp.lt.s32.totalorder %s2394_s24, %s2387_s17 }
  0x6a   : > { %p2391_p10 = pneg %p2390_p7  ;;  %p2397_p13 = por %p2396_p1, %p2395_p0 }
  0x6c   : > { %p2398_p2 = pnand %p2397_p13, %p2391_p10 }
  0x6e   : > { %2401 = shalt.err (!%p2398_p2)
}
  0x6f   : > { %s2503_s16 = smov 64   ;;  %s2504_s6 = smov 4  }
  0x70   : > { %2239 = dma.hbm_to_vmem [thread:$0]  (!%p2665_p11), %s2676_s11, 192, %s2678_s9, %s2680_s13, %s2503_s16, %s2503_s16, %s2504_s6  }
  0x71   : > { %p3690_p12 = scmp.ne.s32.totalorder %s3683_s8, 0 }
  0x72   : > { %s2711_s7 = sand.u32 (!%p3690_p12), 1, %s2480_s19   ;;  %p3691_p6 = scmp.ne.s32.totalorder (!%p3690_p12), %s3680_s28, 0 }
  0x73   : > { %262 = sbr.rel (%p3690_p12) target bundleno = 629 (0x275), region = 40  ;;  %s265_s17 = scalar_lea.sflag (!%p3690_p12), [#allocation3], %s2711_s7 }
  0x74   : > { %s3670_s27 = smul.u32 (!%p3690_p12), 12, %s2711_s7 }
  0x76   : > { %s2717_s10 = scalar_lea.vmem (!%p3690_p12), [#allocation2], %s3670_s27 }
  0x7a   : > { %2455 = dma.done.wait (%p3691_p6), %s265_s17, 192  }
  0x7b   : > { %2457 = vsyncadd (%p3691_p6), %s265_s17, 4294967104  ;;  %p3692_p11 = scmp.ne.s32.totalorder %s3678_s26, 0 }
  0x7d   : > { %2459 = dma.done.wait (%p3692_p11), [#allocation5], 16  }
  0x7e   : > { %2461 = vsyncadd (%p3692_p11), [#allocation5], 4294967280 }
  0x7f   : > { %2463 = dma.done.wait (%p3692_p11), [#allocation8], 32  }
  0x80   : > { %2465 = vsyncadd (%p3692_p11), [#allocation8], 4294967264 }
  0x81   : > { %2467 = dma.done.wait (%p3692_p11), [#allocation11], 16  }
  0x82   : > { %2469 = vsyncadd (%p3692_p11), [#allocation11], 4294967280 }
  0x83   : > { %289 = sfence }
  0x84   : > { %s1978_s28 = sld [smem:[#allocation6 + $0x13]]  ;;  %s1976_s8 = sld [smem:[#allocation6 + $0x1]]  ;;  %v2736_v0 = vld [vmem:[%s2717_s10] sm:$0xf]  ;;  %v2785_v49 = vld [vmem:[%s2717_s10 + $0x4] sm:$0xf] }
  0x85   : > { %s1979_s25 = sld [smem:[#allocation6 + $0x1c]]  ;;  %s1977_s9 = sld [smem:[#allocation6 + $0xa]]  ;;  %vm1798_vm3 = vcmask 125952  }
  0x86   : > { %s1981_s11 = sld [smem:[#allocation6 + $0x2e]]  ;;  %s1980_s13 = sld [smem:[#allocation6 + $0x25]] }
  0x87   : > { %s1983_s15 = sld [smem:[#allocation6 + $0x40]]  ;;  %s1982_s24 = sld [smem:[#allocation6 + $0x37]] }
  0x88   : > { %s3673_s26 = smov 127   ;;  %s1985_s16 = sld [smem:[#allocation6 + $0x52]] }
  0x89   : > { %s1984_s6 = sld [smem:[#allocation6 + $0x49]]  ;;  %s1987_s17 = sld [smem:[#allocation6 + $0x64]] }
  0x8a   : > { %v371_v1 = vstv %s1978_s28  ;;  %v355_v3 = vstv %s1976_s8  ;;  %s1986_s28 = sld [smem:[#allocation6 + $0x5b]]  ;;  %s2929_s0 = sld [smem:[#allocation6 + $0x1e]] }
  0x8b   : > { %v372_v2 = vmul.f32 %v371_v1, %v2736_v0  ;;  %v379_v4 = vstv %s1979_s25  ;;  %v356_v5 = vmul.f32 %v355_v3, %v2736_v0  ;;  %v363_v6 = vstv %s1977_s9  ;;  %s1989_s8 = sld [smem:[#allocation6 + $0xb]]  ;;  %s1988_s25 = sld [smem:[#allocation6 + $0x2]] }
  0x8c   : > { %v380_v7 = vmul.f32 %v379_v4, %v2736_v0  ;;  %v364_v8 = vmul.f32 %v363_v6, %v2736_v0  ;;  %v395_v9 = vstv %s1981_s11  ;;  %v387_v10 = vstv %s1980_s13  ;;  %s1991_s9 = sld [smem:[#allocation6 + $0x1d]]  ;;  %s1990_s11 = sld [smem:[#allocation6 + $0x14]] }
  0x8d   : > { %374 = vrot.lane.b32.xlu1 %v372_v2, %s3673_s26  ;;  %358 = vrot.lane.b32.xlu0 %v356_v5, %s3673_s26  ;;  %v396_v11 = vmul.f32 %v395_v9, %v2736_v0  ;;  %v388_v12 = vmul.f32 %v387_v10, %v2736_v0  ;;  %v411_v13 = vstv %s1983_s15  ;;  %v403_v14 = vstv %s1982_s24  ;;  %s1993_s13 = sld [smem:[#allocation6 + $0x2f]]  ;;  %s1992_s15 = sld [smem:[#allocation6 + $0x26]] }
  0x8e   : > { %v412_v15 = vmul.f32 %v411_v13, %v2736_v0  ;;  %v404_v16 = vmul.f32 %v403_v14, %v2736_v0  ;;  %v427_v17 = vstv %s1985_s16  ;;  %s1995_s24 = sld [smem:[#allocation6 + $0x41]]  ;;  %s1994_s16 = sld [smem:[#allocation6 + $0x38]] }
  0x8f   : > { %v419_v18 = vstv %s1984_s6  ;;  %v428_v19 = vmul.f32 %v427_v17, %v2736_v0  ;;  %v443_v21 = vstv %s1987_s17  ;;  %s3671_s6 = smov 126   ;;  %s1997_s17 = sld [smem:[#allocation6 + $0x53]] }
  0x90   : > { %v420_v20 = vmul.f32 %v419_v18, %v2736_v0  ;;  %v435_v22 = vstv %s1986_s28  ;;  %v444_v23 = vmul.f32 %v443_v21, %v2736_v0  ;;  %s1996_s28 = sld [smem:[#allocation6 + $0x4a]]  ;;  %s2914_s27 = sld [smem:[#allocation6 + $0x3]] }
  0x91   : > { %382 = vrot.lane.b32.xlu1 %v380_v7, %s3673_s26  ;;  %366 = vrot.lane.b32.xlu0 %v364_v8, %s3673_s26  ;;  %v436_v24 = vmul.f32 %v435_v22, %v2736_v0  ;;  %v459_v25 = vstv %s1989_s8  ;;  %v451_v26 = vstv %s1988_s25  ;;  %s1999_s8 = sld [smem:[#allocation6 + $0x65]]  ;;  %s1998_s25 = sld [smem:[#allocation6 + $0x5c]] }
  0x92   : > { %v460_v27 = vmul.f32 %v459_v25, %v2736_v0  ;;  %v452_v28 = vmul.f32 %v451_v26, %v2736_v0  ;;  %v475_v29 = vstv %s1991_s9  ;;  %v467_v30 = vstv %s1990_s11  ;;  %s2014_s9 = sld [smem:[#allocation6 + $0xd]]  ;;  %s2013_s11 = sld [smem:[#allocation6 + $0x4]] }
  0x93   : > { %v476_v31 = vmul.f32 %v475_v29, %v2736_v0  ;;  %v468_v32 = vmul.f32 %v467_v30, %v2736_v0  ;;  %v491_v33 = vstv %s1993_s13  ;;  %v483_v34 = vstv %s1992_s15  ;;  %s2016_s13 = sld [smem:[#allocation6 + $0x1f]]  ;;  %s2015_s15 = sld [smem:[#allocation6 + $0x16]] }
  0x94   : > { %v492_v35 = vmul.f32 %v491_v33, %v2736_v0  ;;  %v484_v36 = vmul.f32 %v483_v34, %v2736_v0  ;;  %v507_v37 = vstv %s1995_s24  ;;  %v499_v38 = vstv %s1994_s16  ;;  %s2018_s24 = sld [smem:[#allocation6 + $0x31]]  ;;  %s2017_s16 = sld [smem:[#allocation6 + $0x28]] }
  0x95   : > { %398 = vrot.lane.b32.xlu1 %v396_v11, %s3673_s26  ;;  %390 = vrot.lane.b32.xlu0 %v388_v12, %s3673_s26  ;;  %v508_v39 = vmul.f32 %v507_v37, %v2736_v0  ;;  %v500_v40 = vmul.f32 %v499_v38, %v2736_v0  ;;  %v523_v41 = vstv %s1997_s17  ;;  %s2020_s17 = sld [smem:[#allocation6 + $0x43]]  ;;  %s2936_s1 = sld [smem:[#allocation6 + $0x3f]] }
  0x96   : > { %v515_v42 = vstv %s1996_s28  ;;  %v524_v43 = vmul.f32 %v523_v41, %v2736_v0  ;;  %s2019_s28 = sld [smem:[#allocation6 + $0x3a]]  ;;  %s3235_s2 = sld [smem:[#allocation9 + $0x2c]] }
  0x97   : > { %v516_v44 = vmul.f32 %v515_v42, %v2736_v0  ;;  %v539_v45 = vstv %s1999_s8  ;;  %v531_v46 = vstv %s1998_s25  ;;  %s2022_s8 = sld [smem:[#allocation6 + $0x55]]  ;;  %s2021_s25 = sld [smem:[#allocation6 + $0x4c]] }
  0x98   : > { %v540_v47 = vmul.f32 %v539_v45, %v2736_v0  ;;  %v532_v48 = vmul.f32 %v531_v46, %v2736_v0  ;;  %v605_v50 = vstv %s2014_s9  ;;  %v597_v51 = vstv %s2013_s11  ;;  %s2024_s9 = sld [smem:[#allocation6 + $0x67]]  ;;  %s2023_s11 = sld [smem:[#allocation6 + $0x5e]] }
  0x99   : > { %414 = vrot.lane.b32.xlu1 %v412_v15, %s3673_s26  ;;  %406 = vrot.lane.b32.xlu0 %v404_v16, %s3673_s26  ;;  %v606_v52 = vmul.f32 %v2785_v49, %v605_v50  ;;  %v598_v53 = vmul.f32 %v2785_v49, %v597_v51  ;;  %v621_v54 = vstv %s2016_s13  ;;  %v613_v55 = vstv %s2015_s15  ;;  %s2026_s13 = sld [smem:[#allocation6 + $0xe]]  ;;  %s2025_s15 = sld [smem:[#allocation6 + $0x5]] }
  0x9a   : > { %v622_v56 = vmul.f32 %v2785_v49, %v621_v54  ;;  %v614_v57 = vmul.f32 %v2785_v49, %v613_v55  ;;  %v637_v58 = vstv %s2018_s24  ;;  %v629_v59 = vstv %s2017_s16  ;;  %s2028_s24 = sld [smem:[#allocation6 + $0x20]]  ;;  %s2027_s16 = sld [smem:[#allocation6 + $0x17]] }
  0x9b   : > { %v638_v60 = vmul.f32 %v2785_v49, %v637_v58  ;;  %v630_v61 = vmul.f32 %v2785_v49, %v629_v59  ;;  %v653_v62 = vstv %s2020_s17  ;;  %s2030_s17 = sld [smem:[#allocation6 + $0x32]] }
  0x9c   : > { %v645_v63 = vstv %s2019_s28  ;;  %v654_v1 = vmul.f32 %v2785_v49, %v653_v62  ;;  %s2029_s28 = sld [smem:[#allocation6 + $0x29]] }
  0x9d   : > { %430 = vrot.lane.b32.xlu1 %v428_v19, %s3673_s26  ;;  %422 = vrot.lane.b32.xlu0 %v420_v20, %s3673_s26  ;;  %v646_v2 = vmul.f32 %v2785_v49, %v645_v63  ;;  %v669_v3 = vstv %s2022_s8  ;;  %v661_v4 = vstv %s2021_s25  ;;  %s2032_s8 = sld [smem:[#allocation6 + $0x44]]  ;;  %s2031_s25 = sld [smem:[#allocation6 + $0x3b]] }
  0x9e   : > { %v670_v5 = vmul.f32 %v2785_v49, %v669_v3  ;;  %v662_v6 = vmul.f32 %v2785_v49, %v661_v4  ;;  %v685_v7 = vstv %s2024_s9  ;;  %v677_v8 = vstv %s2023_s11  ;;  %s2050_s9 = sld [smem:[#allocation6 + $0x7]]  ;;  %s2033_s11 = sld [smem:[#allocation6 + $0x4d]] }
  0x9f   : > { %v686_v9 = vmul.f32 %v2785_v49, %v685_v7  ;;  %v678_v10 = vmul.f32 %v2785_v49, %v677_v8  ;;  %v701_v11 = vstv %s2026_s13  ;;  %v693_v12 = vstv %s2025_s15  ;;  %s2034_s13 = sld [smem:[#allocation6 + $0x56]]  ;;  %s2062_s15 = sld [smem:[#allocation6 + $0x8]] }
  0xa0   : > { %v702_v13 = vmul.f32 %v2785_v49, %v701_v11  ;;  %v694_v14 = vmul.f32 %v2785_v49, %v693_v12  ;;  %v717_v15 = vstv %s2028_s24  ;;  %v709_v16 = vstv %s2027_s16  ;;  %s2063_s24 = sld [smem:[#allocation6 + $0x11]]  ;;  %s2051_s16 = sld [smem:[#allocation6 + $0x10]] }
  0xa1   : > { %446 = vrot.lane.b32.xlu1 %v444_v23, %s3673_s26  ;;  %438 = vrot.lane.b32.xlu0 %v436_v24, %s3673_s26  ;;  %v718_v17 = vmul.f32 %v2785_v49, %v717_v15  ;;  %v710_v18 = vmul.f32 %v2785_v49, %v709_v16  ;;  %v733_v19 = vstv %s2030_s17  ;;  %s2052_s17 = sld [smem:[#allocation6 + $0x19]] }
  0xa2   : > { %v725_v20 = vstv %s2029_s28  ;;  %v734_v21 = vmul.f32 %v2785_v49, %v733_v19  ;;  %s2035_s28 = sld [smem:[#allocation6 + $0x5f]] }
  0xa3   : > { %v726_v22 = vmul.f32 %v2785_v49, %v725_v20  ;;  %v749_v23 = vstv %s2032_s8  ;;  %v741_v24 = vstv %s2031_s25  ;;  %s2064_s8 = sld [smem:[#allocation6 + $0x1a]]  ;;  %s2065_s25 = sld [smem:[#allocation6 + $0x23]] }
  0xa4   : > { %v750_v25 = vmul.f32 %v2785_v49, %v749_v23  ;;  %v742_v26 = vmul.f32 %v2785_v49, %v741_v24  ;;  %v757_v29 = vstv %s2033_s11  ;;  %s2055_s11 = sld [smem:[#allocation6 + $0x34]] }
  0xa5   : > { %462 = vrot.lane.b32.xlu1 %v460_v27, %s3671_s6  ;;  %454 = vrot.lane.b32.xlu0 %v452_v28, %s3671_s6  ;;  %v2828_v27 = vld [vmem:[%s2717_s10 + $0x8] sm:$0xf]  ;;  %v839_v28 = vstv %s2050_s9  ;;  %s2036_s10 = sld [smem:[#allocation6 + $0x68]]  ;;  %s2053_s9 = sld [smem:[#allocation6 + $0x22]] }
  0xa6   : > { %v840_v30 = vmul.f32 %v2828_v27, %v839_v28  ;;  %v935_v33 = vstv %s2062_s15  ;;  %v847_v37 = vstv %s2051_s16  ;;  %s2056_s15 = sld [smem:[#allocation6 + $0x3d]] }
  0xa7   : > { %s2067_s16 = sld [smem:[#allocation6 + $0x35]] }
  0xa8   : > { %v773_v41 = vstv %s2035_s28  ;;  %s2059_s28 = sld [smem:[#allocation6 + $0x58]] }
  0xa9   : > { %478 = vrot.lane.b32.xlu1 %v476_v31, %s3671_s6  ;;  %470 = vrot.lane.b32.xlu0 %v468_v32, %s3671_s6  ;;  %v758_v31 = vmul.f32 %v2785_v49, %v757_v29  ;;  %v765_v32 = vstv %s2034_s13  ;;  %v951_v45 = vstv %s2064_s8  ;;  %s2054_s13 = sld [smem:[#allocation6 + $0x2b]]  ;;  %s2060_s8 = sld [smem:[#allocation6 + $0x61]] }
  0xaa   : > { %v766_v34 = vmul.f32 %v2785_v49, %v765_v32 }
  0xab   : > { %v863_v50 = vstv %s2053_s9  ;;  %s2870_s9 = sld [smem:[#allocation6 + $0x47]] }
  0xad   : > { %494 = vrot.lane.b32.xlu1 %v492_v35, %s3671_s6  ;;  %486 = vrot.lane.b32.xlu0 %v484_v36, %s3671_s6  ;;  %v936_v35 = vmul.f32 %v2828_v27, %v935_v33  ;;  %v943_v36 = vstv %s2063_s24  ;;  %s2066_s24 = sld [smem:[#allocation6 + $0x2c]] }
  0xae   : > { %v944_v38 = vmul.f32 %v2828_v27, %v943_v36  ;;  %v911_v4 = vstv %s2059_s28  ;;  %s2901_s28 = sld [smem:[#allocation6 + $0x6b]] }
  0xaf   : > { %v871_v54 = vstv %s2054_s13  ;;  %v912_v8 = vmul.f32 %v2828_v27, %v911_v4  ;;  %s2882_s13 = sld [smem:[#allocation6 + $0x59]] }
  0xb1   : > { %510 = vrot.lane.b32.xlu1 %v508_v39, %s3671_s6  ;;  %502 = vrot.lane.b32.xlu0 %v500_v40, %s3671_s6  ;;  %v848_v39 = vmul.f32 %v2828_v27, %v847_v37  ;;  %v855_v40 = vstv %s2052_s17  ;;  %s2057_s17 = sld [smem:[#allocation6 + $0x46]]  ;;  %v991_v16 = vstv %s2870_s9  ;;  %s2920_s9 = sld [smem:[#allocation6 + $0x24]] }
  0xb2   : > { %v856_v42 = vmul.f32 %v2828_v27, %v855_v40  ;;  %v992_v20 = vmul.f32 %v2828_v27, %v991_v16  ;;  %v549_v40 = vstv %s2914_s27  ;;  %s2977_s27 = sld [smem:[#allocation6 + $0x42]] }
  0xb3   : > { %v967_v58 = vstv %s2066_s24  ;;  %s2888_s24 = sld [smem:[#allocation6 + $0x50]] }
  0xb4   : > { %v1023_v33 = vstv %s2901_s28  ;;  %s2968_s28 = sld [smem:[#allocation6 + $0x48]] }
  0xb5   : > { %526 = vrot.lane.b32.xlu1 %v524_v43, %s3671_s6  ;;  %518 = vrot.lane.b32.xlu0 %v516_v44, %s3671_s6  ;;  %v774_v43 = vmul.f32 %v2785_v49, %v773_v41  ;;  %v781_v44 = vstv %s2036_s10  ;;  %s2058_s10 = sld [smem:[#allocation6 + $0x4f]] }
  0xb6   : > { %v782_v46 = vmul.f32 %v2785_v49, %v781_v44 }
  0xb7   : > { %v895_v63 = vstv %s2057_s17  ;;  %s2896_s17 = sld [smem:[#allocation6 + $0x1b]] }
  0xb8   : > { %v896_v3 = vmul.f32 %v2828_v27, %v895_v63 }
  0xb9   : > { %542 = vrot.lane.b32.xlu1 %v540_v47, %s3671_s6  ;;  %534 = vrot.lane.b32.xlu0 %v532_v48, %s3671_s6  ;;  %v952_v47 = vmul.f32 %v2828_v27, %v951_v45  ;;  %v959_v48 = vstv %s2065_s25  ;;  %s2068_s25 = sld [smem:[#allocation6 + $0x3e]]  ;;  %v331_v45 = vstv %s2920_s9 }
  0xba   : > { %v960_v51 = vmul.f32 %v2828_v27, %v959_v48  ;;  %s2038_s9 = sld [smem:[#allocation6 + $0x6]] }
  0xbd   : > { %608 = vrot.lane.b32.xlu1 %v606_v52, %s3673_s26  ;;  %600 = vrot.lane.b32.xlu0 %v598_v53, %s3673_s26  ;;  %v864_v52 = vmul.f32 %v2828_v27, %v863_v50  ;;  %v879_v53 = vstv %s2055_s11  ;;  %s2874_s11 = sld [smem:[#allocation6 + $0x6a]] }
  0xbe   : > { %v880_v55 = vmul.f32 %v2828_v27, %v879_v53  ;;  %v561_v53 = vstv %s2929_s0  ;;  %s2990_s0 = sld [smem:[#allocation6 + $0x5a]] }
  0xbf   : > { %v983_v12 = vstv %s2068_s25  ;;  %s2910_s25 = sld [smem:[#allocation6 + $0x12]] }
  0xc0   : > { %v984_v15 = vmul.f32 %v2828_v27, %v983_v12 }
  0xc1   : > { %624 = vrot.lane.b32.xlu1 %v622_v56, %s3673_s26  ;;  %616 = vrot.lane.b32.xlu0 %v614_v57, %s3673_s26  ;;  %v872_v56 = vmul.f32 %v2828_v27, %v871_v54  ;;  %v887_v57 = vstv %s2056_s15  ;;  %s2884_s15 = sld [smem:[#allocation6 + $0x9]] }
  0xc2   : > { %v888_v59 = vmul.f32 %v2828_v27, %v887_v57 }
  0xc5   : > { %640 = vrot.lane.b32.xlu1 %v638_v60, %s3673_s26  ;;  %632 = vrot.lane.b32.xlu0 %v630_v61, %s3673_s26  ;;  %v968_v60 = vmul.f32 %v2828_v27, %v967_v58  ;;  %v975_v61 = vstv %s2067_s16  ;;  %s2890_s16 = sld [smem:[#allocation6]]  ;;  %v332_v58 = vmul.f32 %v331_v45, %v2736_v0 }
  0xc7   : > { %v322_v23 = vstv %s2884_s15  ;;  %s3694_s15 = smov 127  }
  0xc9   : > { %656 = vrot.lane.b32.xlu1 %v654_v1, %s3673_s26  ;;  %648 = vrot.lane.b32.xlu0 %v646_v2, %s3673_s26  ;;  %v976_v2 = vmul.f32 %v2828_v27, %v975_v61 }
  0xcd   : > { %672 = vrot.lane.b32.xlu1 %v670_v5, %s3673_s26  ;;  %664 = vrot.lane.b32.xlu0 %v662_v6, %s3673_s26  ;;  %v903_v6 = vstv %s2058_s10  ;;  %s2906_s10 = sld [smem:[#allocation6 + $0x62]] }
  0xd1   : > { %688 = vrot.lane.b32.xlu1 %v686_v9, %s3673_s26  ;;  %680 = vrot.lane.b32.xlu0 %v678_v10, %s3673_s26  ;;  %v904_v9 = vmul.f32 %v2828_v27, %v903_v6  ;;  %v919_v10 = vstv %s2060_s8  ;;  %s2908_s8 = sld [smem:[#allocation6 + $0xc]] }
  0xd3   : > { %v1015_v36 = vstv %s2906_s10  ;;  %s2985_s10 = sld [smem:[#allocation6 + $0x63]] }
  0xd5   : > { %704 = vrot.lane.b32.xlu1 %v702_v13, %s3671_s6  ;;  %696 = vrot.lane.b32.xlu0 %v694_v14, %s3671_s6  ;;  %v920_v14 = vmul.f32 %v2828_v27, %v919_v10 }
  0xd7   : > { %v553_v37 = vstv %s2908_s8  ;;  %s3019_s8 = sld [smem:[#allocation6 + $0x66]] }
  0xd9   : > { %720 = vrot.lane.b32.xlu1 %v718_v17, %s3671_s6  ;;  %712 = vrot.lane.b32.xlu0 %v710_v18, %s3671_s6  ;;  %v927_v18 = vstv %s2874_s11  ;;  %s3693_s11 = smov 126  }
  0xdd   : > { %736 = vrot.lane.b32.xlu1 %v734_v21, %s3671_s6  ;;  %728 = vrot.lane.b32.xlu0 %v726_v22, %s3671_s6  ;;  %v928_v21 = vmul.f32 %v2828_v27, %v927_v18  ;;  %v1007_v22 = vstv %s2882_s13  ;;  %s2942_s13 = sld [smem:[#allocation6 + $0x36]]  ;;  %v343_v18 = vstv %s2968_s28  ;;  %s3098_s28 = sld [smem:[#allocation6 + $0x18]] }
  0xde   : > { %v1008_v29 = vmul.f32 %v2828_v27, %v1007_v22 }
  0xe1   : > { %752 = vrot.lane.b32.xlu1 %v750_v25, %s3671_s6  ;;  %744 = vrot.lane.b32.xlu0 %v742_v26, %s3671_s6  ;;  %v999_v25 = vstv %s2888_s24  ;;  %v319_v26 = vstv %s2890_s16  ;;  %s2952_s24 = sld [smem:[#allocation6 + $0x30]]  ;;  %s2958_s16 = sld [smem:[#allocation6 + $0x27]] }
  0xe2   : > { %v1000_v32 = vmul.f32 %v2828_v27, %v999_v25 }
  0xe3   : > { %v337_v63 = vstv %s2942_s13  ;;  %s2039_s13 = sld [smem:[#allocation6 + $0xf]] }
  0xe5   : > { %842 = vrot.lane.b32.xlu1 %v840_v30, %s3673_s26  ;;  %760 = vrot.lane.b32.xlu0 %v758_v31, %s3671_s6  ;;  %v328_v30 = vstv %s2896_s17  ;;  %v323_v31 = vmul.f32 %v322_v23, %v2736_v0  ;;  %s2962_s17 = sld [smem:[#allocation6 + $0x51]] }
  0xe6   : > { %v329_v41 = vmul.f32 %v328_v30, %v2736_v0 }
  0xe7   : > { %v565_v10 = vstv %s2958_s16  ;;  %s3090_s16 = sld [smem:[#allocation9 + $0x25]] }
  0xe9   : > { %768 = vrot.lane.b32.xlu1 %v766_v34, %s3671_s6  ;;  %938 = vrot.lane.b32.xlu0 %v936_v35, %s3671_s6  ;;  %v320_v34 = vmul.f32 %v319_v26, %v2736_v0  ;;  %v566_v26 = vmul.f32 %v2785_v49, %v565_v10 }
  0xed   : > { %946 = vrot.lane.b32.xlu1 %v944_v38, %s3671_s6  ;;  %850 = vrot.lane.b32.xlu0 %v848_v39, %s3673_s26  ;;  %v325_v38 = vstv %s2910_s25  ;;  %s3022_s25 = sld [smem:[#allocation6 + $0x5d]] }
  0xee   : > { %v326_v48 = vmul.f32 %v325_v38, %v2736_v0 }
  0xf1   : > { %858 = vrot.lane.b32.xlu1 %v856_v42, %s3673_s26  ;;  %776 = vrot.lane.b32.xlu0 %v774_v43, %s3671_s6  ;;  %v1024_v43 = vmul.f32 %v2828_v27, %v1023_v33  ;;  %v344_v33 = vmul.f32 %v343_v18, %v2736_v0 }
  0xf5   : > { %784 = vrot.lane.b32.xlu1 %v782_v46, %s3671_s6  ;;  %954 = vrot.lane.b32.xlu0 %v952_v47, %s3671_s6  ;;  %v1016_v46 = vmul.f32 %v2828_v27, %v1015_v36  ;;  %v554_v47 = vmul.f32 %v2785_v49, %v553_v37  ;;  %v349_v37 = vstv %s2990_s0  ;;  %s3114_s0 = sld [smem:[#allocation9 + $0x4a]] }
  0xf9   : > { %962 = vrot.lane.b32.xlu1 %v960_v51, %s3671_s6  ;;  %866 = vrot.lane.b32.xlu0 %v864_v52, %s3673_s26  ;;  %v550_v52 = vmul.f32 %v2785_v49, %v549_v40 }
  0xfd   : > { %882 = vrot.lane.b32.xlu1 %v880_v55, %s3673_s26  ;;  %874 = vrot.lane.b32.xlu0 %v872_v56, %s3673_s26 }
  0xff   : > { %v2862_v62 = vpop.permute.xlu1 %374  ;;  %v2864_v1 = vpop.permute.xlu0 %358 }
 0x100   : > { %v361_v50 = vadd.f32 %v2864_v1, %v320_v34 }
 0x101   : > { %890 = vrot.lane.b32.xlu1 %v888_v59, %s3673_s26  ;;  %970 = vrot.lane.b32.xlu0 %v968_v60, %s3671_s6  ;;  %v340_v59 = vstv %s2936_s1  ;;  %s3001_s1 = sld [smem:[#allocation6 + $0x54]] }
 0x102   : > { %v341_v12 = vmul.f32 %v340_v59, %v2736_v0 }
 0x103   : > { %v2872_v5 = vpop.permute.xlu1 %382  ;;  %v2876_v7 = vpop.permute.xlu0 %366 }
 0x104   : > { %v369_v44 = vadd.f32 %v2876_v7, %v323_v31  ;;  %v385_v61 = vadd.f32 %v2872_v5, %v329_v41 }
 0x105   : > { %978 = vrot.lane.b32.xlu1 %v976_v2, %s3671_s6  ;;  %898 = vrot.lane.b32.xlu0 %v896_v3, %s3673_s26  ;;  %s2916_s6 = sld [smem:[#allocation6 + $0x2d]]  ;;  %v562_v2 = vmul.f32 %v2785_v49, %v561_v53  ;;  %v377_v3 = vadd.f32 %v2862_v62, %v326_v48  ;;  %v346_v62 = vstv %s2962_s17  ;;  %s3092_s17 = sld [smem:[#allocation9 + $0x1]] }
 0x107   : > { %v2886_v11 = vpop.permute.xlu1 %398  ;;  %v2892_v13 = vpop.permute.xlu0 %390  ;;  %v585_v45 = vstv %s3001_s1  ;;  %s3116_s1 = sld [smem:[#allocation9 + $0x26]] }
 0x108   : > { %v393_v22 = vadd.f32 %v2892_v13, %v332_v58  ;;  %v352_v13 = vstv %s2985_s10  ;;  %v593_v58 = vstv %s3019_s8  ;;  %s3106_s10 = sld [smem:[#allocation7 + $0x1]]  ;;  %s3130_s8 = sld [smem:[#allocation9 + $0x4]] }
 0x109   : > { %914 = vrot.lane.b32.xlu1 %v912_v8, %s3673_s26  ;;  %906 = vrot.lane.b32.xlu0 %v904_v9, %s3673_s26  ;;  %v569_v8 = vstv %s2952_s24  ;;  %s1030_s24 = sld [smem:[#allocation7]] }
 0x10b   : > { %v2903_v17 = vpop.permute.xlu1 %414  ;;  %v2912_v19 = vpop.permute.xlu0 %406  ;;  %v334_v42 = vstv %s2916_s6  ;;  %s2980_s6 = sld [smem:[#allocation6 + $0x39]] }
 0x10c   : > { %v335_v57 = vmul.f32 %v334_v42, %v2736_v0  ;;  %v417_v36 = vadd.f32 %v2903_v17, %v341_v12  ;;  %v353_v17 = vmul.f32 %v352_v13, %v2736_v0  ;;  %v791_v13 = vstv %s2038_s9  ;;  %s3149_s9 = sld [smem:[#allocation9 + $0x5]] }
 0x10d   : > { %922 = vrot.lane.b32.xlu1 %v920_v14, %s3673_s26  ;;  %986 = vrot.lane.b32.xlu0 %v984_v15, %s3693_s11  ;;  %s2934_s26 = sld [smem:[#allocation6 + $0x15]]  ;;  %v338_v14 = vmul.f32 %v337_v63, %v2736_v0 }
 0x10e   : > { %v401_v16 = vadd.f32 %v2886_v11, %v335_v57 }
 0x10f   : > { %v2926_v24 = vpop.permute.xlu1 %430  ;;  %v2932_v28 = vpop.permute.xlu0 %422  ;;  %v409_v41 = vadd.f32 %v2912_v19, %v338_v14  ;;  %v586_v19 = vmul.f32 %v2785_v49, %v585_v45 }
 0x111   : > { %994 = vrot.lane.b32.xlu1 %v992_v20, %s3693_s11  ;;  %930 = vrot.lane.b32.xlu0 %v928_v21, %s3694_s15  ;;  %v570_v21 = vmul.f32 %v2785_v49, %v569_v8  ;;  %v573_v31 = vstv %s2980_s6  ;;  %s3102_s6 = sld [smem:[#allocation9 + $0x49]] }
 0x113   : > { %v2948_v35 = vpop.permute.xlu1 %446  ;;  %v2955_v39 = vpop.permute.xlu0 %438  ;;  %v557_v56 = vstv %s2934_s26  ;;  %s3004_s26 = sld [smem:[#allocation6 + $0x4b]] }
 0x114   : > { %v558_v7 = vmul.f32 %v2785_v49, %v557_v56 }
 0x115   : > { %1010 = vrot.lane.b32.xlu1 %v1008_v29, %s3693_s11  ;;  %1002 = vrot.lane.b32.xlu0 %v1000_v32, %s3693_s11  ;;  %v577_v29 = vstv %s2977_s27  ;;  %v347_v32 = vmul.f32 %v346_v62, %v2736_v0  ;;  %s3100_s27 = sld [smem:[#allocation9 + $0x2]] }
 0x116   : > { %v578_v40 = vmul.f32 %v2785_v49, %v577_v29 }
 0x117   : > { %v463_v51 = vpop.permute.xlu1 %462  ;;  %v455_v55 = vpop.permute.xlu0 %454 }
 0x118   : > { %v465_v54 = vadd.f32 %v463_v51, %v369_v44  ;;  %v457_v60 = vadd.f32 %v455_v55, %v361_v50  ;;  %v574_v44 = vmul.f32 %v2785_v49, %v573_v31  ;;  %v433_v51 = vadd.f32 %v2926_v24, %v347_v32 }
 0x119   : > { %1026 = vrot.lane.b32.xlu1 %v1024_v43, %s3693_s11  ;;  %1018 = vrot.lane.b32.xlu0 %v1016_v46, %s3693_s11  ;;  %v581_v48 = vstv %s3004_s26  ;;  %v449_v24 = vadd.f32 %v2948_v35, %v353_v17  ;;  %s3128_s26 = sld [smem:[#allocation9 + $0x28]] }
 0x11a   : > { %v2993_v1 = vadd.f32 %v554_v47, %v465_v54  ;;  %v2997_v6 = vadd.f32 %v550_v52, %v457_v60  ;;  %v350_v52 = vmul.f32 %v349_v37, %v2736_v0  ;;  %v425_v54 = vadd.f32 %v2932_v28, %v344_v33 }
 0x11b   : > { %v479_v4 = vpop.permute.xlu1 %478  ;;  %v471_v9 = vpop.permute.xlu0 %470  ;;  %v582_v57 = vmul.f32 %v2785_v49, %v581_v48  ;;  %v594_v0 = vmul.f32 %v2785_v49, %v593_v58  ;;  %v312_v37 = vlaneseq }
 0x11c   : > { %v481_v5 = vadd.f32 %v479_v4, %v385_v61  ;;  %v473_v15 = vadd.f32 %v471_v9, %v377_v3  ;;  %v589_v61 = vstv %s3022_s25  ;;  %v441_v3 = vadd.f32 %v2955_v39, %v350_v52  ;;  %s3144_s25 = sld [smem:[#allocation6 + $0x21]] }
 0x11d   : > { %v590_v28 = vmul.f32 %v2785_v49, %v589_v61  ;;  %v313_v45 = vand.u32 127, %v312_v37 }
 0x11e   : > { %v3011_v20 = vadd.f32 %v562_v2, %v481_v5  ;;  %v3015_v25 = vadd.f32 %v558_v7, %v473_v15 }
 0x11f   : > { %v495_v23 = vpop.permute.xlu1 %494  ;;  %v487_v11 = vpop.permute.xlu0 %486  ;;  %vm314_vm0 = vcmp.ge.s32.totalorder %v313_v45, 1  ;;  %vm315_vm1 = vcmp.le.s32.totalorder %v313_v45, 16 }
 0x120   : > { %v497_v30 = vadd.f32 %v495_v23, %v401_v16  ;;  %v489_v34 = vadd.f32 %v487_v11, %v393_v22  ;;  %vm3108_vm2 = vmand %vm314_vm0, %vm315_vm1 }
 0x122   : > { %v3029_v38 = vadd.f32 %v570_v21, %v497_v30  ;;  %v3033_v43 = vadd.f32 %v566_v26, %v489_v34 }
 0x123   : > { %v511_v42 = vpop.permute.xlu1 %510  ;;  %v503_v47 = vpop.permute.xlu0 %502 }
 0x124   : > { %v513_v46 = vadd.f32 %v511_v42, %v417_v36  ;;  %v505_v50 = vadd.f32 %v503_v47, %v409_v41  ;;  %v792_v42 = vmul.f32 %v2828_v27, %v791_v13 }
 0x126   : > { %v3041_v53 = vadd.f32 %v578_v40, %v513_v46  ;;  %v3045_v56 = vadd.f32 %v574_v44, %v505_v50  ;;  %v795_v46 = vstv %s2039_s13  ;;  %s3151_s13 = sld [smem:[#allocation9 + $0x4c]] }
 0x127   : > { %v527_v55 = vpop.permute.xlu1 %526  ;;  %v519_v60 = vpop.permute.xlu0 %518  ;;  %v796_v50 = vmul.f32 %v2828_v27, %v795_v46 }
 0x128   : > { %v529_v59 = vadd.f32 %v527_v55, %v433_v51  ;;  %v521_v63 = vadd.f32 %v519_v60, %v425_v54 }
 0x12a   : > { %v587_v2 = vadd.f32 %v586_v19, %v529_v59  ;;  %v3053_v7 = vadd.f32 %v582_v57, %v521_v63  ;;  %v1096_v63 = vstv %s3090_s16  ;;  %s3169_s16 = sld [smem:[#allocation9 + $0x4d]] }
 0x12b   : > { %v543_v4 = vpop.permute.xlu1 %542  ;;  %v535_v5 = vpop.permute.xlu0 %534 }
 0x12c   : > { %v545_v8 = vadd.f32 %v543_v4, %v449_v24  ;;  %v537_v9 = vadd.f32 %v535_v5, %v441_v3  ;;  %v1088_v24 = vstv %s3092_s17  ;;  %v799_v4 = vstv %s3098_s28  ;;  %s3171_s17 = sld [smem:[#allocation9 + $0x29]]  ;;  %s3175_s28 = sld [smem:[#allocation6 + $0x33]] }
 0x12e   : > { %v3056_v10 = vadd.f32 %v594_v0, %v545_v8  ;;  %v3058_v14 = vadd.f32 %v590_v28, %v537_v9 }
 0x12f   : > { %v609_v12 = vpop.permute.xlu1 %608  ;;  %v601_v62 = vpop.permute.xlu0 %600 }
 0x130   : > { %v603_v34 = vadd.f32 %v601_v62, %v2997_v6  ;;  %v611_v6 = vadd.f32 %v609_v12, %v2993_v1  ;;  %v1031_v1 = vstv %s1030_s24  ;;  %v1112_v62 = vstv %s3100_s27  ;;  %s3155_s24 = sld [smem:[#allocation7 + $0x2]] }
 0x131   : > { %s3177_s27 = sld [smem:[#allocation6 + $0x2a]] }
 0x133   : > { %v3060_v35 = vpop.permute.xlu1 %624  ;;  %v3062_v15 = vpop.permute.xlu0 %616 }
 0x134   : > { %v619_v13 = vadd.f32 %v3062_v15, %v3015_v25  ;;  %v1128_v25 = vstv %s3114_s0  ;;  %v1120_v15 = vstv %s3116_s1  ;;  %s3192_s0 = sld [smem:[#allocation9 + $0x7]]  ;;  %s3199_s1 = sld [smem:[#allocation6 + $0x45]] }
 0x137   : > { %v3064_v16 = vpop.permute.xlu1 %640  ;;  %v3066_v39 = vpop.permute.xlu0 %632 }
 0x13b   : > { %v3068_v18 = vpop.permute.xlu1 %656  ;;  %v3070_v49 = vpop.permute.xlu0 %648 }
 0x13f   : > { %v673_v21 = vpop.permute.xlu1 %672  ;;  %v3072_v22 = vpop.permute.xlu0 %664 }
 0x140   : > { %v675_v17 = vadd.f32 %v673_v21, %v587_v2  ;;  %v1104_v21 = vstv %s3102_s6  ;;  %s3182_s6 = sld [smem:[#allocation6 + $0x3c]] }
 0x143   : > { %v3074_v23 = vpop.permute.xlu1 %688  ;;  %v681_v26 = vpop.permute.xlu0 %680 }
 0x144   : > { %v683_v5 = vadd.f32 %v681_v26, %v3058_v14  ;;  %v691_v26 = vadd.f32 %v3074_v23, %v3056_v10 }
 0x147   : > { %v705_v29 = vpop.permute.xlu1 %704  ;;  %v697_v30 = vpop.permute.xlu0 %696 }
 0x148   : > { %v699_v41 = vadd.f32 %v697_v30, %v603_v34  ;;  %v707_v51 = vadd.f32 %v705_v29, %v611_v6  ;;  %v1035_v29 = vstv %s3106_s10  ;;  %v800_v34 = vmul.f32 %v2828_v27, %v799_v4  ;;  %s3184_s10 = sld [smem:[#allocation9 + $0x2b]] }
 0x14a   : > { %v793_v48 = vadd.f32 %v792_v42, %v699_v41  ;;  %v797_v61 = vadd.f32 %v796_v50, %v707_v51  ;;  %v1156_v50 = vstv %s3128_s26  ;;  %v1148_v51 = vstv %s3130_s8  ;;  %s3203_s26 = sld [smem:[#allocation6 + $0x57]]  ;;  %s3205_s8 = sld [smem:[#allocation6 + $0x4e]] }
 0x14b   : > { %v3076_v11 = vpop.permute.xlu1 %720  ;;  %v3078_v31 = vpop.permute.xlu0 %712 }
 0x14c   : > { %v715_v42 = vadd.f32 %v3078_v31, %v619_v13 }
 0x14f   : > { %v3080_v32 = vpop.permute.xlu1 %736  ;;  %v3082_v33 = vpop.permute.xlu0 %728 }
 0x153   : > { %v3085_v36 = vpop.permute.xlu1 %752  ;;  %v3087_v40 = vpop.permute.xlu0 %744 }
 0x157   : > { %v843_v44 = vpop.permute.xlu1 %842  ;;  %v3094_v47 = vpop.permute.xlu0 %760 }
 0x158   : > { %v845_v52 = vadd.f32 %v843_v44, %v793_v48  ;;  %v801_v48 = vadd.f32 %v800_v34, %v715_v42  ;;  %v1216_v34 = vstv %s3184_s10  ;;  %s3267_s10 = sld [smem:[#allocation9 + $0xb]] }
 0x15b   : > { %v769_v19 = vpop.permute.xlu1 %768  ;;  %v939_v55 = vpop.permute.xlu0 %938 }
 0x15c   : > { %v3104_v54 = vadd.f32 %v769_v19, %v675_v17  ;;  %v941_v57 = vadd.f32 %v939_v55, %v845_v52 }
 0x15e   : > { %v1032_v59 = vadd.f32 %v1031_v1, %v941_v57  ;;  %v803_v1 = vstv %s3144_s25  ;;  %s3213_s25 = sld [smem:[#allocation9 + $0x8]] }
 0x15f   : > { %v947_v60 = vpop.permute.xlu1 %946  ;;  %v851_v2 = vpop.permute.xlu0 %850 }
 0x160   : > { %v3120_v0 = vsel %vm3108_vm2, %v1032_v59, 0.0  ;;  %v853_v3 = vadd.f32 %v851_v2, %v797_v61  ;;  %v627_v59 = vadd.f32 %v3060_v35, %v3011_v20  ;;  %v1039_v2 = vstv %s3155_s24  ;;  %s3225_s24 = sld [smem:[#allocation6 + $0x60]] }
 0x161   : > { %v1097_v28 = vmul.f32 %v1096_v63, %v3120_v0  ;;  %v1089_v8 = vmul.f32 %v1088_v24, %v3120_v0  ;;  %v1113_v37 = vmul.f32 %v1112_v62, %v3120_v0  ;;  %v1105_v41 = vmul.f32 %v1104_v21, %v3120_v0 }
 0x162   : > { %v949_v9 = vadd.f32 %v947_v60, %v853_v3  ;;  %v1129_v31 = vmul.f32 %v1128_v25, %v3120_v0  ;;  %v1121_v46 = vmul.f32 %v1120_v15, %v3120_v0  ;;  %v1172_v63 = vstv %s3149_s9  ;;  %s3215_s9 = sld [smem:[#allocation9 + $0x4f]] }
 0x163   : > { %v859_v12 = vpop.permute.xlu1 %858  ;;  %v777_v30 = vpop.permute.xlu0 %776  ;;  %1099 = vrot.lane.b32.xlu1 %v1097_v28, %s3694_s15  ;;  %1091 = vrot.lane.b32.xlu0 %v1089_v8, %s3694_s15  ;;  %v1164_v24 = vstv %s3151_s13  ;;  %v723_v20 = vadd.f32 %v3076_v11, %v627_v59  ;;  %v804_v35 = vmul.f32 %v2828_v27, %v803_v1  ;;  %s3217_s13 = sld [smem:[#allocation7 + $0x3]]  ;;  %v811_v21 = vstv %s3175_s28  ;;  %s3252_s28 = sld [smem:[#allocation7 + $0x6]] }
 0x164   : > { %v3137_v14 = vadd.f32 %v777_v30, %v683_v5  ;;  %v1036_v44 = vadd.f32 %v1035_v29, %v949_v9  ;;  %v861_v19 = vadd.f32 %v859_v12, %v801_v48  ;;  %v1188_v9 = vstv %s3169_s16  ;;  %s3227_s16 = sld [smem:[#allocation6 + $0x69]] }
 0x165   : > { %v1180_v12 = vstv %s3171_s17  ;;  %v805_v62 = vadd.f32 %v804_v35, %v723_v20  ;;  %v807_v29 = vstv %s3177_s27  ;;  %v815_v30 = vstv %s3182_s6  ;;  %s3233_s17 = sld [smem:[#allocation9 + $0x50]]  ;;  %s3258_s27 = sld [smem:[#allocation9 + $0x2e]] }
 0x166   : > { %v3163_v6 = vsel %vm3108_vm2, %v1036_v44, 0.0  ;;  %v3247_v25 = vmul.f32 %v2828_v27, %v811_v21  ;;  %v819_v15 = vstv %s3199_s1  ;;  %s3260_s6 = sld [smem:[#allocation9 + $0xa]]  ;;  %v659_v48 = vadd.f32 %v3068_v18, %v3041_v53  ;;  %s3279_s1 = sld [smem:[#allocation7 + $0x4]] }
 0x167   : > { %v785_v45 = vpop.permute.xlu1 %784  ;;  %v955_v23 = vpop.permute.xlu0 %954  ;;  %1115 = vrot.lane.b32.xlu1 %v1113_v37, %s3693_s11  ;;  %1107 = vrot.lane.b32.xlu0 %v1105_v41, %s3694_s15  ;;  %v1157_v55 = vmul.f32 %v1156_v50, %v3163_v6  ;;  %v1149_v57 = vmul.f32 %v1148_v51, %v3163_v6  ;;  %v1173_v4 = vmul.f32 %v1172_v63, %v3163_v6 }
 0x168   : > { %v3153_v10 = vadd.f32 %v785_v45, %v691_v26  ;;  %v957_v60 = vadd.f32 %v955_v23, %v861_v19  ;;  %v1165_v28 = vmul.f32 %v1164_v24, %v3163_v6  ;;  %v1189_v13 = vmul.f32 %v1188_v9, %v3163_v6 }
 0x169   : > { %v1181_v26 = vmul.f32 %v1180_v12, %v3163_v6  ;;  %v651_v37 = vadd.f32 %v3070_v49, %v3045_v56  ;;  %v1208_v45 = vstv %s3192_s0  ;;  %v816_v49 = vmul.f32 %v2828_v27, %v815_v30  ;;  %s3275_s0 = sld [smem:[#allocation7 + $0x7]] }
 0x16a   : > { %v1040_v8 = vadd.f32 %v1039_v2, %v957_v60  ;;  %v808_v50 = vmul.f32 %v2828_v27, %v807_v29  ;;  %v820_v19 = vmul.f32 %v2828_v27, %v819_v15  ;;  %v755_v53 = vadd.f32 %v3085_v36, %v659_v48 }
 0x16b   : > { %v3165_v17 = vpop.permute.xlu1 %962  ;;  %v867_v52 = vpop.permute.xlu0 %866  ;;  %1131 = vrot.lane.b32.xlu1 %v1129_v31, %s3693_s11  ;;  %1123 = vrot.lane.b32.xlu0 %v1121_v46, %s3693_s11  ;;  %v747_v56 = vadd.f32 %v3087_v40, %v651_v37  ;;  %v827_v31 = vstv %s3203_s26  ;;  %v823_v46 = vstv %s3205_s8  ;;  %s3285_s26 = sld [smem:[#allocation9 + $0x52]]  ;;  %v635_v63 = vadd.f32 %v3066_v39, %v3033_v43  ;;  %s3291_s8 = sld [smem:[#allocation9 + $0x53]] }
 0x16c   : > { %v3241_v41 = vsel %vm3108_vm2, %v1040_v8, 0.0  ;;  %v869_v42 = vadd.f32 %v867_v52, %v805_v62  ;;  %v1043_v18 = vstv %s3217_s13  ;;  %v828_v59 = vmul.f32 %v2828_v27, %v827_v31  ;;  %s3317_s13 = sld [smem:[#allocation7 + $0xb]] }
 0x16d   : > { %v1217_v51 = vmul.f32 %v1216_v34, %v3241_v41  ;;  %v1209_v52 = vmul.f32 %v1208_v45, %v3241_v41  ;;  %v817_v36 = vadd.f32 %v816_v49, %v747_v56  ;;  %v831_v24 = vstv %s3225_s24  ;;  %s3331_s24 = sld [smem:[#allocation7 + $0xa]] }
 0x16e   : > { %v965_v40 = vadd.f32 %v3165_v17, %v869_v42  ;;  %v824_v17 = vmul.f32 %v2828_v27, %v823_v46  ;;  %v835_v2 = vstv %s3227_s16  ;;  %v667_v8 = vadd.f32 %v3072_v22, %v3053_v7  ;;  %s3343_s16 = sld [smem:[#allocation9 + $0x31]] }
 0x16f   : > { %v3188_v61 = vpop.permute.xlu1 %882  ;;  %v3195_v3 = vpop.permute.xlu0 %874  ;;  %1159 = vrot.lane.b32.xlu1 %v1157_v55, %s3694_s15  ;;  %1151 = vrot.lane.b32.xlu0 %v1149_v57, %s3694_s15  ;;  %v1232_v55 = vstv %s3213_s25  ;;  %v1224_v57 = vstv %s3215_s9  ;;  %v731_v9 = vadd.f32 %v3082_v33, %v635_v63  ;;  %s3303_s25 = sld [smem:[#allocation7 + $0x9]]  ;;  %s3305_s9 = sld [smem:[#allocation9 + $0x2f]]  ;;  %v821_v62 = vadd.f32 %v820_v19, %v755_v53 }
 0x170   : > { %v1233_v20 = vmul.f32 %v1232_v55, %v3241_v41  ;;  %v1225_v35 = vmul.f32 %v1224_v57, %v3241_v41  ;;  %v1044_v12 = vadd.f32 %v1043_v18, %v965_v40  ;;  %v832_v21 = vmul.f32 %v2828_v27, %v831_v24 }
 0x171   : > { %v1055_v29 = vstv %s3252_s28  ;;  %v836_v7 = vmul.f32 %v2828_v27, %v835_v2  ;;  %v763_v22 = vadd.f32 %v3094_v47, %v667_v8  ;;  %v1292_v42 = vstv %s3267_s10  ;;  %s3366_s28 = sld [smem:[#allocation9 + $0xe]] }
 0x172   : > { %v3324_v27 = vsel %vm3108_vm2, %v1044_v12, 0.0  ;;  %v809_v45 = vadd.f32 %v808_v50, %v731_v9  ;;  %v1059_v47 = vstv %s3275_s0  ;;  %v1047_v49 = vstv %s3279_s1  ;;  %s2128_s10 = sld [smem:[#allocation9 + $0x56]]  ;;  %s2127_s0 = sld [smem:[#allocation9 + $0x32]] }
 0x173   : > { %v3209_v5 = vpop.permute.xlu1 %890  ;;  %v3219_v11 = vpop.permute.xlu0 %970  ;;  %1175 = vrot.lane.b32.xlu1 %v1173_v4, %s3693_s11  ;;  %1167 = vrot.lane.b32.xlu0 %v1165_v28, %s3694_s15  ;;  %v1248_v4 = vstv %s3233_s17  ;;  %v1240_v28 = vstv %s3235_s2  ;;  %s3312_s2 = sld [smem:[#allocation7 + $0x8]]  ;;  %v829_v31 = vadd.f32 %v828_v59, %v3104_v54  ;;  %v825_v50 = vadd.f32 %v824_v17, %v763_v22  ;;  %s3348_s17 = sld [smem:[#allocation9 + $0xd]] }
 0x174   : > { %v893_v43 = vadd.f32 %v3209_v5, %v817_v36  ;;  %v1276_v5 = vstv %s3258_s27  ;;  %v1249_v34 = vmul.f32 %v1248_v4, %v3241_v41  ;;  %v1241_v37 = vmul.f32 %v1240_v28, %v3241_v41  ;;  %s3368_s27 = sld [smem:[#allocation9 + $0x55]]  ;;  %s2133_s1 = sld [smem:[#allocation9 + $0x34]] }
 0x175   : > { %v1284_v48 = vstv %s3285_s26  ;;  %v1308_v54 = vstv %s3291_s8  ;;  %v1277_v55 = vmul.f32 %v1276_v5, %v3324_v27  ;;  %v1067_v18 = vstv %s3303_s25  ;;  %s2132_s26 = sld [smem:[#allocation9 + $0x10]]  ;;  %s2135_s8 = sld [smem:[#allocation9 + $0x11]] }
 0x176   : > { %v1300_v17 = vstv %s3305_s9  ;;  %v1293_v8 = vmul.f32 %v1292_v42, %v3324_v27  ;;  %s2134_s25 = sld [smem:[#allocation9 + $0x58]]  ;;  %s2137_s9 = sld [smem:[#allocation9 + $0x59]] }
 0x177   : > { %v3243_v44 = vpop.permute.xlu1 %978  ;;  %v899_v23 = vpop.permute.xlu0 %898  ;;  %1191 = vrot.lane.b32.xlu1 %v1189_v13, %s3693_s11  ;;  %1183 = vrot.lane.b32.xlu0 %v1181_v26, %s3693_s11  ;;  %v1268_v13 = vstv %s3260_s6  ;;  %s3370_s6 = sld [smem:[#allocation7 + $0x5]]  ;;  %v1301_v22 = vmul.f32 %v1300_v17, %v3324_v27 }
 0x178   : > { %v901_v26 = vadd.f32 %v899_v23, %v821_v62  ;;  %v1269_v57 = vmul.f32 %v1268_v13, %v3324_v27 }
 0x179   : > { %v1063_v24 = vstv %s3312_s2  ;;  %s2136_s2 = sld [smem:[#allocation9 + $0x35]] }
 0x17b   : > { %v3271_v1 = vpop.permute.xlu1 %914  ;;  %v907_v60 = vpop.permute.xlu0 %906  ;;  %1219 = vrot.lane.b32.xlu1 %v1217_v51, %s3694_s15  ;;  %1211 = vrot.lane.b32.xlu0 %v1209_v52, %s3694_s15  ;;  %v877_v51 = vadd.f32 %v3195_v3, %v809_v45 }
 0x17c   : > { %v917_v40 = vadd.f32 %v3271_v1, %v829_v31  ;;  %v909_v3 = vadd.f32 %v907_v60, %v825_v50  ;;  %v837_v1 = vadd.f32 %v836_v7, %v3153_v10  ;;  %v833_v60 = vadd.f32 %v832_v21, %v3137_v14 }
 0x17d   : > { %v973_v53 = vadd.f32 %v3219_v11, %v877_v51  ;;  %v643_v11 = vadd.f32 %v3064_v16, %v3029_v38  ;;  %v1285_v10 = vmul.f32 %v1284_v48, %v3324_v27  ;;  %v1071_v14 = vstv %s3331_s24  ;;  %s2141_s24 = sld [smem:[#allocation9 + $0x13]] }
 0x17e   : > { %v1309_v7 = vmul.f32 %v1308_v54, %v3324_v27  ;;  %v1051_v31 = vstv %s3370_s6  ;;  %v1368_v48 = vstv %s2128_s10  ;;  %v1360_v51 = vstv %s2127_s0  ;;  %s2151_s6 = sld [smem:[#allocation9 + $0x3a]]  ;;  %s2150_s10 = sld [smem:[#allocation9 + $0x16]] }
 0x17f   : > { %v3301_v39 = vpop.permute.xlu1 %922  ;;  %v987_v30 = vpop.permute.xlu0 %986  ;;  %1235 = vrot.lane.b32.xlu1 %v1233_v20, %s3693_s11  ;;  %1227 = vrot.lane.b32.xlu0 %v1225_v35, %s3694_s15  ;;  %v1075_v35 = vstv %s3317_s13  ;;  %v739_v9 = vadd.f32 %v3080_v32, %v643_v11  ;;  %v1048_v12 = vadd.f32 %v1047_v49, %v973_v53  ;;  %v1344_v49 = vstv %s3368_s27  ;;  %s2142_s13 = sld [smem:[#allocation9 + $0x37]]  ;;  %s2145_s27 = sld [smem:[#allocation9 + $0x38]] }
 0x180   : > { %v989_v33 = vadd.f32 %v987_v30, %v893_v43  ;;  %v925_v43 = vadd.f32 %v3301_v39, %v833_v60  ;;  %v1412_v53 = vstv %s2135_s8  ;;  %v1420_v17 = vstv %s2136_s2  ;;  %s2153_s0 = sld [smem:[#allocation9 + $0x17]]  ;;  %s2154_s8 = sld [smem:[#allocation9 + $0x3b]] }
 0x181   : > { %v813_v5 = vadd.f32 %v3247_v25, %v739_v9  ;;  %v3389_v13 = vsel %vm3108_vm2, %v1048_v12, 0.0  ;;  %s2162_s2 = sld [smem:[#allocation9 + $0x1a]] }
 0x182   : > { %v1056_v15 = vadd.f32 %v1055_v29, %v989_v33  ;;  %v1336_v33 = vstv %s3343_s16  ;;  %v1361_v50 = vmul.f32 %v1360_v51, %v3389_v13  ;;  %s2144_s16 = sld [smem:[#allocation9 + $0x14]] }
 0x183   : > { %v995_v56 = vpop.permute.xlu1 %994  ;;  %v931_v23 = vpop.permute.xlu0 %930  ;;  %1251 = vrot.lane.b32.xlu1 %v1249_v34, %s3693_s11  ;;  %1243 = vrot.lane.b32.xlu0 %v1241_v37, %s3693_s11  ;;  %v1328_v34 = vstv %s3348_s17  ;;  %v885_v42 = vadd.f32 %v3188_v61, %v813_v5  ;;  %v1337_v45 = vmul.f32 %v1336_v33, %v3389_v13  ;;  %s2143_s17 = sld [smem:[#allocation9 + $0x5b]] }
 0x184   : > { %v997_v46 = vadd.f32 %v995_v56, %v901_v26  ;;  %v3337_v52 = vsel %vm3108_vm2, %v1056_v15, 0.0  ;;  %v933_v4 = vadd.f32 %v931_v23, %v837_v1  ;;  %v1329_v15 = vmul.f32 %v1328_v34, %v3389_v13 }
 0x185   : > { %v1352_v56 = vstv %s3366_s28  ;;  %s2146_s28 = sld [smem:[#allocation9 + $0x5c]] }
 0x186   : > { %v1060_v19 = vadd.f32 %v1059_v47, %v997_v46  ;;  %v981_v47 = vadd.f32 %v3243_v44, %v885_v42  ;;  %v1353_v61 = vmul.f32 %v1352_v56, %v3389_v13  ;;  %v1345_v46 = vmul.f32 %v1344_v49, %v3389_v13 }
 0x187   : > { %v1011_v59 = vpop.permute.xlu1 %1010  ;;  %v1003_v2 = vpop.permute.xlu0 %1002  ;;  %1279 = vrot.lane.b32.xlu1 %v1277_v55, %s3694_s15  ;;  %1271 = vrot.lane.b32.xlu0 %v1269_v57, %s3694_s15  ;;  %v1369_v44 = vmul.f32 %v1368_v48, %v3389_v13 }
 0x188   : > { %v3352_v63 = vsel %vm3108_vm2, %v1060_v19, 0.0  ;;  %v1013_v36 = vadd.f32 %v1011_v59, %v917_v40  ;;  %v1005_v20 = vadd.f32 %v1003_v2, %v909_v3  ;;  %v1052_v23 = vadd.f32 %v1051_v31, %v981_v47 }
 0x189   : > { %v1396_v40 = vstv %s2133_s1  ;;  %v1388_v19 = vstv %s2132_s26  ;;  %v1404_v3 = vstv %s2134_s25  ;;  %v1428_v59 = vstv %s2137_s9  ;;  %s2152_s1 = sld [smem:[#allocation9 + $0x5e]]  ;;  %s2155_s26 = sld [smem:[#allocation9 + $0x5f]] }
 0x18a   : > { %v1068_v28 = vadd.f32 %v1067_v18, %v1013_v36  ;;  %v1064_v62 = vadd.f32 %v1063_v24, %v1005_v20  ;;  %v3419_v54 = vsel %vm3108_vm2, %v1052_v23, 0.0  ;;  %v1456_v24 = vstv %s2142_s13  ;;  %s2160_s25 = sld [smem:[#allocation9 + $0x3d]]  ;;  %s2159_s9 = sld [smem:[#allocation9 + $0x19]] }
 0x18b   : > { %v1027_v29 = vpop.permute.xlu1 %1026  ;;  %v1019_v32 = vpop.permute.xlu0 %1018  ;;  %1295 = vrot.lane.b32.xlu1 %v1293_v8, %s3693_s11  ;;  %1287 = vrot.lane.b32.xlu0 %v1285_v10, %s3694_s15  ;;  %v1397_v55 = vmul.f32 %v1396_v40, %v3419_v54  ;;  %v1389_v57 = vmul.f32 %v1388_v19, %v3419_v54  ;;  %v1413_v58 = vmul.f32 %v1412_v53, %v3419_v54  ;;  %v1448_v2 = vstv %s2141_s24  ;;  %s2161_s13 = sld [smem:[#allocation9 + $0x61]]  ;;  %s2164_s24 = sld [smem:[#allocation9 + $0x62]] }
 0x18c   : > { %v3374_v38 = vsel %vm3108_vm2, %v1068_v28, 0.0  ;;  %v1029_v16 = vadd.f32 %v1027_v29, %v933_v4  ;;  %v3381_v39 = vsel %vm3108_vm2, %v1064_v62, 0.0  ;;  %v1021_v21 = vadd.f32 %v1019_v32, %v925_v43 }
 0x18d   : > { %v1405_v18 = vmul.f32 %v1404_v3, %v3419_v54  ;;  %v1429_v1 = vmul.f32 %v1428_v59, %v3419_v54  ;;  %v1421_v36 = vmul.f32 %v1420_v17, %v3419_v54  ;;  %v1457_v11 = vmul.f32 %v1456_v24, %v3337_v52 }
 0x18e   : > { %v1076_v30 = vadd.f32 %v1075_v35, %v1029_v16  ;;  %v1072_v26 = vadd.f32 %v1071_v14, %v1021_v21  ;;  %v1449_v60 = vmul.f32 %v1448_v2, %v3337_v52  ;;  %v1472_v20 = vstv %s2144_s16  ;;  %s2163_s16 = sld [smem:[#allocation9 + $0x3e]] }
 0x18f   : > { %1311 = vrot.lane.b32.xlu1 %v1309_v7, %s3693_s11  ;;  %1303 = vrot.lane.b32.xlu0 %v1301_v22, %s3693_s11  ;;  %v1464_v35 = vstv %s2143_s17  ;;  %v1473_v4 = vmul.f32 %v1472_v20, %v3337_v52  ;;  %v1488_v8 = vstv %s2146_s28  ;;  %s2169_s17 = sld [smem:[#allocation9 + $0x40]]  ;;  %s2168_s28 = sld [smem:[#allocation9 + $0x1c]] }
 0x190   : > { %v3394_v37 = vsel %vm3108_vm2, %v1076_v30, 0.0  ;;  %v3401_v25 = vsel %vm3108_vm2, %v1072_v26, 0.0  ;;  %v1465_v28 = vmul.f32 %v1464_v35, %v3337_v52  ;;  %v1480_v10 = vstv %s2145_s27  ;;  %s2171_s27 = sld [smem:[#allocation9 + $0x1d]] }
 0x191   : > { %v1489_v9 = vmul.f32 %v1488_v8, %v3337_v52  ;;  %v1481_v12 = vmul.f32 %v1480_v10, %v3337_v52  ;;  %v1516_v43 = vstv %s2151_s6  ;;  %v1508_v62 = vstv %s2150_s10  ;;  %s2170_s6 = sld [smem:[#allocation9 + $0x64]] }
 0x192   : > { %v1517_v29 = vmul.f32 %v1516_v43, %v3352_v63  ;;  %v1509_v16 = vmul.f32 %v1508_v62, %v3352_v63  ;;  %v1532_v14 = vstv %s2153_s0  ;;  %v1524_v32 = vstv %s2152_s1  ;;  %s2085_s10 = sld [smem:[#allocation9 + $0x24]]  ;;  %s1078_s0 = sld [smem:[#allocation9]] }
 0x193   : > { %1339 = vrot.lane.b32.xlu1 %v1337_v45, %s3694_s15  ;;  %1331 = vrot.lane.b32.xlu0 %v1329_v15, %s3694_s15  ;;  %v1533_v21 = vmul.f32 %v1532_v14, %v3352_v63  ;;  %v1525_v30 = vmul.f32 %v1524_v32, %v3352_v63  ;;  %v1548_v7 = vstv %s2155_s26  ;;  %v1540_v22 = vstv %s2154_s8  ;;  %s2173_s1 = sld [smem:[#allocation9 + $0x65]]  ;;  %s2172_s26 = sld [smem:[#allocation9 + $0x41]] }
 0x194   : > { %v1549_v33 = vmul.f32 %v1548_v7, %v3352_v63  ;;  %v1541_v5 = vmul.f32 %v1540_v22, %v3352_v63  ;;  %v1576_v26 = vstv %s2160_s25  ;;  %v1568_v34 = vstv %s2159_s9  ;;  %s3473_s8 = sld [smem:[#allocation9 + $0x48]]  ;;  %s3475_s25 = sld [smem:[#allocation9 + $0x43]] }
 0x195   : > { %v1577_v42 = vmul.f32 %v1576_v26, %v3381_v39  ;;  %v1569_v45 = vmul.f32 %v1568_v34, %v3381_v39  ;;  %v1592_v15 = vstv %s2162_s2  ;;  %v1584_v47 = vstv %s2161_s13  ;;  %s3477_s9 = sld [smem:[#allocation9 + $0x1f]]  ;;  %s3481_s2 = sld [smem:[#allocation9 + $0x3]] }
 0x196   : > { %v1593_v56 = vmul.f32 %v1592_v15, %v3381_v39  ;;  %v1585_v49 = vmul.f32 %v1584_v47, %v3381_v39  ;;  %v1608_v31 = vstv %s2164_s24  ;;  %v1636_v48 = vstv %s2169_s17  ;;  %s3485_s13 = sld [smem:[#allocation9 + $0x20]]  ;;  %s3487_s24 = sld [smem:[#allocation9 + $0x67]] }
 0x197   : > { %1355 = vrot.lane.b32.xlu1 %v1353_v61, %s3693_s11  ;;  %1347 = vrot.lane.b32.xlu0 %v1345_v46, %s3694_s15  ;;  %v1600_v61 = vstv %s2163_s16  ;;  %v1609_v46 = vmul.f32 %v1608_v31, %v3381_v39  ;;  %v1628_v51 = vstv %s2168_s28  ;;  %s3491_s16 = sld [smem:[#allocation9 + $0x27]]  ;;  %s3493_s17 = sld [smem:[#allocation9 + $0x4b]] }
 0x198   : > { %v1601_v23 = vmul.f32 %v1600_v61, %v3381_v39  ;;  %v1652_v40 = vstv %s2171_s27  ;;  %v1644_v19 = vstv %s2170_s6  ;;  %v1082_v53 = vstv %s2085_s10  ;;  %s3500_s28 = sld [smem:[#allocation9 + $0x68]]  ;;  %s3502_s27 = sld [smem:[#allocation9 + $0x44]] }
 0x199   : > { %v1079_v3 = vstv %s1078_s0  ;;  %v1083_v59 = vmul.f32 %v1082_v53, %v3120_v0  ;;  %s3515_s6 = sld [smem:[#allocation9 + $0x46]]  ;;  %s3517_s10 = sld [smem:[#allocation9 + $0x22]] }
 0x19a   : > { %v1080_v17 = vmul.f32 %v1079_v3, %v3120_v0  ;;  %v1696_v35 = vstv %s3475_s25  ;;  %s3523_s0 = sld [smem:[#allocation9 + $0x6]] }
 0x19b   : > { %1371 = vrot.lane.b32.xlu1 %v1369_v44, %s3693_s11  ;;  %1363 = vrot.lane.b32.xlu0 %v1361_v50, %s3693_s11  ;;  %v1637_v44 = vmul.f32 %v1636_v48, %v3374_v38  ;;  %v1629_v50 = vmul.f32 %v1628_v51, %v3374_v38  ;;  %s3539_s25 = sld [smem:[#allocation9 + $0x4e]] }
 0x19c   : > { %v1712_v62 = vstv %s3485_s13  ;;  %v1704_v14 = vstv %s3487_s24  ;;  %s2111_s13 = sld [smem:[#allocation9 + $0x9]]  ;;  %s2112_s24 = sld [smem:[#allocation9 + $0x2d]] }
 0x19e   : > { %v1728_v26 = vstv %s3500_s28  ;;  %v1720_v34 = vstv %s3502_s27  ;;  %s2129_s28 = sld [smem:[#allocation9 + $0xf]]  ;;  %s2130_s27 = sld [smem:[#allocation9 + $0x33]] }
 0x19f   : > { %1399 = vrot.lane.b32.xlu1 %v1397_v55, %s3694_s15  ;;  %1391 = vrot.lane.b32.xlu0 %v1389_v57, %s3694_s15  ;;  %v1653_v55 = vmul.f32 %v1652_v40, %v3374_v38  ;;  %v1645_v57 = vmul.f32 %v1644_v19, %v3374_v38  ;;  %v1756_v48 = vstv %s3515_s6  ;;  %v1748_v51 = vstv %s3517_s10  ;;  %s2131_s6 = sld [smem:[#allocation9 + $0x57]]  ;;  %s2138_s10 = sld [smem:[#allocation9 + $0x12]] }
 0x1a3   : > { %1415 = vrot.lane.b32.xlu1 %v1413_v58, %s3693_s11  ;;  %1407 = vrot.lane.b32.xlu0 %v1405_v18, %s3694_s15  ;;  %v1668_v58 = vstv %s2173_s1  ;;  %v1660_v18 = vstv %s2172_s26  ;;  %s3531_s1 = sld [smem:[#allocation9 + $0x23]]  ;;  %s3533_s26 = sld [smem:[#allocation9 + $0x6a]] }
 0x1a4   : > { %v1669_v24 = vmul.f32 %v1668_v58, %v3374_v38  ;;  %v1661_v2 = vmul.f32 %v1660_v18, %v3374_v38 }
 0x1a7   : > { %1431 = vrot.lane.b32.xlu1 %v1429_v1, %s3693_s11  ;;  %1423 = vrot.lane.b32.xlu0 %v1421_v36, %s3693_s11 }
 0x1a9   : > { %v1772_v3 = vstv %s3531_s1  ;;  %v1764_v58 = vstv %s3533_s26  ;;  %s2140_s1 = sld [smem:[#allocation9 + $0x5a]]  ;;  %s2147_s26 = sld [smem:[#allocation9 + $0x15]] }
 0x1ab   : > { %1459 = vrot.lane.b32.xlu1 %v1457_v11, %s3694_s15  ;;  %1451 = vrot.lane.b32.xlu0 %v1449_v60, %s3694_s15  ;;  %v1085_v11 = vstv %s3473_s8  ;;  %s3537_s8 = sld [smem:[#allocation9 + $0x2a]] }
 0x1ac   : > { %v1086_v8 = vmul.f32 %v1085_v11, %v3120_v0  ;;  %v1140_v0 = vstv %s3491_s16  ;;  %v1773_v11 = vmul.f32 %v1772_v3, %v3394_v37  ;;  %s2113_s16 = sld [smem:[#allocation9 + $0x51]] }
 0x1ad   : > { %v1141_v15 = vmul.f32 %v1140_v0, %v3163_v6 }
 0x1af   : > { %1475 = vrot.lane.b32.xlu1 %v1473_v4, %s3693_s11  ;;  %1467 = vrot.lane.b32.xlu0 %v1465_v28, %s3694_s15  ;;  %v1688_v4 = vstv %s3477_s9  ;;  %v1136_v28 = vstv %s3481_s2  ;;  %s3543_s9 = sld [smem:[#allocation9 + $0x6b]]  ;;  %s3545_s2 = sld [smem:[#allocation9 + $0x47]] }
 0x1b0   : > { %v1689_v43 = vmul.f32 %v1688_v4, %v3401_v25  ;;  %v1137_v32 = vmul.f32 %v1136_v28, %v3163_v6 }
 0x1b3   : > { %1491 = vrot.lane.b32.xlu1 %v1489_v9, %s3693_s11  ;;  %1483 = vrot.lane.b32.xlu0 %v1481_v12, %s3693_s11  ;;  %v1697_v12 = vmul.f32 %v1696_v35, %v3401_v25 }
 0x1b5   : > { %v1780_v35 = vstv %s3545_s2  ;;  %s2157_s2 = sld [smem:[#allocation9 + $0x3c]] }
 0x1b7   : > { %1519 = vrot.lane.b32.xlu1 %v1517_v29, %s3694_s15  ;;  %1511 = vrot.lane.b32.xlu0 %v1509_v16, %s3694_s15 }
 0x1bb   : > { %1535 = vrot.lane.b32.xlu1 %v1533_v21, %s3693_s11  ;;  %1527 = vrot.lane.b32.xlu0 %v1525_v30, %s3694_s15  ;;  %v1144_v21 = vstv %s3493_s17  ;;  %s2122_s17 = sld [smem:[#allocation9 + $0x54]] }
 0x1bc   : > { %v1145_v47 = vmul.f32 %v1144_v21, %v3163_v6  ;;  %v1729_v6 = vmul.f32 %v1728_v26, %v3401_v25 }
 0x1bf   : > { %1551 = vrot.lane.b32.xlu1 %v1549_v33, %s3693_s11  ;;  %1543 = vrot.lane.b32.xlu0 %v1541_v5, %s3693_s11  ;;  %v1713_v33 = vmul.f32 %v1712_v62, %v3401_v25  ;;  %v1705_v5 = vmul.f32 %v1704_v14, %v3401_v25  ;;  %v1256_v14 = vstv %s2111_s13  ;;  %s2158_s13 = sld [smem:[#allocation9 + $0x60]] }
 0x1c3   : > { %1579 = vrot.lane.b32.xlu1 %v1577_v42, %s3694_s15  ;;  %1571 = vrot.lane.b32.xlu0 %v1569_v45, %s3694_s15 }
 0x1c7   : > { %1595 = vrot.lane.b32.xlu1 %v1593_v56, %s3693_s11  ;;  %1587 = vrot.lane.b32.xlu0 %v1585_v49, %s3694_s15 }
 0x1cb   : > { %1611 = vrot.lane.b32.xlu1 %v1609_v46, %s3693_s11  ;;  %1603 = vrot.lane.b32.xlu0 %v1601_v23, %s3693_s11  ;;  %v1721_v46 = vmul.f32 %v1720_v34, %v3401_v25 }
 0x1cf   : > { %1639 = vrot.lane.b32.xlu1 %v1637_v44, %s3694_s15  ;;  %1631 = vrot.lane.b32.xlu0 %v1629_v50, %s3694_s15  ;;  %v1196_v44 = vstv %s3523_s0  ;;  %s2139_s0 = sld [smem:[#allocation9 + $0x36]] }
 0x1d0   : > { %v1197_v18 = vmul.f32 %v1196_v44, %v3241_v41 }
 0x1d3   : > { %1655 = vrot.lane.b32.xlu1 %v1653_v55, %s3693_s11  ;;  %1647 = vrot.lane.b32.xlu0 %v1645_v57, %s3694_s15  ;;  %v1757_v55 = vmul.f32 %v1756_v48, %v3394_v37  ;;  %v1749_v57 = vmul.f32 %v1748_v51, %v3394_v37 }
 0x1d5   : > { %v1100_v1 = vpop.permute.xlu1 %1099  ;;  %v1092_v36 = vpop.permute.xlu0 %1091 }
 0x1d6   : > { %v1102_v60 = vadd.f32 %v1100_v1, %v1083_v59  ;;  %v1094_v20 = vadd.f32 %v1092_v36, %v1080_v17  ;;  %v1200_v59 = vstv %s3537_s8  ;;  %v1204_v17 = vstv %s3539_s25  ;;  %s2148_s8 = sld [smem:[#allocation9 + $0x39]]  ;;  %s2149_s25 = sld [smem:[#allocation9 + $0x5d]] }
 0x1d7   : > { %1671 = vrot.lane.b32.xlu1 %v1669_v24, %s3693_s11  ;;  %1663 = vrot.lane.b32.xlu0 %v1661_v2, %s3693_s11 }
 0x1d9   : > { %v1116_v10 = vpop.permute.xlu1 %1115  ;;  %v1108_v9 = vpop.permute.xlu0 %1107 }
 0x1da   : > { %v1118_v29 = vadd.f32 %v1116_v10, %v1094_v20  ;;  %v1110_v16 = vadd.f32 %v1108_v9, %v1086_v8  ;;  %v1788_v20 = vstv %s3543_s9  ;;  %v1201_v8 = vmul.f32 %v1200_v59, %v3241_v41  ;;  %s2156_s9 = sld [smem:[#allocation9 + $0x18]] }
 0x1db   : > { %1699 = vrot.lane.b32.xlu1 %v1697_v12, %s3694_s15  ;;  %1691 = vrot.lane.b32.xlu0 %v1689_v43, %s3694_s15  ;;  %v1205_v10 = vmul.f32 %v1204_v17, %v3241_v41 }
 0x1dc   : > { %v1138_v30 = vadd.f32 %v1137_v32, %v1118_v29  ;;  %v1789_v29 = vmul.f32 %v1788_v20, %v3394_v37 }
 0x1dd   : > { %v1132_v7 = vpop.permute.xlu1 %1131  ;;  %v1124_v22 = vpop.permute.xlu0 %1123 }
 0x1de   : > { %v1134_v42 = vadd.f32 %v1132_v7, %v1110_v16  ;;  %v1126_v45 = vadd.f32 %v1124_v22, %v1102_v60  ;;  %v1765_v60 = vmul.f32 %v1764_v58, %v3394_v37  ;;  %v1781_v16 = vmul.f32 %v1780_v35, %v3394_v37 }
 0x1df   : > { %1715 = vrot.lane.b32.xlu1 %v1713_v33, %s3693_s11  ;;  %1707 = vrot.lane.b32.xlu0 %v1705_v5, %s3694_s15  ;;  %v1260_v7 = vstv %s2112_s24  ;;  %v1264_v22 = vstv %s2113_s16  ;;  %s2165_s24 = sld [smem:[#allocation9 + $0x1b]]  ;;  %s2166_s16 = sld [smem:[#allocation9 + $0x3f]] }
 0x1e0   : > { %v1142_v56 = vadd.f32 %v1141_v15, %v1126_v45  ;;  %v1146_v49 = vadd.f32 %v1145_v47, %v1134_v42  ;;  %v1261_v47 = vmul.f32 %v1260_v7, %v3324_v27  ;;  %v1436_v7 = vstv %s2138_s10  ;;  %s2185_s10 = sld [smem:[#allocation9 + $0x69]] }
 0x1e1   : > { %v1160_v31 = vpop.permute.xlu1 %1159  ;;  %v1152_v61 = vpop.permute.xlu0 %1151 }
 0x1e2   : > { %v1162_v23 = vadd.f32 %v1160_v31, %v1142_v56  ;;  %v1154_v50 = vadd.f32 %v1152_v61, %v1138_v30  ;;  %v1257_v30 = vmul.f32 %v1256_v14, %v3324_v27  ;;  %v1265_v56 = vmul.f32 %v1264_v22, %v3324_v27 }
 0x1e3   : > { %1731 = vrot.lane.b32.xlu1 %v1729_v6, %s3693_s11  ;;  %1723 = vrot.lane.b32.xlu0 %v1721_v46, %s3693_s11 }
 0x1e5   : > { %v1176_v40 = vpop.permute.xlu1 %1175  ;;  %v1168_v19 = vpop.permute.xlu0 %1167 }
 0x1e6   : > { %v1178_v53 = vadd.f32 %v1176_v40, %v1154_v50  ;;  %v1170_v1 = vadd.f32 %v1168_v19, %v1146_v49  ;;  %v1324_v19 = vstv %s2122_s17  ;;  %s2175_s17 = sld [smem:[#allocation9 + $0x42]] }
 0x1e7   : > { %1759 = vrot.lane.b32.xlu1 %v1757_v55, %s3694_s15  ;;  %1751 = vrot.lane.b32.xlu0 %v1749_v57, %s3694_s15  ;;  %v1325_v17 = vmul.f32 %v1324_v19, %v3389_v13 }
 0x1e8   : > { %v1198_v36 = vadd.f32 %v1197_v18, %v1178_v53 }
 0x1e9   : > { %v1192_v24 = vpop.permute.xlu1 %1191  ;;  %v1184_v2 = vpop.permute.xlu0 %1183 }
 0x1ea   : > { %v1194_v4 = vadd.f32 %v1192_v24, %v1170_v1  ;;  %v1186_v28 = vadd.f32 %v1184_v2, %v1162_v23 }
 0x1eb   : > { %1775 = vrot.lane.b32.xlu1 %v1773_v11, %s3693_s11  ;;  %1767 = vrot.lane.b32.xlu0 %v1765_v60, %s3694_s15  ;;  %s2120_s15 = sld [smem:[#allocation9 + $0xc]]  ;;  %v1376_v11 = vstv %s2129_s28  ;;  %s2176_s28 = sld [smem:[#allocation9 + $0x66]] }
 0x1ec   : > { %v1202_v9 = vadd.f32 %v1201_v8, %v1186_v28  ;;  %v1206_v12 = vadd.f32 %v1205_v10, %v1194_v4  ;;  %v1377_v28 = vmul.f32 %v1376_v11, %v3419_v54  ;;  %v1380_v8 = vstv %s2130_s27  ;;  %s2183_s27 = sld [smem:[#allocation9 + $0x21]] }
 0x1ed   : > { %v1220_v43 = vpop.permute.xlu1 %1219  ;;  %v1212_v62 = vpop.permute.xlu0 %1211  ;;  %v1384_v10 = vstv %s2131_s6  ;;  %v1381_v14 = vmul.f32 %v1380_v8, %v3419_v54  ;;  %s2184_s6 = sld [smem:[#allocation9 + $0x45]] }
 0x1ee   : > { %v1214_v41 = vadd.f32 %v1212_v62, %v1198_v36  ;;  %v1222_v33 = vadd.f32 %v1220_v43, %v1202_v9 }
 0x1ef   : > { %1791 = vrot.lane.b32.xlu1 %v1789_v29, %s3693_s11  ;;  %1783 = vrot.lane.b32.xlu0 %v1781_v16, %s3693_s11  ;;  %s2121_s11 = sld [smem:[#allocation9 + $0x30]] }
 0x1f1   : > { %v1236_v32 = vpop.permute.xlu1 %1235  ;;  %v1228_v0 = vpop.permute.xlu0 %1227  ;;  %v1316_v46 = vstv %s2120_s15  ;;  %s2167_s15 = sld [smem:[#allocation9 + $0x63]] }
 0x1f2   : > { %v1238_v21 = vadd.f32 %v1236_v32, %v1214_v41  ;;  %v1230_v5 = vadd.f32 %v1228_v0, %v1206_v12  ;;  %v1317_v50 = vmul.f32 %v1316_v46, %v3389_v13  ;;  %v1385_v41 = vmul.f32 %v1384_v10, %v3419_v54 }
 0x1f4   : > { %v1258_v26 = vadd.f32 %v1257_v30, %v1238_v21 }
 0x1f5   : > { %v1252_v34 = vpop.permute.xlu1 %1251  ;;  %v1244_v42 = vpop.permute.xlu0 %1243  ;;  %v1320_v40 = vstv %s2121_s11  ;;  %s2174_s11 = sld [smem:[#allocation9 + $0x1e]] }
 0x1f6   : > { %v1254_v45 = vadd.f32 %v1252_v34, %v1230_v5  ;;  %v1246_v15 = vadd.f32 %v1244_v42, %v1222_v33  ;;  %v1321_v59 = vmul.f32 %v1320_v40, %v3389_v13  ;;  %v1437_v34 = vmul.f32 %v1436_v7, %v3337_v52 }
 0x1f7   : > { %v1440_v42 = vstv %s2139_s0  ;;  %s1795_s0 = sld [smem:[#allocation10]] }
 0x1f8   : > { %v1262_v49 = vadd.f32 %v1261_v47, %v1246_v15  ;;  %v1266_v31 = vadd.f32 %v1265_v56, %v1254_v45  ;;  %v1444_v45 = vstv %s2140_s1  ;;  %s2194_s1 = sld [smem:[#allocation10 + $0x2]] }
 0x1f9   : > { %v1280_v61 = vpop.permute.xlu1 %1279  ;;  %v1272_v6 = vpop.permute.xlu0 %1271  ;;  %v1445_v46 = vmul.f32 %v1444_v45, %v3337_v52 }
 0x1fa   : > { %v1274_v23 = vadd.f32 %v1272_v6, %v1258_v26  ;;  %v1282_v55 = vadd.f32 %v1280_v61, %v1262_v49  ;;  %v1441_v6 = vmul.f32 %v1440_v42, %v3337_v52 }
 0x1fd   : > { %v1296_v48 = vpop.permute.xlu1 %1295  ;;  %v1288_v51 = vpop.permute.xlu0 %1287 }
 0x1fe   : > { %v1298_v44 = vadd.f32 %v1296_v48, %v1274_v23  ;;  %v1290_v57 = vadd.f32 %v1288_v51, %v1266_v31 }
 0x200   : > { %v1318_v53 = vadd.f32 %v1317_v50, %v1298_v44  ;;  %v1496_v50 = vstv %s2147_s26  ;;  %s2192_s26 = sld [smem:[#allocation10 + $0x1]] }
 0x201   : > { %v1312_v27 = vpop.permute.xlu1 %1311  ;;  %v1304_v3 = vpop.permute.xlu0 %1303 }
 0x202   : > { %v1314_v58 = vadd.f32 %v1312_v27, %v1290_v57  ;;  %v1306_v18 = vadd.f32 %v1304_v3, %v1282_v55  ;;  %v1500_v27 = vstv %s2148_s8  ;;  %v1504_v3 = vstv %s2149_s25  ;;  %s3697_s8 = smul.u32 12, %s2711_s7 }
 0x204   : > { %v1322_v1 = vadd.f32 %v1321_v59, %v1306_v18  ;;  %v1326_v36 = vadd.f32 %v1325_v17, %v1314_v58  ;;  %s311_s25 = scalar_lea.vmem [#allocation12], %s3697_s8 }
 0x205   : > { %v1340_v24 = vpop.permute.xlu1 %1339  ;;  %v1332_v2 = vpop.permute.xlu0 %1331 }
 0x206   : > { %v1334_v60 = vadd.f32 %v1332_v2, %v1318_v53  ;;  %v1342_v9 = vadd.f32 %v1340_v24, %v1322_v1  ;;  %v1497_v53 = vmul.f32 %v1496_v50, %v3352_v63  ;;  %v1501_v24 = vmul.f32 %v1500_v27, %v3352_v63 }
 0x207   : > { %v1505_v2 = vmul.f32 %v1504_v3, %v3352_v63 }
 0x209   : > { %v1356_v20 = vpop.permute.xlu1 %1355  ;;  %v1348_v35 = vpop.permute.xlu0 %1347 }
 0x20a   : > { %v1358_v4 = vadd.f32 %v1356_v20, %v1334_v60  ;;  %v1350_v12 = vadd.f32 %v1348_v35, %v1326_v36 }
 0x20c   : > { %v1378_v43 = vadd.f32 %v1377_v28, %v1358_v4  ;;  %v1556_v4 = vstv %s2156_s9  ;;  %s1825_s9 = sshll.u32 %s311_s25, 4  ;;  %s3604_s9 = int_to_ptr.vmem [resolvable:$true] %s1825_s9 }
 0x20d   : > { %v1372_v13 = vpop.permute.xlu1 %1371  ;;  %v1364_v62 = vpop.permute.xlu0 %1363 }
 0x20e   : > { %v1374_v29 = vadd.f32 %v1372_v13, %v1350_v12  ;;  %v1366_v16 = vadd.f32 %v1364_v62, %v1342_v9  ;;  %v1557_v12 = vmul.f32 %v1556_v4, %v3381_v39  ;;  %v1564_v13 = vstv %s2158_s13 }
 0x210   : > { %v1382_v32 = vadd.f32 %v1381_v14, %v1366_v16  ;;  %v1386_v0 = vadd.f32 %v1385_v41, %v1374_v29 }
 0x211   : > { %v1400_v21 = vpop.permute.xlu1 %1399  ;;  %v1392_v30 = vpop.permute.xlu0 %1391 }
 0x212   : > { %v1394_v22 = vadd.f32 %v1392_v30, %v1378_v43  ;;  %v1402_v15 = vadd.f32 %v1400_v21, %v1382_v32  ;;  %v1560_v43 = vstv %s2157_s2  ;;  %v1565_v21 = vmul.f32 %v1564_v13, %v3381_v39  ;;  %s2202_s2 = smul.u32 192, %s2488_s21 }
 0x213   : > { %v1740_v13 = vstv %s2184_s6 }
 0x214   : > { %s3609_s21 = scalar_lea.hbm %s3665_s5, %s2202_s2 }
 0x215   : > { %v1416_v33 = vpop.permute.xlu1 %1415  ;;  %v1408_v5 = vpop.permute.xlu0 %1407 }
 0x216   : > { %v1418_v26 = vadd.f32 %v1416_v33, %v1394_v22  ;;  %v1410_v47 = vadd.f32 %v1408_v5, %v1386_v0  ;;  %v1561_v0 = vmul.f32 %v1560_v43, %v3381_v39  ;;  %v1616_v5 = vstv %s2165_s24 }
 0x218   : > { %v1438_v56 = vadd.f32 %v1437_v34, %v1418_v26 }
 0x219   : > { %v1432_v54 = vpop.permute.xlu1 %1431  ;;  %v1424_v49 = vpop.permute.xlu0 %1423 }
 0x21a   : > { %v1434_v31 = vadd.f32 %v1432_v54, %v1410_v47  ;;  %v1426_v61 = vadd.f32 %v1424_v49, %v1402_v15  ;;  %v1617_v15 = vmul.f32 %v1616_v5, %v3374_v38  ;;  %v1620_v47 = vstv %s2166_s16  ;;  %s1811_s16 = scalar_lea.sflag [#allocation4], %s2711_s7 }
 0x21c   : > { %v1442_v23 = vadd.f32 %v1441_v6, %v1426_v61  ;;  %v1446_v48 = vadd.f32 %v1445_v46, %v1434_v31 }
 0x21d   : > { %v1460_v51 = vpop.permute.xlu1 %1459  ;;  %v1452_v44 = vpop.permute.xlu0 %1451 }
 0x21e   : > { %v1454_v40 = vadd.f32 %v1452_v44, %v1438_v56  ;;  %v1462_v58 = vadd.f32 %v1460_v51, %v1442_v23  ;;  %v1624_v56 = vstv %s2167_s15  ;;  %v1621_v23 = vmul.f32 %v1620_v47, %v3374_v38  ;;  %s2402_s15 = scalar_lea.vmem %s3604_s9, 192 }
 0x21f   : > { %p2403_p4 = scmp.ne.s32.totalorder %s3604_s9, %s2402_s15 }
 0x221   : > { %v1476_v19 = vpop.permute.xlu1 %1475  ;;  %v1468_v55 = vpop.permute.xlu0 %1467  ;;  %p2404_p8 = pnand %p2403_p4, %p2658_p5 }
 0x222   : > { %v1478_v57 = vadd.f32 %v1476_v19, %v1454_v40  ;;  %v1470_v18 = vadd.f32 %v1468_v55, %v1446_v48  ;;  %v1625_v48 = vmul.f32 %v1624_v56, %v3374_v38  ;;  %v1676_v19 = vstv %s2174_s11  ;;  %s2507_s11 = smov [#allocation12]  }
 0x223   : > { %v1677_v3 = vmul.f32 %v1676_v19, %v3401_v25  ;;  %v1806_v56 = vstv %s2194_s1  ;;  %p2405_p9 = pneg %p2404_p8 }
 0x224   : > { %v1498_v59 = vadd.f32 %v1497_v53, %v1478_v57 }
 0x225   : > { %v1492_v52 = vpop.permute.xlu1 %1491  ;;  %v1484_v17 = vpop.permute.xlu0 %1483 }
 0x226   : > { %v1494_v1 = vadd.f32 %v1492_v52, %v1470_v18  ;;  %v1486_v36 = vadd.f32 %v1484_v17, %v1462_v58  ;;  %v1680_v58 = vstv %s2175_s17  ;;  %v1684_v18 = vstv %s2176_s28  ;;  %s2406_s17 = sshll.u32 %s2507_s11, 4  ;;  %s2407_s17 = int_to_ptr.vmem [resolvable:$false] %s2406_s17 }
 0x227   : > { %s2408_s28 = scalar_lea.vmem %s2407_s17, 384  ;;  %p2409_p3 = scmp.lt.s32.totalorder %s3604_s9, %s2407_s17 }
 0x228   : > { %v1502_v11 = vadd.f32 %v1501_v24, %v1486_v36  ;;  %v1506_v60 = vadd.f32 %v1505_v2, %v1494_v1  ;;  %v1681_v2 = vmul.f32 %v1680_v58, %v3401_v25  ;;  %p2410_p7 = scmp.lt.s32.totalorder %s2408_s28, %s2402_s15 }
 0x229   : > { %v1520_v20 = vpop.permute.xlu1 %1519  ;;  %v1512_v35 = vpop.permute.xlu0 %1511 }
 0x22a   : > { %v1514_v28 = vadd.f32 %v1512_v35, %v1498_v59  ;;  %v1522_v62 = vadd.f32 %v1520_v20, %v1502_v11  ;;  %v1685_v11 = vmul.f32 %v1684_v18, %v3401_v25  ;;  %p2411_p10 = por %p2410_p7, %p2409_p3 }
 0x22c   : > { %p2412_p0 = pnand %p2411_p10, %p2405_p9 }
 0x22d   : > { %v1536_v8 = vpop.permute.xlu1 %1535  ;;  %v1528_v10 = vpop.permute.xlu0 %1527 }
 0x22e   : > { %v1538_v9 = vadd.f32 %v1536_v8, %v1514_v28  ;;  %v1530_v29 = vadd.f32 %v1528_v10, %v1506_v60  ;;  %v1736_v28 = vstv %s2183_s27 }
 0x22f   : > { %v1737_v43 = vmul.f32 %v1736_v28, %v3394_v37 }
 0x230   : > { %v1558_v16 = vadd.f32 %v1557_v12, %v1538_v9 }
 0x231   : > { %v1552_v63 = vpop.permute.xlu1 %1551  ;;  %v1544_v14 = vpop.permute.xlu0 %1543 }
 0x232   : > { %v1554_v41 = vadd.f32 %v1552_v63, %v1530_v29  ;;  %v1546_v32 = vadd.f32 %v1544_v14, %v1522_v62  ;;  %v1744_v62 = vstv %s2185_s10 }
 0x234   : > { %v1562_v30 = vadd.f32 %v1561_v0, %v1546_v32  ;;  %v1566_v7 = vadd.f32 %v1565_v21, %v1554_v41  ;;  %v1741_v0 = vmul.f32 %v1740_v13, %v3394_v37  ;;  %v1745_v21 = vmul.f32 %v1744_v62, %v3394_v37 }
 0x235   : > { %v1580_v22 = vpop.permute.xlu1 %1579  ;;  %v1572_v33 = vpop.permute.xlu0 %1571 }
 0x236   : > { %v1574_v26 = vadd.f32 %v1572_v33, %v1558_v16  ;;  %v1582_v54 = vadd.f32 %v1580_v22, %v1562_v30 }
 0x239   : > { %v1596_v34 = vpop.permute.xlu1 %1595  ;;  %v1588_v42 = vpop.permute.xlu0 %1587 }
 0x23a   : > { %v1598_v45 = vadd.f32 %v1596_v34, %v1574_v26  ;;  %v1590_v49 = vadd.f32 %v1588_v42, %v1566_v7  ;;  %v1796_v26 = vstv %s1795_s0 }
 0x23c   : > { %v1618_v31 = vadd.f32 %v1617_v15, %v1598_v45 }
 0x23d   : > { %v1612_v39 = vpop.permute.xlu1 %1611  ;;  %v1604_v61 = vpop.permute.xlu0 %1603 }
 0x23e   : > { %v1614_v6 = vadd.f32 %v1612_v39, %v1590_v49  ;;  %v1606_v46 = vadd.f32 %v1604_v61, %v1582_v54  ;;  %v1801_v49 = vstv %s2192_s26 }
 0x240   : > { %v1622_v51 = vadd.f32 %v1621_v23, %v1606_v46  ;;  %v1626_v44 = vadd.f32 %v1625_v48, %v1614_v6 }
 0x241   : > { %v1640_v50 = vpop.permute.xlu1 %1639  ;;  %v1632_v40 = vpop.permute.xlu0 %1631 }
 0x242   : > { %v1634_v55 = vadd.f32 %v1632_v40, %v1618_v31  ;;  %v1642_v59 = vadd.f32 %v1640_v50, %v1622_v51 }
 0x245   : > { %v1656_v57 = vpop.permute.xlu1 %1655  ;;  %v1648_v53 = vpop.permute.xlu0 %1647 }
 0x246   : > { %v1658_v27 = vadd.f32 %v1656_v57, %v1634_v55  ;;  %v1650_v52 = vadd.f32 %v1648_v53, %v1626_v44 }
 0x248   : > { %v1678_v17 = vadd.f32 %v1677_v3, %v1658_v27 }
 0x249   : > { %v1672_v38 = vpop.permute.xlu1 %1671  ;;  %v1664_v1 = vpop.permute.xlu0 %1663 }
 0x24a   : > { %v1674_v36 = vadd.f32 %v1672_v38, %v1650_v52  ;;  %v1666_v24 = vadd.f32 %v1664_v1, %v1642_v59 }
 0x24c   : > { %v1682_v60 = vadd.f32 %v1681_v2, %v1666_v24  ;;  %v1686_v20 = vadd.f32 %v1685_v11, %v1674_v36 }
 0x24d   : > { %v1700_v35 = vpop.permute.xlu1 %1699  ;;  %v1692_v4 = vpop.permute.xlu0 %1691 }
 0x24e   : > { %v1694_v8 = vadd.f32 %v1692_v4, %v1678_v17  ;;  %v1702_v29 = vadd.f32 %v1700_v35, %v1682_v60 }
 0x251   : > { %v1716_v10 = vpop.permute.xlu1 %1715  ;;  %v1708_v9 = vpop.permute.xlu0 %1707 }
 0x252   : > { %v1718_v12 = vadd.f32 %v1716_v10, %v1694_v8  ;;  %v1710_v16 = vadd.f32 %v1708_v9, %v1686_v20 }
 0x254   : > { %v1738_v63 = vadd.f32 %v1737_v43, %v1718_v12 }
 0x255   : > { %v1732_v14 = vpop.permute.xlu1 %1731  ;;  %v1724_v25 = vpop.permute.xlu0 %1723 }
 0x256   : > { %v1734_v41 = vadd.f32 %v1732_v14, %v1710_v16  ;;  %v1726_v32 = vadd.f32 %v1724_v25, %v1702_v29 }
 0x258   : > { %v1742_v30 = vadd.f32 %v1741_v0, %v1726_v32  ;;  %v1746_v7 = vadd.f32 %v1745_v21, %v1734_v41 }
 0x259   : > { %v1760_v22 = vpop.permute.xlu1 %1759  ;;  %v1752_v33 = vpop.permute.xlu0 %1751 }
 0x25a   : > { %v1754_v5 = vadd.f32 %v1752_v33, %v1738_v63  ;;  %v1762_v15 = vadd.f32 %v1760_v22, %v1742_v30 }
 0x25d   : > { %v1776_v34 = vpop.permute.xlu1 %1775  ;;  %v1768_v42 = vpop.permute.xlu0 %1767 }
 0x25e   : > { %v1778_v45 = vadd.f32 %v1776_v34, %v1754_v5  ;;  %v1770_v37 = vadd.f32 %v1768_v42, %v1746_v7 }
 0x260   : > { %v1797_v47 = vadd.f32 %v1796_v26, %v1778_v45 }
 0x261   : > { %v1792_v54 = vpop.permute.xlu1 %1791  ;;  %v1784_v31 = vpop.permute.xlu0 %1783 }
 0x262   : > { %1799 = vst.msk [vmem:[%s311_s25] sm:$0xf] %vm1798_vm3, %v1797_v47  ;;  %v1794_v39 = vadd.f32 %v1792_v54, %v1770_v37  ;;  %v1786_v61 = vadd.f32 %v1784_v31, %v1762_v15 }
 0x264   : > { %v1807_v6 = vadd.f32 %v1806_v56, %v1794_v39  ;;  %v1802_v46 = vadd.f32 %v1801_v49, %v1786_v61 }
 0x266   : > { %2195 = vst.msk [vmem:[%s311_s25 + $0x8] sm:$0xf] %vm1798_vm3, %v1807_v6  ;;  %2193 = vst.msk [vmem:[%s311_s25 + $0x4] sm:$0xf] %vm1798_vm3, %v1802_v46 }
 0x267   : > { %2415 = shalt.err (!%p2412_p0)
}
 0x268   : > { %s2416_s27 = scalar_lea.hbm %s3609_s21, 192  ;;  %s2420_s0 = scalar_lea.hbm %s3665_s5, 384 }
 0x269   : > { %p2417_p1 = scmp.ne.s32.totalorder %s3609_s21, %s2416_s27  ;;  %p2421_p12 = scmp.lt.u32.totalorder %s3609_s21, %s3665_s5 }
 0x26a   : > { %p2422_p6 = scmp.lt.u32.totalorder %s2420_s0, %s2416_s27  ;;  %p2424_p4 = scmp.lt.u32.totalorder %s2416_s27, %s3609_s21 }
 0x26b   : > { %p2418_p13 = pnand %p2417_p1, %p2658_p5 }
 0x26c   : > { %p2423_p11 = por %p2422_p6, %p2421_p12 }
 0x26d   : > { %p2419_p2 = pneg %p2418_p13 }
 0x26e   : > { %p2425_p8 = por %p2424_p4, %p2423_p11 }
 0x270   : > { %p2426_p9 = pnand %p2425_p8, %p2419_p2 }
 0x272   : > { %2429 = shalt.err (!%p2426_p9)
}
 0x273   : > { %s2508_s8 = smov 64   ;;  %s2509_s25 = smov 4  }
 0x274   : > { %2221 = dma.vmem_to_hbm [thread:$0]  (%p2658_p5), %s3604_s9, 192, %s3609_s21, %s1811_s16, %s2508_s8, %s2508_s8, %s2509_s25  }
 0x275 PF: > { %s1840_s2 = sand.u32 1, %s2476_s18   ;;  %p3698_p3 = scmp.ne.s32.totalorder %s3681_s29, 0 }
 0x276   : > { %p3699_p7 = scmp.ge.s32.totalorder %s2496_s23, 2  ;;  %s1841_s13 = scalar_lea.sflag [#allocation4], %s1840_s2 }
 0x278   : > { %p2241_p10 = pnand %p3699_p7, %p3698_p3 }
 0x27a   : > { %2471 = dma.done.wait (!%p2241_p10), %s1841_s13, 192  }
 0x27b   : > { %2473 = vsyncadd (!%p2241_p10), %s1841_s13, 4294967104  ;;  %s24_s23 = sadd.s32 1, %s2496_s23   ;;  %s3700_s18 = smov %s2480_s19 }
 0x27c   : > { %p21_p0 = scmp.ge.s32.totalorder %s24_s23, 4   ;;  %s3701_s19 = smov %s2484_s20 }
 0x27d   : > { %s3702_s20 = smov %s2670_s30  ;;  %s3703_s21 = smov %s2492_s22 }
 0x27e   : > { %s3704_s22 = smov %s3706_s14  ;;  %23 = sbr.rel (!%p21_p0) target bundleno = 13 (0xd), region = 106 }
 0x285   :  { %1846 = vsyncpa [#allocation3], 1 }
 0x286   :  { %1848 = vsyncpa [#allocation3 + $0x1], 1 }
 0x287   :  { %1849 = vsyncpa [#allocation4], 1 }
 0x288   :  { %1851 = vsyncpa [#allocation4 + $0x1], 1 }
 0x289   :  { %1852 = vsyncpa [#allocation5], 1 }
 0x28a   :  { %1854 = vsyncpa [#allocation5 + $0x1], 1 }
 0x28b   :  { %1855 = vsyncpa [#allocation8], 1 }
 0x28c   :  { %1856 = vsyncpa [#allocation11], 1 }

</bundles_post_ra>
